<compile_context>
chip_gen: v7x
topology: tpu7x:2x2x1
jax: 0.10.0
libtpu: 0.0.40
codegen_flags: <defaults>
</compile_context>

<pallas_src>
import functools

import jax
import jax.numpy as jnp
from jax import lax
from jax.experimental import pallas as pl
from jax.experimental.pallas import tpu as pltpu

NEG_SLOPE = 0.01   # nn.LeakyReLU() default
C = 128            # intermediate channel dims (16/32/64) zero-padded to one lane register


def _leaky(x):
    return jnp.where(x >= 0.0, x, NEG_SLOPE * x)


def _pick_tile(n, itemsize, cap=None):
    """Largest multiple-of-16 divisor of n that is <= cap (n itself if n <= cap)."""
    if cap is None:
        cap = 512 if itemsize >= 4 else 1024   # ~85%-of-HBM-roofline knee; v7x 64 MiB safe
    if n <= cap:
        return n
    t = (cap // 16) * 16
    while t >= 16:
        if n % t == 0:
            return t
        t -= 16
    return n                                   # no aligned divisor: fall back to one tile


# ----------------------------------------------------------------------------
# Generic encoder layer: Conv1d(k=3, s=2, p=1) + bias [+ LeakyReLU], C=128 lanes
#   y[l] = xo[l-1] @ W0 + xe[l] @ W1 + xo[l] @ W2 + b,   xe[m]=x[2m], xo[m]=x[2m+1]
# Input is the free reshape (B, Lout, 2C): lanes [0,C)=even phase, [C,2C)=odd.
# ----------------------------------------------------------------------------
def _enc_kernel(xp_ref, hb_ref, w_ref, b_ref, o_ref, *, apply_act):
    tl, c = o_ref.shape
    lt = pl.program_id(1)
    xe = xp_ref[:, :c]                          # (TL, C)
    xo = xp_ref[:, c:]                          # (TL, C)
    halo = hb_ref[pl.ds(lt, 1), :]              # (1, C) = xo[-1] of the previous tile
    if tl > 1:
        xo_prev = jnp.concatenate([halo, xo[:tl - 1, :]], axis=0)
    else:
        xo_prev = halo
    acc = jnp.dot(xo_prev, w_ref[0], preferred_element_type=jnp.float32)
    acc = acc + jnp.dot(xe, w_ref[1], preferred_element_type=jnp.float32)
    acc = acc + jnp.dot(xo, w_ref[2], preferred_element_type=jnp.float32)
    acc = acc + b_ref[...]
    if apply_act:
        acc = _leaky(acc)
    o_ref[...] = acc.astype(o_ref.dtype)


def conv1d_s2(h, wk, bk, apply_act, tile_cap=None):
    """h: (B, Lin, C) -> (B, Lin//2, C)."""
    B, Lin, Cc = h.shape
    assert Cc == C and Lin % 2 == 0
    Lout = Lin // 2
    xp = h.reshape(B, Lout, 2 * C)              # free: adjacent time steps side by side
    tl = _pick_tile(Lout, h.dtype.itemsize, tile_cap)
    nt = Lout // tl
    if nt == 1:
        hb = jnp.zeros((B, 1, C), h.dtype)
    else:                                        # halo rows: xo[lt*tl - 1] for lt >= 1
        rows = xp[:, tl - 1:(nt - 1) * tl:tl, C:]
        hb = jnp.concatenate([jnp.zeros((B, 1, C), h.dtype), rows], axis=1)
    ab, wb = h.dtype.itemsize, wk.dtype.itemsize
    return pl.pallas_call(
        functools.partial(_enc_kernel, apply_act=apply_act),
        out_shape=jax.ShapeDtypeStruct((B, Lout, C), h.dtype),
        grid=(B, nt),
        in_specs=[
            pl.BlockSpec((None, tl, 2 * C), lambda b, t: (b, t, 0)),
            pl.BlockSpec((None, nt, C), lambda b, t: (b, 0, 0)),   # resident per batch
            pl.BlockSpec((3, C, C), lambda b, t: (0, 0, 0)),
            pl.BlockSpec((1, C), lambda b, t: (0, 0)),
        ],
        out_specs=pl.BlockSpec((None, tl, C), lambda b, t: (b, t, 0)),
        compiler_params=pltpu.CompilerParams(
            dimension_semantics=("parallel", "parallel")),
        cost_estimate=pl.CostEstimate(
            flops=2 * 3 * B * Lout * C * C,
            transcendentals=0,
            bytes_accessed=(B * Lout * 3 * C + B * nt * C) * ab
                           + (3 * C * C + C) * wb,
        ),
    )(xp, hb, wk, bk)


# ----------------------------------------------------------------------------
# Generic decoder layer: ConvTranspose1d(k=4, s=2, p=1) + bias [+ LeakyReLU]
#   y[2m]   = x[m]   @ W1 + x[m-1] @ W3 + b
#   y[2m+1] = x[m+1] @ W0 + x[m]   @ W2 + b
# Both output phases go into the lane halves of a (B, Lin, 2C) output.
# ----------------------------------------------------------------------------
def _dec_kernel(x_ref, hb_ref, hf_ref, w_ref, b_ref, o_ref, *, apply_act):
    tl, c = x_ref.shape
    lt = pl.program_id(1)
    x = x_ref[...]
    hb = hb_ref[pl.ds(lt, 1), :]                # x[-1] of previous tile (or 0)
    hf = hf_ref[pl.ds(lt, 1), :]                # x[0]  of next tile     (or 0)
    if tl > 1:
        x_prev = jnp.concatenate([hb, x[:tl - 1, :]], axis=0)
        x_next = jnp.concatenate([x[1:, :], hf], axis=0)
    else:
        x_prev, x_next = hb, hf
    ye = jnp.dot(x, w_ref[1], preferred_element_type=jnp.float32)
    ye = ye + jnp.dot(x_prev, w_ref[3], preferred_element_type=jnp.float32)
    ye = ye + b_ref[...]
    yo = jnp.dot(x_next, w_ref[0], preferred_element_type=jnp.float32)
    yo = yo + jnp.dot(x, w_ref[2], preferred_element_type=jnp.float32)
    yo = yo + b_ref[...]
    if apply_act:
        ye = _leaky(ye)
        yo = _leaky(yo)
    o_ref[:, :c] = ye.astype(o_ref.dtype)
    o_ref[:, c:] = yo.astype(o_ref.dtype)


def conv_transpose1d_s2(h, wk, bk, apply_act, tile_cap=None):
    """h: (B, Lin, C) -> (B, 2*Lin, C)."""
    B, Lin, Cc = h.shape
    assert Cc == C
    tl = _pick_tile(Lin, h.dtype.itemsize, tile_cap)
    nt = Lin // tl
    if nt == 1:
        hb = jnp.zeros((B, 1, C), h.dtype)
        hf = jnp.zeros((B, 1, C), h.dtype)
    else:
        rb = h[:, tl - 1:(nt - 1) * tl:tl, :]
        hb = jnp.concatenate([jnp.zeros((B, 1, C), h.dtype), rb], axis=1)
        rf = h[:, tl::tl, :]
        hf = jnp.concatenate([rf, jnp.zeros((B, 1, C), h.dtype)], axis=1)
    ab, wb = h.dtype.itemsize, wk.dtype.itemsize
    y2 = pl.pallas_call(
        functools.partial(_dec_kernel, apply_act=apply_act),
        out_shape=jax.ShapeDtypeStruct((B, Lin, 2 * C), h.dtype),
        grid=(B, nt),
        in_specs=[
            pl.BlockSpec((None, tl, C), lambda b, t: (b, t, 0)),
            pl.BlockSpec((None, nt, C), lambda b, t: (b, 0, 0)),
            pl.BlockSpec((None, nt, C), lambda b, t: (b, 0, 0)),
            pl.BlockSpec((4, C, C), lambda b, t: (0, 0, 0)),
            pl.BlockSpec((1, C), lambda b, t: (0, 0)),
        ],
        out_specs=pl.BlockSpec((None, tl, 2 * C), lambda b, t: (b, t, 0)),
        compiler_params=pltpu.CompilerParams(
            dimension_semantics=("parallel", "parallel")),
        cost_estimate=pl.CostEstimate(
            flops=2 * 4 * B * Lin * C * C,
            transcendentals=0,
            bytes_accessed=(B * Lin * 3 * C + 2 * B * nt * C) * ab
                           + (4 * C * C + C) * wb,
        ),
    )(h, hb, hf, wk, bk)
    return y2.reshape(B, 2 * Lin, C)            # even/odd interleave: free reshape


# ----------------------------------------------------------------------------
# Endpoint layer 0: Conv1d(1 -> 16, k=3, s=2, p=1) + LeakyReLU.
# Raw waveform stays (B, L/2, 2); VPU outer products against (1, C) tap rows.
# ----------------------------------------------------------------------------
def _enc0_kernel(x2_ref, hb_ref, w_ref, b_ref, o_ref):
    tl = o_ref.shape[0]
    lt = pl.program_id(1)
    xe = x2_ref[:, 0:1]                          # (TL, 1)
    xo = x2_ref[:, 1:2]                          # (TL, 1)
    halo = hb_ref[pl.ds(lt, 1), :]               # (1, 1)
    if tl > 1:
        xo_prev = jnp.concatenate([halo, xo[:tl - 1, :]], axis=0)
    else:
        xo_prev = halo
    acc = xo_prev * w_ref[0:1, :] + xe * w_ref[1:2, :] + xo * w_ref[2:3, :]
    acc = acc + b_ref[...]
    acc = _leaky(acc)                            # encoder layer 0 is followed by LeakyReLU
    o_ref[...] = acc.astype(o_ref.dtype)


def conv1d_s2_c1(x, wk, bk, out_dtype, tile_cap=None):
    """x: (B, L) f32 -> (B, L//2, C) in out_dtype (16 real channels, rest zero)."""
    B, L = x.shape
    Lout = L // 2
    x2 = x.reshape(B, Lout, 2)                   # free phase packing
    tl = _pick_tile(Lout, 4, tile_cap)
    nt = Lout // tl
    if nt == 1:
        hb = jnp.zeros((B, 1, 1), x.dtype)
    else:
        rows = x2[:, tl - 1:(nt - 1) * tl:tl, 1:2]
        hb = jnp.concatenate([jnp.zeros((B, 1, 1), x.dtype), rows], axis=1)
    return pl.pallas_call(
        _enc0_kernel,
        out_shape=jax.ShapeDtypeStruct((B, Lout, C), out_dtype),
        grid=(B, nt),
        in_specs=[
            pl.BlockSpec((None, tl, 2), lambda b, t: (b, t, 0)),
            pl.BlockSpec((None, nt, 1), lambda b, t: (b, 0, 0)),
            pl.BlockSpec((3, C), lambda b, t: (0, 0)),
            pl.BlockSpec((1, C), lambda b, t: (0, 0)),
        ],
        out_specs=pl.BlockSpec((None, tl, C), lambda b, t: (b, t, 0)),
        compiler_params=pltpu.CompilerParams(
            dimension_semantics=("parallel", "parallel")),
    )(x2, hb, wk, bk)


# ----------------------------------------------------------------------------
# Endpoint layer 9: ConvTranspose1d(16 -> 1, k=4, s=2, p=1), no activation.
# Output is (B, Lin, 2) (even/odd samples) via in-kernel lane reductions.
# ----------------------------------------------------------------------------
def _dec_last_kernel(x_ref, hb_ref, hf_ref, w_ref, b_ref, o_ref):
    tl = x_ref.shape[0]
    lt = pl.program_id(1)
    x = x_ref[...].astype(jnp.float32)
    hb = hb_ref[pl.ds(lt, 1), :].astype(jnp.float32)
    hf = hf_ref[pl.ds(lt, 1), :].astype(jnp.float32)
    if tl > 1:
        x_prev = jnp.concatenate([hb, x[:tl - 1, :]], axis=0)
        x_next = jnp.concatenate([x[1:, :], hf], axis=0)
    else:
        x_prev, x_next = hb, hf
    w = w_ref[...]                               # (4, C) f32
    bias = b_ref[...]                            # (1, 1) f32
    ye = (jnp.sum(x * w[1:2, :], axis=1, keepdims=True)
          + jnp.sum(x_prev * w[3:4, :], axis=1, keepdims=True) + bias)
    yo = (jnp.sum(x_next * w[0:1, :], axis=1, keepdims=True)
          + jnp.sum(x * w[2:3, :], axis=1, keepdims=True) + bias)
    o_ref[:, 0:1] = ye.astype(o_ref.dtype)
    o_ref[:, 1:2] = yo.astype(o_ref.dtype)


def conv_transpose1d_s2_c1(h, wk, bk, tile_cap=None):
    """h: (B, Lin, C) -> (B, 2*Lin) float32."""
    B, Lin, Cc = h.shape
    assert Cc == C
    tl = _pick_tile(Lin, h.dtype.itemsize, tile_cap)
    nt = Lin // tl
    if nt == 1:
        hb = jnp.zeros((B, 1, C), h.dtype)
        hf = jnp.zeros((B, 1, C), h.dtype)
    else:
        rb = h[:, tl - 1:(nt - 1) * tl:tl, :]
        hb = jnp.concatenate([jnp.zeros((B, 1, C), h.dtype), rb], axis=1)
        rf = h[:, tl::tl, :]
        hf = jnp.concatenate([rf, jnp.zeros((B, 1, C), h.dtype)], axis=1)
    y2 = pl.pallas_call(
        _dec_last_kernel,
        out_shape=jax.ShapeDtypeStruct((B, Lin, 2), jnp.float32),
        grid=(B, nt),
        in_specs=[
            pl.BlockSpec((None, tl, C), lambda b, t: (b, t, 0)),
            pl.BlockSpec((None, nt, C), lambda b, t: (b, 0, 0)),
            pl.BlockSpec((None, nt, C), lambda b, t: (b, 0, 0)),
            pl.BlockSpec((4, C), lambda b, t: (0, 0)),
            pl.BlockSpec((1, 1), lambda b, t: (0, 0)),
        ],
        out_specs=pl.BlockSpec((None, tl, 2), lambda b, t: (b, t, 0)),
        compiler_params=pltpu.CompilerParams(
            dimension_semantics=("parallel", "parallel")),
    )(h, hb, hf, wk, bk)
    return y2.reshape(B, 2 * Lin)


# ----------------------------------------------------------------------------
# Parameters (PyTorch layout) and packing
# ----------------------------------------------------------------------------
ENC_CH = [(1, 16), (16, 32), (32, 64), (64, 64), (64, 64)]
DEC_CH = [(64, 64), (64, 64), (64, 32), (32, 16), (16, 1)]


def init_params(key):
    enc_w, enc_b, dec_w, dec_b = [], [], [], []
    keys = jax.random.split(key, 20)
    ki = 0
    for cin, cout in ENC_CH:
        enc_w.append(0.1 * jax.random.normal(keys[ki], (cout, cin, 3), jnp.float32)); ki += 1
        enc_b.append(0.1 * jax.random.normal(keys[ki], (cout,), jnp.float32)); ki += 1
    for cin, cout in DEC_CH:
        dec_w.append(0.1 * jax.random.normal(keys[ki], (cin, cout, 4), jnp.float32)); ki += 1
        dec_b.append(0.1 * jax.random.normal(keys[ki], (cout,), jnp.float32)); ki += 1
    return enc_w, enc_b, dec_w, dec_b


def pack_params(params, dtype=jnp.float32):
    """Pack weights per tap; intermediate layers are zero-padded to 128 lanes.

    NOTE (padded-lane safety): padded weight rows/cols and padded bias lanes are
    exactly zero and LeakyReLU(0) == 0, so padded channels stay identically zero
    through the whole network and cannot leak into real channels.
    """
    enc_w, enc_b, dec_w, dec_b = params
    # Layer 0 (Cin=1): per-tap (C,) rows, kept f32 (VPU endpoint kernel).
    w = enc_w[0]
    w0 = jnp.zeros((3, C), jnp.float32).at[:, :w.shape[0]].set(w[:, 0, :].T)
    b0 = jnp.zeros((1, C), jnp.float32).at[0, :w.shape[0]].set(enc_b[0])
    enc = []
    for w, b in zip(enc_w[1:], enc_b[1:]):       # Conv1d weight: (Cout, Cin, K)
        cout, cin, K = w.shape
        wk = jnp.zeros((K, C, C), dtype).at[:, :cin, :cout].set(
            jnp.transpose(w, (2, 1, 0)).astype(dtype))
        bk = jnp.zeros((1, C), dtype).at[0, :cout].set(b.astype(dtype))
        enc.append((wk, bk))
    dec = []
    for w, b in zip(dec_w[:-1], dec_b[:-1]):     # ConvTranspose1d weight: (Cin, Cout, K)
        cin, cout, K = w.shape
        wk = jnp.zeros((K, C, C), dtype).at[:, :cin, :cout].set(
            jnp.transpose(w, (2, 0, 1)).astype(dtype))
        bk = jnp.zeros((1, C), dtype).at[0, :cout].set(b.astype(dtype))
        dec.append((wk, bk))
    # Last layer (Cout=1): per-tap (C,) rows + scalar bias, f32 (reduce kernel).
    w = dec_w[-1]
    wl = jnp.zeros((4, C), jnp.float32).at[:, :w.shape[0]].set(w[:, 0, :].T)
    bl = dec_b[-1].reshape(1, 1).astype(jnp.float32)
    return {"enc0": (w0, b0), "enc": enc, "dec": dec, "dec_last": (wl, bl)}


# ----------------------------------------------------------------------------
# WaveConv1D forward (encoder: 5x Conv1d s2, decoder: 5x ConvTranspose1d s2)
# ----------------------------------------------------------------------------
def waveconv1d_forward(x, packed, tile_cap=None):
    """x: (B, 1, L) with L a multiple of 32. Returns (B, 1, L) float32."""
    B, one, L = x.shape
    assert one == 1 and L % 32 == 0, "WaveConv1D needs (B, 1, L) with L % 32 == 0"
    w0, b0 = packed["enc0"]
    wl, bl = packed["dec_last"]
    dtype = packed["enc"][0][0].dtype

    h = conv1d_s2_c1(x.reshape(B, L).astype(jnp.float32), w0, b0, dtype, tile_cap)
    for i, (wk, bk) in enumerate(packed["enc"]):       # encoder layers 1..4
        h = conv1d_s2(h, wk, bk, apply_act=(i < 3), tile_cap=tile_cap)
    for wk, bk in packed["dec"]:                       # decoder layers 0..3
        h = conv_transpose1d_s2(h, wk, bk, apply_act=True, tile_cap=tile_cap)
    y = conv_transpose1d_s2_c1(h, wl, bl, tile_cap)    # decoder layer 4 (no act)
    return y.reshape(B, 1, L)


# ----------------------------------------------------------------------------
# Pure-JAX (lax.conv) reference for semantic verification
# ----------------------------------------------------------------------------
def _ref_forward(x, params):
    enc_w, enc_b, dec_w, dec_b = params
    dn = lax.conv_dimension_numbers(x.shape, enc_w[0].shape, ("NCH", "OIH", "NCH"))
    h = x
    for i in range(5):
        h = lax.conv_general_dilated(h, enc_w[i], window_strides=(2,),
                                     padding=[(1, 1)], dimension_numbers=dn)
        h = h + enc_b[i][None, :, None]
        if i < 4:
            h = _leaky(h)
    for i in range(5):
        w_conv = jnp.flip(dec_w[i].transpose(1, 0, 2), axis=2)   # (Cout, Cin, K)
        h = lax.conv_general_dilated(h, w_conv, window_strides=(1,),
                                     padding=[(2, 2)], lhs_dilation=(2,),
                                     dimension_numbers=dn)
        h = h + dec_b[i][None, :, None]
        if i < 4:
            h = _leaky(h)
    return h


if __name__ == "__main__":
    key = jax.random.PRNGKey(0)
    kp, kx1, kx2 = jax.random.split(key, 3)
    params = init_params(kp)
    fwd = jax.jit(waveconv1d_forward, static_argnames=("tile_cap",))

    # 1) Small shapes: single time-tile per layer, f32 operands (tight check).
    B, L = 2, 64
    x = jax.random.normal(kx1, (B, 1, L), jnp.float32)
    y_ref = jax.block_until_ready(_ref_forward(x, params))
    packed_f32 = pack_params(params, jnp.float32)
    y = jax.block_until_ready(fwd(x, packed_f32))
    assert y.shape == (B, 1, L), y.shape
    err = float(jnp.max(jnp.abs(y - y_ref)))
    assert jnp.allclose(y, y_ref, atol=1e-4, rtol=1e-4), err

    # 2) Larger L with a small tile cap to exercise the L-tiled (multi-block,
    #    halo-carrying) path of every kernel.
    L2 = 512
    x2 = jax.random.normal(kx2, (B, 1, L2), jnp.float32)
    y_ref2 = jax.block_until_ready(_ref_forward(x2, params))
    y2 = jax.block_until_ready(fwd(x2, packed_f32, tile_cap=32))
    err2 = float(jnp.max(jnp.abs(y2 - y_ref2)))
    assert jnp.allclose(y2, y_ref2, atol=1e-4, rtol=1e-4), err2

    # 3) bf16 operand path for the intermediate layers (MXU-native, f32 accum).
    packed_bf16 = pack_params(params, jnp.bfloat16)
    ybf = jax.block_until_ready(fwd(x, packed_bf16))
    errbf = float(jnp.max(jnp.abs(ybf - y_ref)))
    assert jnp.allclose(ybf, y_ref, atol=5e-2, rtol=5e-2), errbf

    print("KERNEL_OK")
</pallas_src>

<mosaic_0001>
module attributes {stable_mosaic.version = 11 : i64} {
  func.func @_enc_kernel(%arg0: i32, %arg1: i32, %arg2: memref<1x16x256xf32, #tpu.memory_space<vmem>>, %arg3: memref<1x1x128xf32, #tpu.memory_space<vmem>>, %arg4: memref<3x128x128xf32, #tpu.memory_space<vmem>>, %arg5: memref<1x128xf32, #tpu.memory_space<vmem>>, %arg6: memref<1x16x128xf32, #tpu.memory_space<vmem>>) attributes {dimension_semantics = [#tpu.dimension_semantics<parallel>, #tpu.dimension_semantics<parallel>], iteration_bounds = array<i64: 2, 1>, scalar_prefetch = 0 : i64, scratch_operands = 0 : i64, tpu.core_type = #tpu.core_type<tc>, window_params = [{transform_indices = @transform_0, window_bounds = array<i64: 1, 16, 256>}, {transform_indices = @transform_1, window_bounds = array<i64: 1, 1, 128>}, {pipeline_mode = #tpu.pipeline_mode<synchronous>, transform_indices = @transform_2, window_bounds = array<i64: 3, 128, 128>}, {pipeline_mode = #tpu.pipeline_mode<synchronous>, transform_indices = @transform_3, window_bounds = array<i64: 1, 128>}, {transform_indices = @transform_4, window_bounds = array<i64: 1, 16, 128>}]} {
    %c0 = arith.constant 0 : index
    %c0_0 = arith.constant 0 : index
    %c0_1 = arith.constant 0 : index
    %0 = vector.load %arg2[%c0, %c0_0, %c0_1] : memref<1x16x256xf32, #tpu.memory_space<vmem>>, vector<1x16x128xf32>
    %1 = vector.shape_cast %0 : vector<1x16x128xf32> to vector<16x128xf32>
    %c0_2 = arith.constant 0 : index
    %c0_3 = arith.constant 0 : index
    %c128 = arith.constant 128 : index
    %2 = vector.load %arg2[%c0_2, %c0_3, %c128] : memref<1x16x256xf32, #tpu.memory_space<vmem>>, vector<1x16x128xf32>
    %3 = vector.shape_cast %2 : vector<1x16x128xf32> to vector<16x128xf32>
    %c0_4 = arith.constant 0 : index
    %4 = arith.index_cast %arg1 : i32 to index
    %c0_5 = arith.constant 0 : index
    %5 = vector.load %arg3[%c0_4, %4, %c0_5] : memref<1x1x128xf32, #tpu.memory_space<vmem>>, vector<1x1x128xf32>
    %6 = vector.shape_cast %5 : vector<1x1x128xf32> to vector<1x128xf32>
    %7 = vector.extract_strided_slice %3 {offsets = [0, 0], sizes = [15, 128], strides = [1, 1]} : vector<16x128xf32> to vector<15x128xf32>
    %8 = tpu.concatenate %6, %7 in 0 : vector<1x128xf32>, vector<15x128xf32> -> vector<16x128xf32>
    %c0_6 = arith.constant 0 : index
    %c0_7 = arith.constant 0 : index
    %c0_8 = arith.constant 0 : index
    %9 = vector.load %arg4[%c0_6, %c0_7, %c0_8] : memref<3x128x128xf32, #tpu.memory_space<vmem>>, vector<1x128x128xf32>
    %10 = vector.shape_cast %9 : vector<1x128x128xf32> to vector<128x128xf32>
    %cst = arith.constant dense<0.000000e+00> : vector<16x128xf32>
    %11 = tpu.matmul %8, %10, %cst {dimension_numbers = #tpu.dot_dimension_numbers<[1], [0], [0], [1], [0, 0, 1, 1], [], []>} : vector<16x128xf32>, vector<128x128xf32>, vector<16x128xf32> -> vector<16x128xf32>
    %c1 = arith.constant 1 : index
    %c0_9 = arith.constant 0 : index
    %c0_10 = arith.constant 0 : index
    %12 = vector.load %arg4[%c1, %c0_9, %c0_10] : memref<3x128x128xf32, #tpu.memory_space<vmem>>, vector<1x128x128xf32>
    %13 = vector.shape_cast %12 : vector<1x128x128xf32> to vector<128x128xf32>
    %cst_11 = arith.constant dense<0.000000e+00> : vector<16x128xf32>
    %14 = tpu.matmul %1, %13, %cst_11 {dimension_numbers = #tpu.dot_dimension_numbers<[1], [0], [0], [1], [0, 0, 1, 1], [], []>} : vector<16x128xf32>, vector<128x128xf32>, vector<16x128xf32> -> vector<16x128xf32>
    %15 = arith.addf %11, %14 : vector<16x128xf32>
    %c2 = arith.constant 2 : index
    %c0_12 = arith.constant 0 : index
    %c0_13 = arith.constant 0 : index
    %16 = vector.load %arg4[%c2, %c0_12, %c0_13] : memref<3x128x128xf32, #tpu.memory_space<vmem>>, vector<1x128x128xf32>
    %17 = vector.shape_cast %16 : vector<1x128x128xf32> to vector<128x128xf32>
    %cst_14 = arith.constant dense<0.000000e+00> : vector<16x128xf32>
    %18 = tpu.matmul %3, %17, %cst_14 {dimension_numbers = #tpu.dot_dimension_numbers<[1], [0], [0], [1], [0, 0, 1, 1], [], []>} : vector<16x128xf32>, vector<128x128xf32>, vector<16x128xf32> -> vector<16x128xf32>
    %19 = arith.addf %15, %18 : vector<16x128xf32>
    %c0_15 = arith.constant 0 : index
    %c0_16 = arith.constant 0 : index
    %20 = vector.load %arg5[%c0_15, %c0_16] : memref<1x128xf32, #tpu.memory_space<vmem>>, vector<1x128xf32>
    %21 = vector.broadcast %20 : vector<1x128xf32> to vector<16x128xf32>
    %22 = arith.addf %19, %21 : vector<16x128xf32>
    %cst_17 = arith.constant 0.000000e+00 : f32
    %23 = vector.broadcast %cst_17 : f32 to vector<16x128xf32>
    %24 = arith.cmpf oge, %22, %23 : vector<16x128xf32>
    %cst_18 = arith.constant 0.00999999977 : f32
    %25 = vector.broadcast %cst_18 : f32 to vector<16x128xf32>
    %26 = arith.mulf %25, %22 : vector<16x128xf32>
    %27 = arith.select %24, %22, %26 : vector<16x128xi1>, vector<16x128xf32>
    %c0_19 = arith.constant 0 : index
    %c0_20 = arith.constant 0 : index
    %c0_21 = arith.constant 0 : index
    %28 = vector.load %arg6[%c0_19, %c0_20, %c0_21] : memref<1x16x128xf32, #tpu.memory_space<vmem>>, vector<1x16x128xf32>
    %29 = vector.shape_cast %28 : vector<1x16x128xf32> to vector<16x128xf32>
    %30 = vector.shape_cast %27 : vector<16x128xf32> to vector<1x16x128xf32>
    tpu.vector_store %arg6[%c0_19, %c0_20, %c0_21], %30 {strides = array<i32>} : memref<1x16x128xf32, #tpu.memory_space<vmem>>, vector<1x16x128xf32>,
    return
  }
  func.func @transform_0(%arg0: i32, %arg1: i32) -> (i32, i32, i32) {
    %c0_i32 = arith.constant 0 : i32
    %c0_i32_0 = arith.constant 0 : i32
    return %arg0, %arg1, %c0_i32 : i32, i32, i32
  }
  func.func @transform_1(%arg0: i32, %arg1: i32) -> (i32, i32, i32) {
    %c0_i32 = arith.constant 0 : i32
    %c0_i32_0 = arith.constant 0 : i32
    %c0_i32_1 = arith.constant 0 : i32
    return %arg0, %c0_i32, %c0_i32_0 : i32, i32, i32
  }
  func.func @transform_2(%arg0: i32, %arg1: i32) -> (i32, i32, i32) {
    %c0_i32 = arith.constant 0 : i32
    %c0_i32_0 = arith.constant 0 : i32
    %c0_i32_1 = arith.constant 0 : i32
    %c0_i32_2 = arith.constant 0 : i32
    return %c0_i32, %c0_i32_0, %c0_i32_1 : i32, i32, i32
  }
  func.func @transform_3(%arg0: i32, %arg1: i32) -> (i32, i32) {
    %c0_i32 = arith.constant 0 : i32
    %c0_i32_0 = arith.constant 0 : i32
    %c0_i32_1 = arith.constant 0 : i32
    return %c0_i32, %c0_i32_0 : i32, i32
  }
  func.func @transform_4(%arg0: i32, %arg1: i32) -> (i32, i32, i32) {
    %c0_i32 = arith.constant 0 : i32
    %c0_i32_0 = arith.constant 0 : i32
    return %arg0, %arg1, %c0_i32 : i32, i32, i32
  }
}

module attributes {stable_mosaic.version = 11 : i64} {
  func.func @_enc_kernel(%arg0: i32, %arg1: i32, %arg2: memref<1x8x256xf32, #tpu.memory_space<vmem>>, %arg3: memref<1x1x128xf32, #tpu.memory_space<vmem>>, %arg4: memref<3x128x128xf32, #tpu.memory_space<vmem>>, %arg5: memref<1x128xf32, #tpu.memory_space<vmem>>, %arg6: memref<1x8x128xf32, #tpu.memory_space<vmem>>) attributes {dimension_semantics = [#tpu.dimension_semantics<parallel>, #tpu.dimension_semantics<parallel>], iteration_bounds = array<i64: 2, 1>, scalar_prefetch = 0 : i64, scratch_operands = 0 : i64, tpu.core_type = #tpu.core_type<tc>, window_params = [{transform_indices = @transform_0, window_bounds = array<i64: 1, 8, 256>}, {transform_indices = @transform_1, window_bounds = array<i64: 1, 1, 128>}, {pipeline_mode = #tpu.pipeline_mode<synchronous>, transform_indices = @transform_2, window_bounds = array<i64: 3, 128, 128>}, {pipeline_mode = #tpu.pipeline_mode<synchronous>, transform_indices = @transform_3, window_bounds = array<i64: 1, 128>}, {transform_indices = @transform_4, window_bounds = array<i64: 1, 8, 128>}]} {
    %c0 = arith.constant 0 : index
    %c0_0 = arith.constant 0 : index
    %c0_1 = arith.constant 0 : index
    %0 = vector.load %arg2[%c0, %c0_0, %c0_1] : memref<1x8x256xf32, #tpu.memory_space<vmem>>, vector<1x8x128xf32>
    %1 = vector.shape_cast %0 : vector<1x8x128xf32> to vector<8x128xf32>
    %c0_2 = arith.constant 0 : index
    %c0_3 = arith.constant 0 : index
    %c128 = arith.constant 128 : index
    %2 = vector.load %arg2[%c0_2, %c0_3, %c128] : memref<1x8x256xf32, #tpu.memory_space<vmem>>, vector<1x8x128xf32>
    %3 = vector.shape_cast %2 : vector<1x8x128xf32> to vector<8x128xf32>
    %c0_4 = arith.constant 0 : index
    %4 = arith.index_cast %arg1 : i32 to index
    %c0_5 = arith.constant 0 : index
    %5 = vector.load %arg3[%c0_4, %4, %c0_5] : memref<1x1x128xf32, #tpu.memory_space<vmem>>, vector<1x1x128xf32>
    %6 = vector.shape_cast %5 : vector<1x1x128xf32> to vector<1x128xf32>
    %7 = vector.extract_strided_slice %3 {offsets = [0, 0], sizes = [7, 128], strides = [1, 1]} : vector<8x128xf32> to vector<7x128xf32>
    %8 = tpu.concatenate %6, %7 in 0 : vector<1x128xf32>, vector<7x128xf32> -> vector<8x128xf32>
    %c0_6 = arith.constant 0 : index
    %c0_7 = arith.constant 0 : index
    %c0_8 = arith.constant 0 : index
    %9 = vector.load %arg4[%c0_6, %c0_7, %c0_8] : memref<3x128x128xf32, #tpu.memory_space<vmem>>, vector<1x128x128xf32>
    %10 = vector.shape_cast %9 : vector<1x128x128xf32> to vector<128x128xf32>
    %cst = arith.constant dense<0.000000e+00> : vector<8x128xf32>
    %11 = tpu.matmul %8, %10, %cst {dimension_numbers = #tpu.dot_dimension_numbers<[1], [0], [0], [1], [0, 0, 1, 1], [], []>} : vector<8x128xf32>, vector<128x128xf32>, vector<8x128xf32> -> vector<8x128xf32>
    %c1 = arith.constant 1 : index
    %c0_9 = arith.constant 0 : index
    %c0_10 = arith.constant 0 : index
    %12 = vector.load %arg4[%c1, %c0_9, %c0_10] : memref<3x128x128xf32, #tpu.memory_space<vmem>>, vector<1x128x128xf32>
    %13 = vector.shape_cast %12 : vector<1x128x128xf32> to vector<128x128xf32>
    %cst_11 = arith.constant dense<0.000000e+00> : vector<8x128xf32>
    %14 = tpu.matmul %1, %13, %cst_11 {dimension_numbers = #tpu.dot_dimension_numbers<[1], [0], [0], [1], [0, 0, 1, 1], [], []>} : vector<8x128xf32>, vector<128x128xf32>, vector<8x128xf32> -> vector<8x128xf32>
    %15 = arith.addf %11, %14 : vector<8x128xf32>
    %c2 = arith.constant 2 : index
    %c0_12 = arith.constant 0 : index
    %c0_13 = arith.constant 0 : index
    %16 = vector.load %arg4[%c2, %c0_12, %c0_13] : memref<3x128x128xf32, #tpu.memory_space<vmem>>, vector<1x128x128xf32>
    %17 = vector.shape_cast %16 : vector<1x128x128xf32> to vector<128x128xf32>
    %cst_14 = arith.constant dense<0.000000e+00> : vector<8x128xf32>
    %18 = tpu.matmul %3, %17, %cst_14 {dimension_numbers = #tpu.dot_dimension_numbers<[1], [0], [0], [1], [0, 0, 1, 1], [], []>} : vector<8x128xf32>, vector<128x128xf32>, vector<8x128xf32> -> vector<8x128xf32>
    %19 = arith.addf %15, %18 : vector<8x128xf32>
    %c0_15 = arith.constant 0 : index
    %c0_16 = arith.constant 0 : index
    %20 = vector.load %arg5[%c0_15, %c0_16] : memref<1x128xf32, #tpu.memory_space<vmem>>, vector<1x128xf32>
    %21 = vector.broadcast %20 : vector<1x128xf32> to vector<8x128xf32>
    %22 = arith.addf %19, %21 : vector<8x128xf32>
    %cst_17 = arith.constant 0.000000e+00 : f32
    %23 = vector.broadcast %cst_17 : f32 to vector<8x128xf32>
    %24 = arith.cmpf oge, %22, %23 : vector<8x128xf32>
    %cst_18 = arith.constant 0.00999999977 : f32
    %25 = vector.broadcast %cst_18 : f32 to vector<8x128xf32>
    %26 = arith.mulf %25, %22 : vector<8x128xf32>
    %27 = arith.select %24, %22, %26 : vector<8x128xi1>, vector<8x128xf32>
    %c0_19 = arith.constant 0 : index
    %c0_20 = arith.constant 0 : index
    %c0_21 = arith.constant 0 : index
    %28 = vector.load %arg6[%c0_19, %c0_20, %c0_21] : memref<1x8x128xf32, #tpu.memory_space<vmem>>, vector<1x8x128xf32>
    %29 = vector.shape_cast %28 : vector<1x8x128xf32> to vector<8x128xf32>
    %30 = vector.shape_cast %27 : vector<8x128xf32> to vector<1x8x128xf32>
    tpu.vector_store %arg6[%c0_19, %c0_20, %c0_21], %30 {strides = array<i32>} : memref<1x8x128xf32, #tpu.memory_space<vmem>>, vector<1x8x128xf32>,
    return
  }
  func.func @transform_0(%arg0: i32, %arg1: i32) -> (i32, i32, i32) {
    %c0_i32 = arith.constant 0 : i32
    %c0_i32_0 = arith.constant 0 : i32
    return %arg0, %arg1, %c0_i32 : i32, i32, i32
  }
  func.func @transform_1(%arg0: i32, %arg1: i32) -> (i32, i32, i32) {
    %c0_i32 = arith.constant 0 : i32
    %c0_i32_0 = arith.constant 0 : i32
    %c0_i32_1 = arith.constant 0 : i32
    return %arg0, %c0_i32, %c0_i32_0 : i32, i32, i32
  }
  func.func @transform_2(%arg0: i32, %arg1: i32) -> (i32, i32, i32) {
    %c0_i32 = arith.constant 0 : i32
    %c0_i32_0 = arith.constant 0 : i32
    %c0_i32_1 = arith.constant 0 : i32
    %c0_i32_2 = arith.constant 0 : i32
    return %c0_i32, %c0_i32_0, %c0_i32_1 : i32, i32, i32
  }
  func.func @transform_3(%arg0: i32, %arg1: i32) -> (i32, i32) {
    %c0_i32 = arith.constant 0 : i32
    %c0_i32_0 = arith.constant 0 : i32
    %c0_i32_1 = arith.constant 0 : i32
    return %c0_i32, %c0_i32_0 : i32, i32
  }
  func.func @transform_4(%arg0: i32, %arg1: i32) -> (i32, i32, i32) {
    %c0_i32 = arith.constant 0 : i32
    %c0_i32_0 = arith.constant 0 : i32
    return %arg0, %arg1, %c0_i32 : i32, i32, i32
  }
}

module attributes {stable_mosaic.version = 11 : i64} {
  func.func @_enc0_kernel(%arg0: i32, %arg1: i32, %arg2: memref<1x32x2xf32, #tpu.memory_space<vmem>>, %arg3: memref<1x1x1xf32, #tpu.memory_space<vmem>>, %arg4: memref<3x128xf32, #tpu.memory_space<vmem>>, %arg5: memref<1x128xf32, #tpu.memory_space<vmem>>, %arg6: memref<1x32x128xf32, #tpu.memory_space<vmem>>) attributes {dimension_semantics = [#tpu.dimension_semantics<parallel>, #tpu.dimension_semantics<parallel>], iteration_bounds = array<i64: 2, 1>, scalar_prefetch = 0 : i64, scratch_operands = 0 : i64, tpu.core_type = #tpu.core_type<tc>, window_params = [{transform_indices = @transform_0, window_bounds = array<i64: 1, 32, 2>}, {transform_indices = @transform_1, window_bounds = array<i64: 1, 1, 1>}, {pipeline_mode = #tpu.pipeline_mode<synchronous>, transform_indices = @transform_2, window_bounds = array<i64: 3, 128>}, {pipeline_mode = #tpu.pipeline_mode<synchronous>, transform_indices = @transform_3, window_bounds = array<i64: 1, 128>}, {transform_indices = @transform_4, window_bounds = array<i64: 1, 32, 128>}]} {
    %c0 = arith.constant 0 : index
    %c0_0 = arith.constant 0 : index
    %c0_1 = arith.constant 0 : index
    %0 = vector.load %arg2[%c0, %c0_0, %c0_1] : memref<1x32x2xf32, #tpu.memory_space<vmem>>, vector<1x32x1xf32>
    %1 = vector.shape_cast %0 : vector<1x32x1xf32> to vector<32x1xf32>
    %c0_2 = arith.constant 0 : index
    %c0_3 = arith.constant 0 : index
    %c1 = arith.constant 1 : index
    %2 = vector.load %arg2[%c0_2, %c0_3, %c1] : memref<1x32x2xf32, #tpu.memory_space<vmem>>, vector<1x32x1xf32>
    %3 = vector.shape_cast %2 : vector<1x32x1xf32> to vector<32x1xf32>
    %c0_4 = arith.constant 0 : index
    %4 = arith.index_cast %arg1 : i32 to index
    %c0_5 = arith.constant 0 : index
    %5 = vector.load %arg3[%c0_4, %4, %c0_5] : memref<1x1x1xf32, #tpu.memory_space<vmem>>, vector<1x1x1xf32>
    %6 = vector.shape_cast %5 : vector<1x1x1xf32> to vector<1x1xf32>
    %7 = vector.extract_strided_slice %3 {offsets = [0, 0], sizes = [31, 1], strides = [1, 1]} : vector<32x1xf32> to vector<31x1xf32>
    %8 = tpu.concatenate %6, %7 in 0 : vector<1x1xf32>, vector<31x1xf32> -> vector<32x1xf32>
    %c0_6 = arith.constant 0 : index
    %c0_7 = arith.constant 0 : index
    %9 = vector.load %arg4[%c0_6, %c0_7] : memref<3x128xf32, #tpu.memory_space<vmem>>, vector<1x128xf32>
    %10 = vector.broadcast %8 : vector<32x1xf32> to vector<32x128xf32>
    %11 = vector.broadcast %9 : vector<1x128xf32> to vector<32x128xf32>
    %12 = arith.mulf %10, %11 : vector<32x128xf32>
    %c1_8 = arith.constant 1 : index
    %c0_9 = arith.constant 0 : index
    %13 = vector.load %arg4[%c1_8, %c0_9] : memref<3x128xf32, #tpu.memory_space<vmem>>, vector<1x128xf32>
    %14 = vector.broadcast %1 : vector<32x1xf32> to vector<32x128xf32>
    %15 = vector.broadcast %13 : vector<1x128xf32> to vector<32x128xf32>
    %16 = arith.mulf %14, %15 : vector<32x128xf32>
    %17 = arith.addf %12, %16 : vector<32x128xf32>
    %c2 = arith.constant 2 : index
    %c0_10 = arith.constant 0 : index
    %18 = vector.load %arg4[%c2, %c0_10] : memref<3x128xf32, #tpu.memory_space<vmem>>, vector<1x128xf32>
    %19 = vector.broadcast %3 : vector<32x1xf32> to vector<32x128xf32>
    %20 = vector.broadcast %18 : vector<1x128xf32> to vector<32x128xf32>
    %21 = arith.mulf %19, %20 : vector<32x128xf32>
    %22 = arith.addf %17, %21 : vector<32x128xf32>
    %c0_11 = arith.constant 0 : index
    %c0_12 = arith.constant 0 : index
    %23 = vector.load %arg5[%c0_11, %c0_12] : memref<1x128xf32, #tpu.memory_space<vmem>>, vector<1x128xf32>
    %24 = vector.broadcast %23 : vector<1x128xf32> to vector<32x128xf32>
    %25 = arith.addf %22, %24 : vector<32x128xf32>
    %cst = arith.constant 0.000000e+00 : f32
    %26 = vector.broadcast %cst : f32 to vector<32x128xf32>
    %27 = arith.cmpf oge, %25, %26 : vector<32x128xf32>
    %cst_13 = arith.constant 0.00999999977 : f32
    %28 = vector.broadcast %cst_13 : f32 to vector<32x128xf32>
    %29 = arith.mulf %28, %25 : vector<32x128xf32>
    %30 = arith.select %27, %25, %29 : vector<32x128xi1>, vector<32x128xf32>
    %c0_14 = arith.constant 0 : index
    %c0_15 = arith.constant 0 : index
    %c0_16 = arith.constant 0 : index
    %31 = vector.load %arg6[%c0_14, %c0_15, %c0_16] : memref<1x32x128xf32, #tpu.memory_space<vmem>>, vector<1x32x128xf32>
    %32 = vector.shape_cast %31 : vector<1x32x128xf32> to vector<32x128xf32>
    %33 = vector.shape_cast %30 : vector<32x128xf32> to vector<1x32x128xf32>
    tpu.vector_store %arg6[%c0_14, %c0_15, %c0_16], %33 {strides = array<i32>} : memref<1x32x128xf32, #tpu.memory_space<vmem>>, vector<1x32x128xf32>,
    return
  }
  func.func @transform_0(%arg0: i32, %arg1: i32) -> (i32, i32, i32) {
    %c0_i32 = arith.constant 0 : i32
    %c0_i32_0 = arith.constant 0 : i32
    return %arg0, %arg1, %c0_i32 : i32, i32, i32
  }
  func.func @transform_1(%arg0: i32, %arg1: i32) -> (i32, i32, i32) {
    %c0_i32 = arith.constant 0 : i32
    %c0_i32_0 = arith.constant 0 : i32
    %c0_i32_1 = arith.constant 0 : i32
    return %arg0, %c0_i32, %c0_i32_0 : i32, i32, i32
  }
  func.func @transform_2(%arg0: i32, %arg1: i32) -> (i32, i32) {
    %c0_i32 = arith.constant 0 : i32
    %c0_i32_0 = arith.constant 0 : i32
    %c0_i32_1 = arith.constant 0 : i32
    return %c0_i32, %c0_i32_0 : i32, i32
  }
  func.func @transform_3(%arg0: i32, %arg1: i32) -> (i32, i32) {
    %c0_i32 = arith.constant 0 : i32
    %c0_i32_0 = arith.constant 0 : i32
    %c0_i32_1 = arith.constant 0 : i32
    return %c0_i32, %c0_i32_0 : i32, i32
  }
  func.func @transform_4(%arg0: i32, %arg1: i32) -> (i32, i32, i32) {
    %c0_i32 = arith.constant 0 : i32
    %c0_i32_0 = arith.constant 0 : i32
    return %arg0, %arg1, %c0_i32 : i32, i32, i32
  }
}

module attributes {stable_mosaic.version = 11 : i64} {
  func.func @_enc_kernel(%arg0: i32, %arg1: i32, %arg2: memref<1x4x256xf32, #tpu.memory_space<vmem>>, %arg3: memref<1x1x128xf32, #tpu.memory_space<vmem>>, %arg4: memref<3x128x128xf32, #tpu.memory_space<vmem>>, %arg5: memref<1x128xf32, #tpu.memory_space<vmem>>, %arg6: memref<1x4x128xf32, #tpu.memory_space<vmem>>) attributes {dimension_semantics = [#tpu.dimension_semantics<parallel>, #tpu.dimension_semantics<parallel>], iteration_bounds = array<i64: 2, 1>, scalar_prefetch = 0 : i64, scratch_operands = 0 : i64, tpu.core_type = #tpu.core_type<tc>, window_params = [{transform_indices = @transform_0, window_bounds = array<i64: 1, 4, 256>}, {transform_indices = @transform_1, window_bounds = array<i64: 1, 1, 128>}, {pipeline_mode = #tpu.pipeline_mode<synchronous>, transform_indices = @transform_2, window_bounds = array<i64: 3, 128, 128>}, {pipeline_mode = #tpu.pipeline_mode<synchronous>, transform_indices = @transform_3, window_bounds = array<i64: 1, 128>}, {transform_indices = @transform_4, window_bounds = array<i64: 1, 4, 128>}]} {
    %c0 = arith.constant 0 : index
    %c0_0 = arith.constant 0 : index
    %c0_1 = arith.constant 0 : index
    %0 = vector.load %arg2[%c0, %c0_0, %c0_1] : memref<1x4x256xf32, #tpu.memory_space<vmem>>, vector<1x4x128xf32>
    %1 = vector.shape_cast %0 : vector<1x4x128xf32> to vector<4x128xf32>
    %c0_2 = arith.constant 0 : index
    %c0_3 = arith.constant 0 : index
    %c128 = arith.constant 128 : index
    %2 = vector.load %arg2[%c0_2, %c0_3, %c128] : memref<1x4x256xf32, #tpu.memory_space<vmem>>, vector<1x4x128xf32>
    %3 = vector.shape_cast %2 : vector<1x4x128xf32> to vector<4x128xf32>
    %c0_4 = arith.constant 0 : index
    %4 = arith.index_cast %arg1 : i32 to index
    %c0_5 = arith.constant 0 : index
    %5 = vector.load %arg3[%c0_4, %4, %c0_5] : memref<1x1x128xf32, #tpu.memory_space<vmem>>, vector<1x1x128xf32>
    %6 = vector.shape_cast %5 : vector<1x1x128xf32> to vector<1x128xf32>
    %7 = vector.extract_strided_slice %3 {offsets = [0, 0], sizes = [3, 128], strides = [1, 1]} : vector<4x128xf32> to vector<3x128xf32>
    %8 = tpu.concatenate %6, %7 in 0 : vector<1x128xf32>, vector<3x128xf32> -> vector<4x128xf32>
    %c0_6 = arith.constant 0 : index
    %c0_7 = arith.constant 0 : index
    %c0_8 = arith.constant 0 : index
    %9 = vector.load %arg4[%c0_6, %c0_7, %c0_8] : memref<3x128x128xf32, #tpu.memory_space<vmem>>, vector<1x128x128xf32>
    %10 = vector.shape_cast %9 : vector<1x128x128xf32> to vector<128x128xf32>
    %cst = arith.constant dense<0.000000e+00> : vector<4x128xf32>
    %11 = tpu.matmul %8, %10, %cst {dimension_numbers = #tpu.dot_dimension_numbers<[1], [0], [0], [1], [0, 0, 1, 1], [], []>} : vector<4x128xf32>, vector<128x128xf32>, vector<4x128xf32> -> vector<4x128xf32>
    %c1 = arith.constant 1 : index
    %c0_9 = arith.constant 0 : index
    %c0_10 = arith.constant 0 : index
    %12 = vector.load %arg4[%c1, %c0_9, %c0_10] : memref<3x128x128xf32, #tpu.memory_space<vmem>>, vector<1x128x128xf32>
    %13 = vector.shape_cast %12 : vector<1x128x128xf32> to vector<128x128xf32>
    %cst_11 = arith.constant dense<0.000000e+00> : vector<4x128xf32>
    %14 = tpu.matmul %1, %13, %cst_11 {dimension_numbers = #tpu.dot_dimension_numbers<[1], [0], [0], [1], [0, 0, 1, 1], [], []>} : vector<4x128xf32>, vector<128x128xf32>, vector<4x128xf32> -> vector<4x128xf32>
    %15 = arith.addf %11, %14 : vector<4x128xf32>
    %c2 = arith.constant 2 : index
    %c0_12 = arith.constant 0 : index
    %c0_13 = arith.constant 0 : index
    %16 = vector.load %arg4[%c2, %c0_12, %c0_13] : memref<3x128x128xf32, #tpu.memory_space<vmem>>, vector<1x128x128xf32>
    %17 = vector.shape_cast %16 : vector<1x128x128xf32> to vector<128x128xf32>
    %cst_14 = arith.constant dense<0.000000e+00> : vector<4x128xf32>
    %18 = tpu.matmul %3, %17, %cst_14 {dimension_numbers = #tpu.dot_dimension_numbers<[1], [0], [0], [1], [0, 0, 1, 1], [], []>} : vector<4x128xf32>, vector<128x128xf32>, vector<4x128xf32> -> vector<4x128xf32>
    %19 = arith.addf %15, %18 : vector<4x128xf32>
    %c0_15 = arith.constant 0 : index
    %c0_16 = arith.constant 0 : index
    %20 = vector.load %arg5[%c0_15, %c0_16] : memref<1x128xf32, #tpu.memory_space<vmem>>, vector<1x128xf32>
    %21 = vector.broadcast %20 : vector<1x128xf32> to vector<4x128xf32>
    %22 = arith.addf %19, %21 : vector<4x128xf32>
    %cst_17 = arith.constant 0.000000e+00 : f32
    %23 = vector.broadcast %cst_17 : f32 to vector<4x128xf32>
    %24 = arith.cmpf oge, %22, %23 : vector<4x128xf32>
    %cst_18 = arith.constant 0.00999999977 : f32
    %25 = vector.broadcast %cst_18 : f32 to vector<4x128xf32>
    %26 = arith.mulf %25, %22 : vector<4x128xf32>
    %27 = arith.select %24, %22, %26 : vector<4x128xi1>, vector<4x128xf32>
    %c0_19 = arith.constant 0 : index
    %c0_20 = arith.constant 0 : index
    %c0_21 = arith.constant 0 : index
    %28 = vector.load %arg6[%c0_19, %c0_20, %c0_21] : memref<1x4x128xf32, #tpu.memory_space<vmem>>, vector<1x4x128xf32>
    %29 = vector.shape_cast %28 : vector<1x4x128xf32> to vector<4x128xf32>
    %30 = vector.shape_cast %27 : vector<4x128xf32> to vector<1x4x128xf32>
    tpu.vector_store %arg6[%c0_19, %c0_20, %c0_21], %30 {strides = array<i32>} : memref<1x4x128xf32, #tpu.memory_space<vmem>>, vector<1x4x128xf32>,
    return
  }
  func.func @transform_0(%arg0: i32, %arg1: i32) -> (i32, i32, i32) {
    %c0_i32 = arith.constant 0 : i32
    %c0_i32_0 = arith.constant 0 : i32
    return %arg0, %arg1, %c0_i32 : i32, i32, i32
  }
  func.func @transform_1(%arg0: i32, %arg1: i32) -> (i32, i32, i32) {
    %c0_i32 = arith.constant 0 : i32
    %c0_i32_0 = arith.constant 0 : i32
    %c0_i32_1 = arith.constant 0 : i32
    return %arg0, %c0_i32, %c0_i32_0 : i32, i32, i32
  }
  func.func @transform_2(%arg0: i32, %arg1: i32) -> (i32, i32, i32) {
    %c0_i32 = arith.constant 0 : i32
    %c0_i32_0 = arith.constant 0 : i32
    %c0_i32_1 = arith.constant 0 : i32
    %c0_i32_2 = arith.constant 0 : i32
    return %c0_i32, %c0_i32_0, %c0_i32_1 : i32, i32, i32
  }
  func.func @transform_3(%arg0: i32, %arg1: i32) -> (i32, i32) {
    %c0_i32 = arith.constant 0 : i32
    %c0_i32_0 = arith.constant 0 : i32
    %c0_i32_1 = arith.constant 0 : i32
    return %c0_i32, %c0_i32_0 : i32, i32
  }
  func.func @transform_4(%arg0: i32, %arg1: i32) -> (i32, i32, i32) {
    %c0_i32 = arith.constant 0 : i32
    %c0_i32_0 = arith.constant 0 : i32
    return %arg0, %arg1, %c0_i32 : i32, i32, i32
  }
}

module attributes {stable_mosaic.version = 11 : i64} {
  func.func @_enc_kernel(%arg0: i32, %arg1: i32, %arg2: memref<1x2x256xf32, #tpu.memory_space<vmem>>, %arg3: memref<1x1x128xf32, #tpu.memory_space<vmem>>, %arg4: memref<3x128x128xf32, #tpu.memory_space<vmem>>, %arg5: memref<1x128xf32, #tpu.memory_space<vmem>>, %arg6: memref<1x2x128xf32, #tpu.memory_space<vmem>>) attributes {dimension_semantics = [#tpu.dimension_semantics<parallel>, #tpu.dimension_semantics<parallel>], iteration_bounds = array<i64: 2, 1>, scalar_prefetch = 0 : i64, scratch_operands = 0 : i64, tpu.core_type = #tpu.core_type<tc>, window_params = [{transform_indices = @transform_0, window_bounds = array<i64: 1, 2, 256>}, {transform_indices = @transform_1, window_bounds = array<i64: 1, 1, 128>}, {pipeline_mode = #tpu.pipeline_mode<synchronous>, transform_indices = @transform_2, window_bounds = array<i64: 3, 128, 128>}, {pipeline_mode = #tpu.pipeline_mode<synchronous>, transform_indices = @transform_3, window_bounds = array<i64: 1, 128>}, {transform_indices = @transform_4, window_bounds = array<i64: 1, 2, 128>}]} {
    %c0 = arith.constant 0 : index
    %c0_0 = arith.constant 0 : index
    %c0_1 = arith.constant 0 : index
    %0 = vector.load %arg2[%c0, %c0_0, %c0_1] : memref<1x2x256xf32, #tpu.memory_space<vmem>>, vector<1x2x128xf32>
    %1 = vector.shape_cast %0 : vector<1x2x128xf32> to vector<2x128xf32>
    %c0_2 = arith.constant 0 : index
    %c0_3 = arith.constant 0 : index
    %c128 = arith.constant 128 : index
    %2 = vector.load %arg2[%c0_2, %c0_3, %c128] : memref<1x2x256xf32, #tpu.memory_space<vmem>>, vector<1x2x128xf32>
    %3 = vector.shape_cast %2 : vector<1x2x128xf32> to vector<2x128xf32>
    %c0_4 = arith.constant 0 : index
    %4 = arith.index_cast %arg1 : i32 to index
    %c0_5 = arith.constant 0 : index
    %5 = vector.load %arg3[%c0_4, %4, %c0_5] : memref<1x1x128xf32, #tpu.memory_space<vmem>>, vector<1x1x128xf32>
    %6 = vector.shape_cast %5 : vector<1x1x128xf32> to vector<1x128xf32>
    %7 = vector.extract_strided_slice %3 {offsets = [0, 0], sizes = [1, 128], strides = [1, 1]} : vector<2x128xf32> to vector<1x128xf32>
    %8 = tpu.concatenate %6, %7 in 0 : vector<1x128xf32>, vector<1x128xf32> -> vector<2x128xf32>
    %c0_6 = arith.constant 0 : index
    %c0_7 = arith.constant 0 : index
    %c0_8 = arith.constant 0 : index
    %9 = vector.load %arg4[%c0_6, %c0_7, %c0_8] : memref<3x128x128xf32, #tpu.memory_space<vmem>>, vector<1x128x128xf32>
    %10 = vector.shape_cast %9 : vector<1x128x128xf32> to vector<128x128xf32>
    %cst = arith.constant dense<0.000000e+00> : vector<2x128xf32>
    %11 = tpu.matmul %8, %10, %cst {dimension_numbers = #tpu.dot_dimension_numbers<[1], [0], [0], [1], [0, 0, 1, 1], [], []>} : vector<2x128xf32>, vector<128x128xf32>, vector<2x128xf32> -> vector<2x128xf32>
    %c1 = arith.constant 1 : index
    %c0_9 = arith.constant 0 : index
    %c0_10 = arith.constant 0 : index
    %12 = vector.load %arg4[%c1, %c0_9, %c0_10] : memref<3x128x128xf32, #tpu.memory_space<vmem>>, vector<1x128x128xf32>
    %13 = vector.shape_cast %12 : vector<1x128x128xf32> to vector<128x128xf32>
    %cst_11 = arith.constant dense<0.000000e+00> : vector<2x128xf32>
    %14 = tpu.matmul %1, %13, %cst_11 {dimension_numbers = #tpu.dot_dimension_numbers<[1], [0], [0], [1], [0, 0, 1, 1], [], []>} : vector<2x128xf32>, vector<128x128xf32>, vector<2x128xf32> -> vector<2x128xf32>
    %15 = arith.addf %11, %14 : vector<2x128xf32>
    %c2 = arith.constant 2 : index
    %c0_12 = arith.constant 0 : index
    %c0_13 = arith.constant 0 : index
    %16 = vector.load %arg4[%c2, %c0_12, %c0_13] : memref<3x128x128xf32, #tpu.memory_space<vmem>>, vector<1x128x128xf32>
    %17 = vector.shape_cast %16 : vector<1x128x128xf32> to vector<128x128xf32>
    %cst_14 = arith.constant dense<0.000000e+00> : vector<2x128xf32>
    %18 = tpu.matmul %3, %17, %cst_14 {dimension_numbers = #tpu.dot_dimension_numbers<[1], [0], [0], [1], [0, 0, 1, 1], [], []>} : vector<2x128xf32>, vector<128x128xf32>, vector<2x128xf32> -> vector<2x128xf32>
    %19 = arith.addf %15, %18 : vector<2x128xf32>
    %c0_15 = arith.constant 0 : index
    %c0_16 = arith.constant 0 : index
    %20 = vector.load %arg5[%c0_15, %c0_16] : memref<1x128xf32, #tpu.memory_space<vmem>>, vector<1x128xf32>
    %21 = vector.broadcast %20 : vector<1x128xf32> to vector<2x128xf32>
    %22 = arith.addf %19, %21 : vector<2x128xf32>
    %c0_17 = arith.constant 0 : index
    %c0_18 = arith.constant 0 : index
    %c0_19 = arith.constant 0 : index
    %23 = vector.load %arg6[%c0_17, %c0_18, %c0_19] : memref<1x2x128xf32, #tpu.memory_space<vmem>>, vector<1x2x128xf32>
    %24 = vector.shape_cast %23 : vector<1x2x128xf32> to vector<2x128xf32>
    %25 = vector.shape_cast %22 : vector<2x128xf32> to vector<1x2x128xf32>
    tpu.vector_store %arg6[%c0_17, %c0_18, %c0_19], %25 {strides = array<i32>} : memref<1x2x128xf32, #tpu.memory_space<vmem>>, vector<1x2x128xf32>,
    return
  }
  func.func @transform_0(%arg0: i32, %arg1: i32) -> (i32, i32, i32) {
    %c0_i32 = arith.constant 0 : i32
    %c0_i32_0 = arith.constant 0 : i32
    return %arg0, %arg1, %c0_i32 : i32, i32, i32
  }
  func.func @transform_1(%arg0: i32, %arg1: i32) -> (i32, i32, i32) {
    %c0_i32 = arith.constant 0 : i32
    %c0_i32_0 = arith.constant 0 : i32
    %c0_i32_1 = arith.constant 0 : i32
    return %arg0, %c0_i32, %c0_i32_0 : i32, i32, i32
  }
  func.func @transform_2(%arg0: i32, %arg1: i32) -> (i32, i32, i32) {
    %c0_i32 = arith.constant 0 : i32
    %c0_i32_0 = arith.constant 0 : i32
    %c0_i32_1 = arith.constant 0 : i32
    %c0_i32_2 = arith.constant 0 : i32
    return %c0_i32, %c0_i32_0, %c0_i32_1 : i32, i32, i32
  }
  func.func @transform_3(%arg0: i32, %arg1: i32) -> (i32, i32) {
    %c0_i32 = arith.constant 0 : i32
    %c0_i32_0 = arith.constant 0 : i32
    %c0_i32_1 = arith.constant 0 : i32
    return %c0_i32, %c0_i32_0 : i32, i32
  }
  func.func @transform_4(%arg0: i32, %arg1: i32) -> (i32, i32, i32) {
    %c0_i32 = arith.constant 0 : i32
    %c0_i32_0 = arith.constant 0 : i32
    return %arg0, %arg1, %c0_i32 : i32, i32, i32
  }
}

module attributes {stable_mosaic.version = 11 : i64} {
  func.func @_dec_kernel(%arg0: i32, %arg1: i32, %arg2: memref<1x4x128xf32, #tpu.memory_space<vmem>>, %arg3: memref<1x1x128xf32, #tpu.memory_space<vmem>>, %arg4: memref<1x1x128xf32, #tpu.memory_space<vmem>>, %arg5: memref<4x128x128xf32, #tpu.memory_space<vmem>>, %arg6: memref<1x128xf32, #tpu.memory_space<vmem>>, %arg7: memref<1x4x256xf32, #tpu.memory_space<vmem>>) attributes {dimension_semantics = [#tpu.dimension_semantics<parallel>, #tpu.dimension_semantics<parallel>], iteration_bounds = array<i64: 2, 1>, scalar_prefetch = 0 : i64, scratch_operands = 0 : i64, tpu.core_type = #tpu.core_type<tc>, window_params = [{transform_indices = @transform_0, window_bounds = array<i64: 1, 4, 128>}, {transform_indices = @transform_1, window_bounds = array<i64: 1, 1, 128>}, {transform_indices = @transform_2, window_bounds = array<i64: 1, 1, 128>}, {pipeline_mode = #tpu.pipeline_mode<synchronous>, transform_indices = @transform_3, window_bounds = array<i64: 4, 128, 128>}, {pipeline_mode = #tpu.pipeline_mode<synchronous>, transform_indices = @transform_4, window_bounds = array<i64: 1, 128>}, {transform_indices = @transform_5, window_bounds = array<i64: 1, 4, 256>}]} {
    %c0 = arith.constant 0 : index
    %c0_0 = arith.constant 0 : index
    %c0_1 = arith.constant 0 : index
    %0 = vector.load %arg2[%c0, %c0_0, %c0_1] : memref<1x4x128xf32, #tpu.memory_space<vmem>>, vector<1x4x128xf32>
    %1 = vector.shape_cast %0 : vector<1x4x128xf32> to vector<4x128xf32>
    %c0_2 = arith.constant 0 : index
    %2 = arith.index_cast %arg1 : i32 to index
    %c0_3 = arith.constant 0 : index
    %3 = vector.load %arg3[%c0_2, %2, %c0_3] : memref<1x1x128xf32, #tpu.memory_space<vmem>>, vector<1x1x128xf32>
    %4 = vector.shape_cast %3 : vector<1x1x128xf32> to vector<1x128xf32>
    %c0_4 = arith.constant 0 : index
    %5 = arith.index_cast %arg1 : i32 to index
    %c0_5 = arith.constant 0 : index
    %6 = vector.load %arg4[%c0_4, %5, %c0_5] : memref<1x1x128xf32, #tpu.memory_space<vmem>>, vector<1x1x128xf32>
    %7 = vector.shape_cast %6 : vector<1x1x128xf32> to vector<1x128xf32>
    %8 = vector.extract_strided_slice %1 {offsets = [0, 0], sizes = [3, 128], strides = [1, 1]} : vector<4x128xf32> to vector<3x128xf32>
    %9 = tpu.concatenate %4, %8 in 0 : vector<1x128xf32>, vector<3x128xf32> -> vector<4x128xf32>
    %10 = vector.extract_strided_slice %1 {offsets = [1, 0], sizes = [3, 128], strides = [1, 1]} : vector<4x128xf32> to vector<3x128xf32>
    %11 = tpu.concatenate %10, %7 in 0 : vector<3x128xf32>, vector<1x128xf32> -> vector<4x128xf32>
    %c1 = arith.constant 1 : index
    %c0_6 = arith.constant 0 : index
    %c0_7 = arith.constant 0 : index
    %12 = vector.load %arg5[%c1, %c0_6, %c0_7] : memref<4x128x128xf32, #tpu.memory_space<vmem>>, vector<1x128x128xf32>
    %13 = vector.shape_cast %12 : vector<1x128x128xf32> to vector<128x128xf32>
    %cst = arith.constant dense<0.000000e+00> : vector<4x128xf32>
    %14 = tpu.matmul %1, %13, %cst {dimension_numbers = #tpu.dot_dimension_numbers<[1], [0], [0], [1], [0, 0, 1, 1], [], []>} : vector<4x128xf32>, vector<128x128xf32>, vector<4x128xf32> -> vector<4x128xf32>
    %c3 = arith.constant 3 : index
    %c0_8 = arith.constant 0 : index
    %c0_9 = arith.constant 0 : index
    %15 = vector.load %arg5[%c3, %c0_8, %c0_9] : memref<4x128x128xf32, #tpu.memory_space<vmem>>, vector<1x128x128xf32>
    %16 = vector.shape_cast %15 : vector<1x128x128xf32> to vector<128x128xf32>
    %cst_10 = arith.constant dense<0.000000e+00> : vector<4x128xf32>
    %17 = tpu.matmul %9, %16, %cst_10 {dimension_numbers = #tpu.dot_dimension_numbers<[1], [0], [0], [1], [0, 0, 1, 1], [], []>} : vector<4x128xf32>, vector<128x128xf32>, vector<4x128xf32> -> vector<4x128xf32>
    %18 = arith.addf %14, %17 : vector<4x128xf32>
    %c0_11 = arith.constant 0 : index
    %c0_12 = arith.constant 0 : index
    %19 = vector.load %arg6[%c0_11, %c0_12] : memref<1x128xf32, #tpu.memory_space<vmem>>, vector<1x128xf32>
    %20 = vector.broadcast %19 : vector<1x128xf32> to vector<4x128xf32>
    %21 = arith.addf %18, %20 : vector<4x128xf32>
    %c0_13 = arith.constant 0 : index
    %c0_14 = arith.constant 0 : index
    %c0_15 = arith.constant 0 : index
    %22 = vector.load %arg5[%c0_13, %c0_14, %c0_15] : memref<4x128x128xf32, #tpu.memory_space<vmem>>, vector<1x128x128xf32>
    %23 = vector.shape_cast %22 : vector<1x128x128xf32> to vector<128x128xf32>
    %cst_16 = arith.constant dense<0.000000e+00> : vector<4x128xf32>
    %24 = tpu.matmul %11, %23, %cst_16 {dimension_numbers = #tpu.dot_dimension_numbers<[1], [0], [0], [1], [0, 0, 1, 1], [], []>} : vector<4x128xf32>, vector<128x128xf32>, vector<4x128xf32> -> vector<4x128xf32>
    %c2 = arith.constant 2 : index
    %c0_17 = arith.constant 0 : index
    %c0_18 = arith.constant 0 : index
    %25 = vector.load %arg5[%c2, %c0_17, %c0_18] : memref<4x128x128xf32, #tpu.memory_space<vmem>>, vector<1x128x128xf32>
    %26 = vector.shape_cast %25 : vector<1x128x128xf32> to vector<128x128xf32>
    %cst_19 = arith.constant dense<0.000000e+00> : vector<4x128xf32>
    %27 = tpu.matmul %1, %26, %cst_19 {dimension_numbers = #tpu.dot_dimension_numbers<[1], [0], [0], [1], [0, 0, 1, 1], [], []>} : vector<4x128xf32>, vector<128x128xf32>, vector<4x128xf32> -> vector<4x128xf32>
    %28 = arith.addf %24, %27 : vector<4x128xf32>
    %c0_20 = arith.constant 0 : index
    %c0_21 = arith.constant 0 : index
    %29 = vector.load %arg6[%c0_20, %c0_21] : memref<1x128xf32, #tpu.memory_space<vmem>>, vector<1x128xf32>
    %30 = vector.broadcast %29 : vector<1x128xf32> to vector<4x128xf32>
    %31 = arith.addf %28, %30 : vector<4x128xf32>
    %cst_22 = arith.constant 0.000000e+00 : f32
    %32 = vector.broadcast %cst_22 : f32 to vector<4x128xf32>
    %33 = arith.cmpf oge, %21, %32 : vector<4x128xf32>
    %cst_23 = arith.constant 0.00999999977 : f32
    %34 = vector.broadcast %cst_23 : f32 to vector<4x128xf32>
    %35 = arith.mulf %34, %21 : vector<4x128xf32>
    %36 = arith.select %33, %21, %35 : vector<4x128xi1>, vector<4x128xf32>
    %cst_24 = arith.constant 0.000000e+00 : f32
    %37 = vector.broadcast %cst_24 : f32 to vector<4x128xf32>
    %38 = arith.cmpf oge, %31, %37 : vector<4x128xf32>
    %cst_25 = arith.constant 0.00999999977 : f32
    %39 = vector.broadcast %cst_25 : f32 to vector<4x128xf32>
    %40 = arith.mulf %39, %31 : vector<4x128xf32>
    %41 = arith.select %38, %31, %40 : vector<4x128xi1>, vector<4x128xf32>
    %c0_26 = arith.constant 0 : index
    %c0_27 = arith.constant 0 : index
    %c0_28 = arith.constant 0 : index
    %42 = vector.load %arg7[%c0_26, %c0_27, %c0_28] : memref<1x4x256xf32, #tpu.memory_space<vmem>>, vector<1x4x128xf32>
    %43 = vector.shape_cast %42 : vector<1x4x128xf32> to vector<4x128xf32>
    %44 = vector.shape_cast %36 : vector<4x128xf32> to vector<1x4x128xf32>
    tpu.vector_store %arg7[%c0_26, %c0_27, %c0_28], %44 {strides = array<i32>} : memref<1x4x256xf32, #tpu.memory_space<vmem>>, vector<1x4x128xf32>,
    %c0_29 = arith.constant 0 : index
    %c0_30 = arith.constant 0 : index
    %c128 = arith.constant 128 : index
    %45 = vector.load %arg7[%c0_29, %c0_30, %c128] : memref<1x4x256xf32, #tpu.memory_space<vmem>>, vector<1x4x128xf32>
    %46 = vector.shape_cast %45 : vector<1x4x128xf32> to vector<4x128xf32>
    %47 = vector.shape_cast %41 : vector<4x128xf32> to vector<1x4x128xf32>
    tpu.vector_store %arg7[%c0_29, %c0_30, %c128], %47 {strides = array<i32>} : memref<1x4x256xf32, #tpu.memory_space<vmem>>, vector<1x4x128xf32>,
    return
  }
  func.func @transform_0(%arg0: i32, %arg1: i32) -> (i32, i32, i32) {
    %c0_i32 = arith.constant 0 : i32
    %c0_i32_0 = arith.constant 0 : i32
    return %arg0, %arg1, %c0_i32 : i32, i32, i32
  }
  func.func @transform_1(%arg0: i32, %arg1: i32) -> (i32, i32, i32) {
    %c0_i32 = arith.constant 0 : i32
    %c0_i32_0 = arith.constant 0 : i32
    %c0_i32_1 = arith.constant 0 : i32
    return %arg0, %c0_i32, %c0_i32_0 : i32, i32, i32
  }
  func.func @transform_2(%arg0: i32, %arg1: i32) -> (i32, i32, i32) {
    %c0_i32 = arith.constant 0 : i32
    %c0_i32_0 = arith.constant 0 : i32
    %c0_i32_1 = arith.constant 0 : i32
    return %arg0, %c0_i32, %c0_i32_0 : i32, i32, i32
  }
  func.func @transform_3(%arg0: i32, %arg1: i32) -> (i32, i32, i32) {
    %c0_i32 = arith.constant 0 : i32
    %c0_i32_0 = arith.constant 0 : i32
    %c0_i32_1 = arith.constant 0 : i32
    %c0_i32_2 = arith.constant 0 : i32
    return %c0_i32, %c0_i32_0, %c0_i32_1 : i32, i32, i32
  }
  func.func @transform_4(%arg0: i32, %arg1: i32) -> (i32, i32) {
    %c0_i32 = arith.constant 0 : i32
    %c0_i32_0 = arith.constant 0 : i32
    %c0_i32_1 = arith.constant 0 : i32
    return %c0_i32, %c0_i32_0 : i32, i32
  }
  func.func @transform_5(%arg0: i32, %arg1: i32) -> (i32, i32, i32) {
    %c0_i32 = arith.constant 0 : i32
    %c0_i32_0 = arith.constant 0 : i32
    return %arg0, %arg1, %c0_i32 : i32, i32, i32
  }
}

module attributes {stable_mosaic.version = 11 : i64} {
  func.func @_dec_kernel(%arg0: i32, %arg1: i32, %arg2: memref<1x2x128xf32, #tpu.memory_space<vmem>>, %arg3: memref<1x1x128xf32, #tpu.memory_space<vmem>>, %arg4: memref<1x1x128xf32, #tpu.memory_space<vmem>>, %arg5: memref<4x128x128xf32, #tpu.memory_space<vmem>>, %arg6: memref<1x128xf32, #tpu.memory_space<vmem>>, %arg7: memref<1x2x256xf32, #tpu.memory_space<vmem>>) attributes {dimension_semantics = [#tpu.dimension_semantics<parallel>, #tpu.dimension_semantics<parallel>], iteration_bounds = array<i64: 2, 1>, scalar_prefetch = 0 : i64, scratch_operands = 0 : i64, tpu.core_type = #tpu.core_type<tc>, window_params = [{transform_indices = @transform_0, window_bounds = array<i64: 1, 2, 128>}, {transform_indices = @transform_1, window_bounds = array<i64: 1, 1, 128>}, {transform_indices = @transform_2, window_bounds = array<i64: 1, 1, 128>}, {pipeline_mode = #tpu.pipeline_mode<synchronous>, transform_indices = @transform_3, window_bounds = array<i64: 4, 128, 128>}, {pipeline_mode = #tpu.pipeline_mode<synchronous>, transform_indices = @transform_4, window_bounds = array<i64: 1, 128>}, {transform_indices = @transform_5, window_bounds = array<i64: 1, 2, 256>}]} {
    %c0 = arith.constant 0 : index
    %c0_0 = arith.constant 0 : index
    %c0_1 = arith.constant 0 : index
    %0 = vector.load %arg2[%c0, %c0_0, %c0_1] : memref<1x2x128xf32, #tpu.memory_space<vmem>>, vector<1x2x128xf32>
    %1 = vector.shape_cast %0 : vector<1x2x128xf32> to vector<2x128xf32>
    %c0_2 = arith.constant 0 : index
    %2 = arith.index_cast %arg1 : i32 to index
    %c0_3 = arith.constant 0 : index
    %3 = vector.load %arg3[%c0_2, %2, %c0_3] : memref<1x1x128xf32, #tpu.memory_space<vmem>>, vector<1x1x128xf32>
    %4 = vector.shape_cast %3 : vector<1x1x128xf32> to vector<1x128xf32>
    %c0_4 = arith.constant 0 : index
    %5 = arith.index_cast %arg1 : i32 to index
    %c0_5 = arith.constant 0 : index
    %6 = vector.load %arg4[%c0_4, %5, %c0_5] : memref<1x1x128xf32, #tpu.memory_space<vmem>>, vector<1x1x128xf32>
    %7 = vector.shape_cast %6 : vector<1x1x128xf32> to vector<1x128xf32>
    %8 = vector.extract_strided_slice %1 {offsets = [0, 0], sizes = [1, 128], strides = [1, 1]} : vector<2x128xf32> to vector<1x128xf32>
    %9 = tpu.concatenate %4, %8 in 0 : vector<1x128xf32>, vector<1x128xf32> -> vector<2x128xf32>
    %10 = vector.extract_strided_slice %1 {offsets = [1, 0], sizes = [1, 128], strides = [1, 1]} : vector<2x128xf32> to vector<1x128xf32>
    %11 = tpu.concatenate %10, %7 in 0 : vector<1x128xf32>, vector<1x128xf32> -> vector<2x128xf32>
    %c1 = arith.constant 1 : index
    %c0_6 = arith.constant 0 : index
    %c0_7 = arith.constant 0 : index
    %12 = vector.load %arg5[%c1, %c0_6, %c0_7] : memref<4x128x128xf32, #tpu.memory_space<vmem>>, vector<1x128x128xf32>
    %13 = vector.shape_cast %12 : vector<1x128x128xf32> to vector<128x128xf32>
    %cst = arith.constant dense<0.000000e+00> : vector<2x128xf32>
    %14 = tpu.matmul %1, %13, %cst {dimension_numbers = #tpu.dot_dimension_numbers<[1], [0], [0], [1], [0, 0, 1, 1], [], []>} : vector<2x128xf32>, vector<128x128xf32>, vector<2x128xf32> -> vector<2x128xf32>
    %c3 = arith.constant 3 : index
    %c0_8 = arith.constant 0 : index
    %c0_9 = arith.constant 0 : index
    %15 = vector.load %arg5[%c3, %c0_8, %c0_9] : memref<4x128x128xf32, #tpu.memory_space<vmem>>, vector<1x128x128xf32>
    %16 = vector.shape_cast %15 : vector<1x128x128xf32> to vector<128x128xf32>
    %cst_10 = arith.constant dense<0.000000e+00> : vector<2x128xf32>
    %17 = tpu.matmul %9, %16, %cst_10 {dimension_numbers = #tpu.dot_dimension_numbers<[1], [0], [0], [1], [0, 0, 1, 1], [], []>} : vector<2x128xf32>, vector<128x128xf32>, vector<2x128xf32> -> vector<2x128xf32>
    %18 = arith.addf %14, %17 : vector<2x128xf32>
    %c0_11 = arith.constant 0 : index
    %c0_12 = arith.constant 0 : index
    %19 = vector.load %arg6[%c0_11, %c0_12] : memref<1x128xf32, #tpu.memory_space<vmem>>, vector<1x128xf32>
    %20 = vector.broadcast %19 : vector<1x128xf32> to vector<2x128xf32>
    %21 = arith.addf %18, %20 : vector<2x128xf32>
    %c0_13 = arith.constant 0 : index
    %c0_14 = arith.constant 0 : index
    %c0_15 = arith.constant 0 : index
    %22 = vector.load %arg5[%c0_13, %c0_14, %c0_15] : memref<4x128x128xf32, #tpu.memory_space<vmem>>, vector<1x128x128xf32>
    %23 = vector.shape_cast %22 : vector<1x128x128xf32> to vector<128x128xf32>
    %cst_16 = arith.constant dense<0.000000e+00> : vector<2x128xf32>
    %24 = tpu.matmul %11, %23, %cst_16 {dimension_numbers = #tpu.dot_dimension_numbers<[1], [0], [0], [1], [0, 0, 1, 1], [], []>} : vector<2x128xf32>, vector<128x128xf32>, vector<2x128xf32> -> vector<2x128xf32>
    %c2 = arith.constant 2 : index
    %c0_17 = arith.constant 0 : index
    %c0_18 = arith.constant 0 : index
    %25 = vector.load %arg5[%c2, %c0_17, %c0_18] : memref<4x128x128xf32, #tpu.memory_space<vmem>>, vector<1x128x128xf32>
    %26 = vector.shape_cast %25 : vector<1x128x128xf32> to vector<128x128xf32>
    %cst_19 = arith.constant dense<0.000000e+00> : vector<2x128xf32>
    %27 = tpu.matmul %1, %26, %cst_19 {dimension_numbers = #tpu.dot_dimension_numbers<[1], [0], [0], [1], [0, 0, 1, 1], [], []>} : vector<2x128xf32>, vector<128x128xf32>, vector<2x128xf32> -> vector<2x128xf32>
    %28 = arith.addf %24, %27 : vector<2x128xf32>
    %c0_20 = arith.constant 0 : index
    %c0_21 = arith.constant 0 : index
    %29 = vector.load %arg6[%c0_20, %c0_21] : memref<1x128xf32, #tpu.memory_space<vmem>>, vector<1x128xf32>
    %30 = vector.broadcast %29 : vector<1x128xf32> to vector<2x128xf32>
    %31 = arith.addf %28, %30 : vector<2x128xf32>
    %cst_22 = arith.constant 0.000000e+00 : f32
    %32 = vector.broadcast %cst_22 : f32 to vector<2x128xf32>
    %33 = arith.cmpf oge, %21, %32 : vector<2x128xf32>
    %cst_23 = arith.constant 0.00999999977 : f32
    %34 = vector.broadcast %cst_23 : f32 to vector<2x128xf32>
    %35 = arith.mulf %34, %21 : vector<2x128xf32>
    %36 = arith.select %33, %21, %35 : vector<2x128xi1>, vector<2x128xf32>
    %cst_24 = arith.constant 0.000000e+00 : f32
    %37 = vector.broadcast %cst_24 : f32 to vector<2x128xf32>
    %38 = arith.cmpf oge, %31, %37 : vector<2x128xf32>
    %cst_25 = arith.constant 0.00999999977 : f32
    %39 = vector.broadcast %cst_25 : f32 to vector<2x128xf32>
    %40 = arith.mulf %39, %31 : vector<2x128xf32>
    %41 = arith.select %38, %31, %40 : vector<2x128xi1>, vector<2x128xf32>
    %c0_26 = arith.constant 0 : index
    %c0_27 = arith.constant 0 : index
    %c0_28 = arith.constant 0 : index
    %42 = vector.load %arg7[%c0_26, %c0_27, %c0_28] : memref<1x2x256xf32, #tpu.memory_space<vmem>>, vector<1x2x128xf32>
    %43 = vector.shape_cast %42 : vector<1x2x128xf32> to vector<2x128xf32>
    %44 = vector.shape_cast %36 : vector<2x128xf32> to vector<1x2x128xf32>
    tpu.vector_store %arg7[%c0_26, %c0_27, %c0_28], %44 {strides = array<i32>} : memref<1x2x256xf32, #tpu.memory_space<vmem>>, vector<1x2x128xf32>,
    %c0_29 = arith.constant 0 : index
    %c0_30 = arith.constant 0 : index
    %c128 = arith.constant 128 : index
    %45 = vector.load %arg7[%c0_29, %c0_30, %c128] : memref<1x2x256xf32, #tpu.memory_space<vmem>>, vector<1x2x128xf32>
    %46 = vector.shape_cast %45 : vector<1x2x128xf32> to vector<2x128xf32>
    %47 = vector.shape_cast %41 : vector<2x128xf32> to vector<1x2x128xf32>
    tpu.vector_store %arg7[%c0_29, %c0_30, %c128], %47 {strides = array<i32>} : memref<1x2x256xf32, #tpu.memory_space<vmem>>, vector<1x2x128xf32>,
    return
  }
  func.func @transform_0(%arg0: i32, %arg1: i32) -> (i32, i32, i32) {
    %c0_i32 = arith.constant 0 : i32
    %c0_i32_0 = arith.constant 0 : i32
    return %arg0, %arg1, %c0_i32 : i32, i32, i32
  }
  func.func @transform_1(%arg0: i32, %arg1: i32) -> (i32, i32, i32) {
    %c0_i32 = arith.constant 0 : i32
    %c0_i32_0 = arith.constant 0 : i32
    %c0_i32_1 = arith.constant 0 : i32
    return %arg0, %c0_i32, %c0_i32_0 : i32, i32, i32
  }
  func.func @transform_2(%arg0: i32, %arg1: i32) -> (i32, i32, i32) {
    %c0_i32 = arith.constant 0 : i32
    %c0_i32_0 = arith.constant 0 : i32
    %c0_i32_1 = arith.constant 0 : i32
    return %arg0, %c0_i32, %c0_i32_0 : i32, i32, i32
  }
  func.func @transform_3(%arg0: i32, %arg1: i32) -> (i32, i32, i32) {
    %c0_i32 = arith.constant 0 : i32
    %c0_i32_0 = arith.constant 0 : i32
    %c0_i32_1 = arith.constant 0 : i32
    %c0_i32_2 = arith.constant 0 : i32
    return %c0_i32, %c0_i32_0, %c0_i32_1 : i32, i32, i32
  }
  func.func @transform_4(%arg0: i32, %arg1: i32) -> (i32, i32) {
    %c0_i32 = arith.constant 0 : i32
    %c0_i32_0 = arith.constant 0 : i32
    %c0_i32_1 = arith.constant 0 : i32
    return %c0_i32, %c0_i32_0 : i32, i32
  }
  func.func @transform_5(%arg0: i32, %arg1: i32) -> (i32, i32, i32) {
    %c0_i32 = arith.constant 0 : i32
    %c0_i32_0 = arith.constant 0 : i32
    return %arg0, %arg1, %c0_i32 : i32, i32, i32
  }
}

module attributes {stable_mosaic.version = 11 : i64} {
  func.func @_dec_kernel(%arg0: i32, %arg1: i32, %arg2: memref<1x8x128xf32, #tpu.memory_space<vmem>>, %arg3: memref<1x1x128xf32, #tpu.memory_space<vmem>>, %arg4: memref<1x1x128xf32, #tpu.memory_space<vmem>>, %arg5: memref<4x128x128xf32, #tpu.memory_space<vmem>>, %arg6: memref<1x128xf32, #tpu.memory_space<vmem>>, %arg7: memref<1x8x256xf32, #tpu.memory_space<vmem>>) attributes {dimension_semantics = [#tpu.dimension_semantics<parallel>, #tpu.dimension_semantics<parallel>], iteration_bounds = array<i64: 2, 1>, scalar_prefetch = 0 : i64, scratch_operands = 0 : i64, tpu.core_type = #tpu.core_type<tc>, window_params = [{transform_indices = @transform_0, window_bounds = array<i64: 1, 8, 128>}, {transform_indices = @transform_1, window_bounds = array<i64: 1, 1, 128>}, {transform_indices = @transform_2, window_bounds = array<i64: 1, 1, 128>}, {pipeline_mode = #tpu.pipeline_mode<synchronous>, transform_indices = @transform_3, window_bounds = array<i64: 4, 128, 128>}, {pipeline_mode = #tpu.pipeline_mode<synchronous>, transform_indices = @transform_4, window_bounds = array<i64: 1, 128>}, {transform_indices = @transform_5, window_bounds = array<i64: 1, 8, 256>}]} {
    %c0 = arith.constant 0 : index
    %c0_0 = arith.constant 0 : index
    %c0_1 = arith.constant 0 : index
    %0 = vector.load %arg2[%c0, %c0_0, %c0_1] : memref<1x8x128xf32, #tpu.memory_space<vmem>>, vector<1x8x128xf32>
    %1 = vector.shape_cast %0 : vector<1x8x128xf32> to vector<8x128xf32>
    %c0_2 = arith.constant 0 : index
    %2 = arith.index_cast %arg1 : i32 to index
    %c0_3 = arith.constant 0 : index
    %3 = vector.load %arg3[%c0_2, %2, %c0_3] : memref<1x1x128xf32, #tpu.memory_space<vmem>>, vector<1x1x128xf32>
    %4 = vector.shape_cast %3 : vector<1x1x128xf32> to vector<1x128xf32>
    %c0_4 = arith.constant 0 : index
    %5 = arith.index_cast %arg1 : i32 to index
    %c0_5 = arith.constant 0 : index
    %6 = vector.load %arg4[%c0_4, %5, %c0_5] : memref<1x1x128xf32, #tpu.memory_space<vmem>>, vector<1x1x128xf32>
    %7 = vector.shape_cast %6 : vector<1x1x128xf32> to vector<1x128xf32>
    %8 = vector.extract_strided_slice %1 {offsets = [0, 0], sizes = [7, 128], strides = [1, 1]} : vector<8x128xf32> to vector<7x128xf32>
    %9 = tpu.concatenate %4, %8 in 0 : vector<1x128xf32>, vector<7x128xf32> -> vector<8x128xf32>
    %10 = vector.extract_strided_slice %1 {offsets = [1, 0], sizes = [7, 128], strides = [1, 1]} : vector<8x128xf32> to vector<7x128xf32>
    %11 = tpu.concatenate %10, %7 in 0 : vector<7x128xf32>, vector<1x128xf32> -> vector<8x128xf32>
    %c1 = arith.constant 1 : index
    %c0_6 = arith.constant 0 : index
    %c0_7 = arith.constant 0 : index
    %12 = vector.load %arg5[%c1, %c0_6, %c0_7] : memref<4x128x128xf32, #tpu.memory_space<vmem>>, vector<1x128x128xf32>
    %13 = vector.shape_cast %12 : vector<1x128x128xf32> to vector<128x128xf32>
    %cst = arith.constant dense<0.000000e+00> : vector<8x128xf32>
    %14 = tpu.matmul %1, %13, %cst {dimension_numbers = #tpu.dot_dimension_numbers<[1], [0], [0], [1], [0, 0, 1, 1], [], []>} : vector<8x128xf32>, vector<128x128xf32>, vector<8x128xf32> -> vector<8x128xf32>
    %c3 = arith.constant 3 : index
    %c0_8 = arith.constant 0 : index
    %c0_9 = arith.constant 0 : index
    %15 = vector.load %arg5[%c3, %c0_8, %c0_9] : memref<4x128x128xf32, #tpu.memory_space<vmem>>, vector<1x128x128xf32>
    %16 = vector.shape_cast %15 : vector<1x128x128xf32> to vector<128x128xf32>
    %cst_10 = arith.constant dense<0.000000e+00> : vector<8x128xf32>
    %17 = tpu.matmul %9, %16, %cst_10 {dimension_numbers = #tpu.dot_dimension_numbers<[1], [0], [0], [1], [0, 0, 1, 1], [], []>} : vector<8x128xf32>, vector<128x128xf32>, vector<8x128xf32> -> vector<8x128xf32>
    %18 = arith.addf %14, %17 : vector<8x128xf32>
    %c0_11 = arith.constant 0 : index
    %c0_12 = arith.constant 0 : index
    %19 = vector.load %arg6[%c0_11, %c0_12] : memref<1x128xf32, #tpu.memory_space<vmem>>, vector<1x128xf32>
    %20 = vector.broadcast %19 : vector<1x128xf32> to vector<8x128xf32>
    %21 = arith.addf %18, %20 : vector<8x128xf32>
    %c0_13 = arith.constant 0 : index
    %c0_14 = arith.constant 0 : index
    %c0_15 = arith.constant 0 : index
    %22 = vector.load %arg5[%c0_13, %c0_14, %c0_15] : memref<4x128x128xf32, #tpu.memory_space<vmem>>, vector<1x128x128xf32>
    %23 = vector.shape_cast %22 : vector<1x128x128xf32> to vector<128x128xf32>
    %cst_16 = arith.constant dense<0.000000e+00> : vector<8x128xf32>
    %24 = tpu.matmul %11, %23, %cst_16 {dimension_numbers = #tpu.dot_dimension_numbers<[1], [0], [0], [1], [0, 0, 1, 1], [], []>} : vector<8x128xf32>, vector<128x128xf32>, vector<8x128xf32> -> vector<8x128xf32>
    %c2 = arith.constant 2 : index
    %c0_17 = arith.constant 0 : index
    %c0_18 = arith.constant 0 : index
    %25 = vector.load %arg5[%c2, %c0_17, %c0_18] : memref<4x128x128xf32, #tpu.memory_space<vmem>>, vector<1x128x128xf32>
    %26 = vector.shape_cast %25 : vector<1x128x128xf32> to vector<128x128xf32>
    %cst_19 = arith.constant dense<0.000000e+00> : vector<8x128xf32>
    %27 = tpu.matmul %1, %26, %cst_19 {dimension_numbers = #tpu.dot_dimension_numbers<[1], [0], [0], [1], [0, 0, 1, 1], [], []>} : vector<8x128xf32>, vector<128x128xf32>, vector<8x128xf32> -> vector<8x128xf32>
    %28 = arith.addf %24, %27 : vector<8x128xf32>
    %c0_20 = arith.constant 0 : index
    %c0_21 = arith.constant 0 : index
    %29 = vector.load %arg6[%c0_20, %c0_21] : memref<1x128xf32, #tpu.memory_space<vmem>>, vector<1x128xf32>
    %30 = vector.broadcast %29 : vector<1x128xf32> to vector<8x128xf32>
    %31 = arith.addf %28, %30 : vector<8x128xf32>
    %cst_22 = arith.constant 0.000000e+00 : f32
    %32 = vector.broadcast %cst_22 : f32 to vector<8x128xf32>
    %33 = arith.cmpf oge, %21, %32 : vector<8x128xf32>
    %cst_23 = arith.constant 0.00999999977 : f32
    %34 = vector.broadcast %cst_23 : f32 to vector<8x128xf32>
    %35 = arith.mulf %34, %21 : vector<8x128xf32>
    %36 = arith.select %33, %21, %35 : vector<8x128xi1>, vector<8x128xf32>
    %cst_24 = arith.constant 0.000000e+00 : f32
    %37 = vector.broadcast %cst_24 : f32 to vector<8x128xf32>
    %38 = arith.cmpf oge, %31, %37 : vector<8x128xf32>
    %cst_25 = arith.constant 0.00999999977 : f32
    %39 = vector.broadcast %cst_25 : f32 to vector<8x128xf32>
    %40 = arith.mulf %39, %31 : vector<8x128xf32>
    %41 = arith.select %38, %31, %40 : vector<8x128xi1>, vector<8x128xf32>
    %c0_26 = arith.constant 0 : index
    %c0_27 = arith.constant 0 : index
    %c0_28 = arith.constant 0 : index
    %42 = vector.load %arg7[%c0_26, %c0_27, %c0_28] : memref<1x8x256xf32, #tpu.memory_space<vmem>>, vector<1x8x128xf32>
    %43 = vector.shape_cast %42 : vector<1x8x128xf32> to vector<8x128xf32>
    %44 = vector.shape_cast %36 : vector<8x128xf32> to vector<1x8x128xf32>
    tpu.vector_store %arg7[%c0_26, %c0_27, %c0_28], %44 {strides = array<i32>} : memref<1x8x256xf32, #tpu.memory_space<vmem>>, vector<1x8x128xf32>,
    %c0_29 = arith.constant 0 : index
    %c0_30 = arith.constant 0 : index
    %c128 = arith.constant 128 : index
    %45 = vector.load %arg7[%c0_29, %c0_30, %c128] : memref<1x8x256xf32, #tpu.memory_space<vmem>>, vector<1x8x128xf32>
    %46 = vector.shape_cast %45 : vector<1x8x128xf32> to vector<8x128xf32>
    %47 = vector.shape_cast %41 : vector<8x128xf32> to vector<1x8x128xf32>
    tpu.vector_store %arg7[%c0_29, %c0_30, %c128], %47 {strides = array<i32>} : memref<1x8x256xf32, #tpu.memory_space<vmem>>, vector<1x8x128xf32>,
    return
  }
  func.func @transform_0(%arg0: i32, %arg1: i32) -> (i32, i32, i32) {
    %c0_i32 = arith.constant 0 : i32
    %c0_i32_0 = arith.constant 0 : i32
    return %arg0, %arg1, %c0_i32 : i32, i32, i32
  }
  func.func @transform_1(%arg0: i32, %arg1: i32) -> (i32, i32, i32) {
    %c0_i32 = arith.constant 0 : i32
    %c0_i32_0 = arith.constant 0 : i32
    %c0_i32_1 = arith.constant 0 : i32
    return %arg0, %c0_i32, %c0_i32_0 : i32, i32, i32
  }
  func.func @transform_2(%arg0: i32, %arg1: i32) -> (i32, i32, i32) {
    %c0_i32 = arith.constant 0 : i32
    %c0_i32_0 = arith.constant 0 : i32
    %c0_i32_1 = arith.constant 0 : i32
    return %arg0, %c0_i32, %c0_i32_0 : i32, i32, i32
  }
  func.func @transform_3(%arg0: i32, %arg1: i32) -> (i32, i32, i32) {
    %c0_i32 = arith.constant 0 : i32
    %c0_i32_0 = arith.constant 0 : i32
    %c0_i32_1 = arith.constant 0 : i32
    %c0_i32_2 = arith.constant 0 : i32
    return %c0_i32, %c0_i32_0, %c0_i32_1 : i32, i32, i32
  }
  func.func @transform_4(%arg0: i32, %arg1: i32) -> (i32, i32) {
    %c0_i32 = arith.constant 0 : i32
    %c0_i32_0 = arith.constant 0 : i32
    %c0_i32_1 = arith.constant 0 : i32
    return %c0_i32, %c0_i32_0 : i32, i32
  }
  func.func @transform_5(%arg0: i32, %arg1: i32) -> (i32, i32, i32) {
    %c0_i32 = arith.constant 0 : i32
    %c0_i32_0 = arith.constant 0 : i32
    return %arg0, %arg1, %c0_i32 : i32, i32, i32
  }
}

module attributes {stable_mosaic.version = 11 : i64} {
  func.func @_dec_kernel(%arg0: i32, %arg1: i32, %arg2: memref<1x16x128xf32, #tpu.memory_space<vmem>>, %arg3: memref<1x1x128xf32, #tpu.memory_space<vmem>>, %arg4: memref<1x1x128xf32, #tpu.memory_space<vmem>>, %arg5: memref<4x128x128xf32, #tpu.memory_space<vmem>>, %arg6: memref<1x128xf32, #tpu.memory_space<vmem>>, %arg7: memref<1x16x256xf32, #tpu.memory_space<vmem>>) attributes {dimension_semantics = [#tpu.dimension_semantics<parallel>, #tpu.dimension_semantics<parallel>], iteration_bounds = array<i64: 2, 1>, scalar_prefetch = 0 : i64, scratch_operands = 0 : i64, tpu.core_type = #tpu.core_type<tc>, window_params = [{transform_indices = @transform_0, window_bounds = array<i64: 1, 16, 128>}, {transform_indices = @transform_1, window_bounds = array<i64: 1, 1, 128>}, {transform_indices = @transform_2, window_bounds = array<i64: 1, 1, 128>}, {pipeline_mode = #tpu.pipeline_mode<synchronous>, transform_indices = @transform_3, window_bounds = array<i64: 4, 128, 128>}, {pipeline_mode = #tpu.pipeline_mode<synchronous>, transform_indices = @transform_4, window_bounds = array<i64: 1, 128>}, {transform_indices = @transform_5, window_bounds = array<i64: 1, 16, 256>}]} {
    %c0 = arith.constant 0 : index
    %c0_0 = arith.constant 0 : index
    %c0_1 = arith.constant 0 : index
    %0 = vector.load %arg2[%c0, %c0_0, %c0_1] : memref<1x16x128xf32, #tpu.memory_space<vmem>>, vector<1x16x128xf32>
    %1 = vector.shape_cast %0 : vector<1x16x128xf32> to vector<16x128xf32>
    %c0_2 = arith.constant 0 : index
    %2 = arith.index_cast %arg1 : i32 to index
    %c0_3 = arith.constant 0 : index
    %3 = vector.load %arg3[%c0_2, %2, %c0_3] : memref<1x1x128xf32, #tpu.memory_space<vmem>>, vector<1x1x128xf32>
    %4 = vector.shape_cast %3 : vector<1x1x128xf32> to vector<1x128xf32>
    %c0_4 = arith.constant 0 : index
    %5 = arith.index_cast %arg1 : i32 to index
    %c0_5 = arith.constant 0 : index
    %6 = vector.load %arg4[%c0_4, %5, %c0_5] : memref<1x1x128xf32, #tpu.memory_space<vmem>>, vector<1x1x128xf32>
    %7 = vector.shape_cast %6 : vector<1x1x128xf32> to vector<1x128xf32>
    %8 = vector.extract_strided_slice %1 {offsets = [0, 0], sizes = [15, 128], strides = [1, 1]} : vector<16x128xf32> to vector<15x128xf32>
    %9 = tpu.concatenate %4, %8 in 0 : vector<1x128xf32>, vector<15x128xf32> -> vector<16x128xf32>
    %10 = vector.extract_strided_slice %1 {offsets = [1, 0], sizes = [15, 128], strides = [1, 1]} : vector<16x128xf32> to vector<15x128xf32>
    %11 = tpu.concatenate %10, %7 in 0 : vector<15x128xf32>, vector<1x128xf32> -> vector<16x128xf32>
    %c1 = arith.constant 1 : index
    %c0_6 = arith.constant 0 : index
    %c0_7 = arith.constant 0 : index
    %12 = vector.load %arg5[%c1, %c0_6, %c0_7] : memref<4x128x128xf32, #tpu.memory_space<vmem>>, vector<1x128x128xf32>
    %13 = vector.shape_cast %12 : vector<1x128x128xf32> to vector<128x128xf32>
    %cst = arith.constant dense<0.000000e+00> : vector<16x128xf32>
    %14 = tpu.matmul %1, %13, %cst {dimension_numbers = #tpu.dot_dimension_numbers<[1], [0], [0], [1], [0, 0, 1, 1], [], []>} : vector<16x128xf32>, vector<128x128xf32>, vector<16x128xf32> -> vector<16x128xf32>
    %c3 = arith.constant 3 : index
    %c0_8 = arith.constant 0 : index
    %c0_9 = arith.constant 0 : index
    %15 = vector.load %arg5[%c3, %c0_8, %c0_9] : memref<4x128x128xf32, #tpu.memory_space<vmem>>, vector<1x128x128xf32>
    %16 = vector.shape_cast %15 : vector<1x128x128xf32> to vector<128x128xf32>
    %cst_10 = arith.constant dense<0.000000e+00> : vector<16x128xf32>
    %17 = tpu.matmul %9, %16, %cst_10 {dimension_numbers = #tpu.dot_dimension_numbers<[1], [0], [0], [1], [0, 0, 1, 1], [], []>} : vector<16x128xf32>, vector<128x128xf32>, vector<16x128xf32> -> vector<16x128xf32>
    %18 = arith.addf %14, %17 : vector<16x128xf32>
    %c0_11 = arith.constant 0 : index
    %c0_12 = arith.constant 0 : index
    %19 = vector.load %arg6[%c0_11, %c0_12] : memref<1x128xf32, #tpu.memory_space<vmem>>, vector<1x128xf32>
    %20 = vector.broadcast %19 : vector<1x128xf32> to vector<16x128xf32>
    %21 = arith.addf %18, %20 : vector<16x128xf32>
    %c0_13 = arith.constant 0 : index
    %c0_14 = arith.constant 0 : index
    %c0_15 = arith.constant 0 : index
    %22 = vector.load %arg5[%c0_13, %c0_14, %c0_15] : memref<4x128x128xf32, #tpu.memory_space<vmem>>, vector<1x128x128xf32>
    %23 = vector.shape_cast %22 : vector<1x128x128xf32> to vector<128x128xf32>
    %cst_16 = arith.constant dense<0.000000e+00> : vector<16x128xf32>
    %24 = tpu.matmul %11, %23, %cst_16 {dimension_numbers = #tpu.dot_dimension_numbers<[1], [0], [0], [1], [0, 0, 1, 1], [], []>} : vector<16x128xf32>, vector<128x128xf32>, vector<16x128xf32> -> vector<16x128xf32>
    %c2 = arith.constant 2 : index
    %c0_17 = arith.constant 0 : index
    %c0_18 = arith.constant 0 : index
    %25 = vector.load %arg5[%c2, %c0_17, %c0_18] : memref<4x128x128xf32, #tpu.memory_space<vmem>>, vector<1x128x128xf32>
    %26 = vector.shape_cast %25 : vector<1x128x128xf32> to vector<128x128xf32>
    %cst_19 = arith.constant dense<0.000000e+00> : vector<16x128xf32>
    %27 = tpu.matmul %1, %26, %cst_19 {dimension_numbers = #tpu.dot_dimension_numbers<[1], [0], [0], [1], [0, 0, 1, 1], [], []>} : vector<16x128xf32>, vector<128x128xf32>, vector<16x128xf32> -> vector<16x128xf32>
    %28 = arith.addf %24, %27 : vector<16x128xf32>
    %c0_20 = arith.constant 0 : index
    %c0_21 = arith.constant 0 : index
    %29 = vector.load %arg6[%c0_20, %c0_21] : memref<1x128xf32, #tpu.memory_space<vmem>>, vector<1x128xf32>
    %30 = vector.broadcast %29 : vector<1x128xf32> to vector<16x128xf32>
    %31 = arith.addf %28, %30 : vector<16x128xf32>
    %cst_22 = arith.constant 0.000000e+00 : f32
    %32 = vector.broadcast %cst_22 : f32 to vector<16x128xf32>
    %33 = arith.cmpf oge, %21, %32 : vector<16x128xf32>
    %cst_23 = arith.constant 0.00999999977 : f32
    %34 = vector.broadcast %cst_23 : f32 to vector<16x128xf32>
    %35 = arith.mulf %34, %21 : vector<16x128xf32>
    %36 = arith.select %33, %21, %35 : vector<16x128xi1>, vector<16x128xf32>
    %cst_24 = arith.constant 0.000000e+00 : f32
    %37 = vector.broadcast %cst_24 : f32 to vector<16x128xf32>
    %38 = arith.cmpf oge, %31, %37 : vector<16x128xf32>
    %cst_25 = arith.constant 0.00999999977 : f32
    %39 = vector.broadcast %cst_25 : f32 to vector<16x128xf32>
    %40 = arith.mulf %39, %31 : vector<16x128xf32>
    %41 = arith.select %38, %31, %40 : vector<16x128xi1>, vector<16x128xf32>
    %c0_26 = arith.constant 0 : index
    %c0_27 = arith.constant 0 : index
    %c0_28 = arith.constant 0 : index
    %42 = vector.load %arg7[%c0_26, %c0_27, %c0_28] : memref<1x16x256xf32, #tpu.memory_space<vmem>>, vector<1x16x128xf32>
    %43 = vector.shape_cast %42 : vector<1x16x128xf32> to vector<16x128xf32>
    %44 = vector.shape_cast %36 : vector<16x128xf32> to vector<1x16x128xf32>
    tpu.vector_store %arg7[%c0_26, %c0_27, %c0_28], %44 {strides = array<i32>} : memref<1x16x256xf32, #tpu.memory_space<vmem>>, vector<1x16x128xf32>,
    %c0_29 = arith.constant 0 : index
    %c0_30 = arith.constant 0 : index
    %c128 = arith.constant 128 : index
    %45 = vector.load %arg7[%c0_29, %c0_30, %c128] : memref<1x16x256xf32, #tpu.memory_space<vmem>>, vector<1x16x128xf32>
    %46 = vector.shape_cast %45 : vector<1x16x128xf32> to vector<16x128xf32>
    %47 = vector.shape_cast %41 : vector<16x128xf32> to vector<1x16x128xf32>
    tpu.vector_store %arg7[%c0_29, %c0_30, %c128], %47 {strides = array<i32>} : memref<1x16x256xf32, #tpu.memory_space<vmem>>, vector<1x16x128xf32>,
    return
  }
  func.func @transform_0(%arg0: i32, %arg1: i32) -> (i32, i32, i32) {
    %c0_i32 = arith.constant 0 : i32
    %c0_i32_0 = arith.constant 0 : i32
    return %arg0, %arg1, %c0_i32 : i32, i32, i32
  }
  func.func @transform_1(%arg0: i32, %arg1: i32) -> (i32, i32, i32) {
    %c0_i32 = arith.constant 0 : i32
    %c0_i32_0 = arith.constant 0 : i32
    %c0_i32_1 = arith.constant 0 : i32
    return %arg0, %c0_i32, %c0_i32_0 : i32, i32, i32
  }
  func.func @transform_2(%arg0: i32, %arg1: i32) -> (i32, i32, i32) {
    %c0_i32 = arith.constant 0 : i32
    %c0_i32_0 = arith.constant 0 : i32
    %c0_i32_1 = arith.constant 0 : i32
    return %arg0, %c0_i32, %c0_i32_0 : i32, i32, i32
  }
  func.func @transform_3(%arg0: i32, %arg1: i32) -> (i32, i32, i32) {
    %c0_i32 = arith.constant 0 : i32
    %c0_i32_0 = arith.constant 0 : i32
    %c0_i32_1 = arith.constant 0 : i32
    %c0_i32_2 = arith.constant 0 : i32
    return %c0_i32, %c0_i32_0, %c0_i32_1 : i32, i32, i32
  }
  func.func @transform_4(%arg0: i32, %arg1: i32) -> (i32, i32) {
    %c0_i32 = arith.constant 0 : i32
    %c0_i32_0 = arith.constant 0 : i32
    %c0_i32_1 = arith.constant 0 : i32
    return %c0_i32, %c0_i32_0 : i32, i32
  }
  func.func @transform_5(%arg0: i32, %arg1: i32) -> (i32, i32, i32) {
    %c0_i32 = arith.constant 0 : i32
    %c0_i32_0 = arith.constant 0 : i32
    return %arg0, %arg1, %c0_i32 : i32, i32, i32
  }
}

module attributes {stable_mosaic.version = 11 : i64} {
  func.func @_dec_last_kernel(%arg0: i32, %arg1: i32, %arg2: memref<1x32x128xf32, #tpu.memory_space<vmem>>, %arg3: memref<1x1x128xf32, #tpu.memory_space<vmem>>, %arg4: memref<1x1x128xf32, #tpu.memory_space<vmem>>, %arg5: memref<4x128xf32, #tpu.memory_space<vmem>>, %arg6: memref<1x1xf32, #tpu.memory_space<vmem>>, %arg7: memref<1x32x2xf32, #tpu.memory_space<vmem>>) attributes {dimension_semantics = [#tpu.dimension_semantics<parallel>, #tpu.dimension_semantics<parallel>], iteration_bounds = array<i64: 2, 1>, scalar_prefetch = 0 : i64, scratch_operands = 0 : i64, tpu.core_type = #tpu.core_type<tc>, window_params = [{transform_indices = @transform_0, window_bounds = array<i64: 1, 32, 128>}, {transform_indices = @transform_1, window_bounds = array<i64: 1, 1, 128>}, {transform_indices = @transform_2, window_bounds = array<i64: 1, 1, 128>}, {pipeline_mode = #tpu.pipeline_mode<synchronous>, transform_indices = @transform_3, window_bounds = array<i64: 4, 128>}, {pipeline_mode = #tpu.pipeline_mode<synchronous>, transform_indices = @transform_4, window_bounds = array<i64: 1, 1>}, {transform_indices = @transform_5, window_bounds = array<i64: 1, 32, 2>}]} {
    %c0 = arith.constant 0 : index
    %c0_0 = arith.constant 0 : index
    %c0_1 = arith.constant 0 : index
    %0 = vector.load %arg2[%c0, %c0_0, %c0_1] : memref<1x32x128xf32, #tpu.memory_space<vmem>>, vector<1x32x128xf32>
    %1 = vector.shape_cast %0 : vector<1x32x128xf32> to vector<32x128xf32>
    %c0_2 = arith.constant 0 : index
    %2 = arith.index_cast %arg1 : i32 to index
    %c0_3 = arith.constant 0 : index
    %3 = vector.load %arg3[%c0_2, %2, %c0_3] : memref<1x1x128xf32, #tpu.memory_space<vmem>>, vector<1x1x128xf32>
    %4 = vector.shape_cast %3 : vector<1x1x128xf32> to vector<1x128xf32>
    %c0_4 = arith.constant 0 : index
    %5 = arith.index_cast %arg1 : i32 to index
    %c0_5 = arith.constant 0 : index
    %6 = vector.load %arg4[%c0_4, %5, %c0_5] : memref<1x1x128xf32, #tpu.memory_space<vmem>>, vector<1x1x128xf32>
    %7 = vector.shape_cast %6 : vector<1x1x128xf32> to vector<1x128xf32>
    %8 = vector.extract_strided_slice %1 {offsets = [0, 0], sizes = [31, 128], strides = [1, 1]} : vector<32x128xf32> to vector<31x128xf32>
    %9 = tpu.concatenate %4, %8 in 0 : vector<1x128xf32>, vector<31x128xf32> -> vector<32x128xf32>
    %10 = vector.extract_strided_slice %1 {offsets = [1, 0], sizes = [31, 128], strides = [1, 1]} : vector<32x128xf32> to vector<31x128xf32>
    %11 = tpu.concatenate %10, %7 in 0 : vector<31x128xf32>, vector<1x128xf32> -> vector<32x128xf32>
    %c0_6 = arith.constant 0 : index
    %c0_7 = arith.constant 0 : index
    %12 = vector.load %arg5[%c0_6, %c0_7] : memref<4x128xf32, #tpu.memory_space<vmem>>, vector<4x128xf32>
    %c0_8 = arith.constant 0 : index
    %c0_9 = arith.constant 0 : index
    %13 = vector.load %arg6[%c0_8, %c0_9] : memref<1x1xf32, #tpu.memory_space<vmem>>, vector<1x1xf32>
    %14 = vector.extract_strided_slice %12 {offsets = [1, 0], sizes = [1, 128], strides = [1, 1]} : vector<4x128xf32> to vector<1x128xf32>
    %15 = vector.broadcast %14 : vector<1x128xf32> to vector<32x128xf32>
    %16 = arith.mulf %1, %15 : vector<32x128xf32>
    %cst = arith.constant dense<0.000000e+00> : vector<32xf32>
    %17 = vector.multi_reduction <add>, %16, %cst [1] : vector<32x128xf32> to vector<32xf32>
    %18 = vector.shape_cast %17 : vector<32xf32> to vector<32x1xf32>
    %19 = vector.extract_strided_slice %12 {offsets = [3, 0], sizes = [1, 128], strides = [1, 1]} : vector<4x128xf32> to vector<1x128xf32>
    %20 = vector.broadcast %19 : vector<1x128xf32> to vector<32x128xf32>
    %21 = arith.mulf %9, %20 : vector<32x128xf32>
    %cst_10 = arith.constant dense<0.000000e+00> : vector<32xf32>
    %22 = vector.multi_reduction <add>, %21, %cst_10 [1] : vector<32x128xf32> to vector<32xf32>
    %23 = vector.shape_cast %22 : vector<32xf32> to vector<32x1xf32>
    %24 = arith.addf %18, %23 : vector<32x1xf32>
    %25 = vector.broadcast %13 : vector<1x1xf32> to vector<32x1xf32>
    %26 = arith.addf %24, %25 : vector<32x1xf32>
    %27 = vector.extract_strided_slice %12 {offsets = [0, 0], sizes = [1, 128], strides = [1, 1]} : vector<4x128xf32> to vector<1x128xf32>
    %28 = vector.broadcast %27 : vector<1x128xf32> to vector<32x128xf32>
    %29 = arith.mulf %11, %28 : vector<32x128xf32>
    %cst_11 = arith.constant dense<0.000000e+00> : vector<32xf32>
    %30 = vector.multi_reduction <add>, %29, %cst_11 [1] : vector<32x128xf32> to vector<32xf32>
    %31 = vector.shape_cast %30 : vector<32xf32> to vector<32x1xf32>
    %32 = vector.extract_strided_slice %12 {offsets = [2, 0], sizes = [1, 128], strides = [1, 1]} : vector<4x128xf32> to vector<1x128xf32>
    %33 = vector.broadcast %32 : vector<1x128xf32> to vector<32x128xf32>
    %34 = arith.mulf %1, %33 : vector<32x128xf32>
    %cst_12 = arith.constant dense<0.000000e+00> : vector<32xf32>
    %35 = vector.multi_reduction <add>, %34, %cst_12 [1] : vector<32x128xf32> to vector<32xf32>
    %36 = vector.shape_cast %35 : vector<32xf32> to vector<32x1xf32>
    %37 = arith.addf %31, %36 : vector<32x1xf32>
    %38 = vector.broadcast %13 : vector<1x1xf32> to vector<32x1xf32>
    %39 = arith.addf %37, %38 : vector<32x1xf32>
    %c0_13 = arith.constant 0 : index
    %c0_14 = arith.constant 0 : index
    %c0_15 = arith.constant 0 : index
    %40 = vector.load %arg7[%c0_13, %c0_14, %c0_15] : memref<1x32x2xf32, #tpu.memory_space<vmem>>, vector<1x32x1xf32>
    %41 = vector.shape_cast %40 : vector<1x32x1xf32> to vector<32x1xf32>
    %42 = vector.shape_cast %26 : vector<32x1xf32> to vector<1x32x1xf32>
    tpu.vector_store %arg7[%c0_13, %c0_14, %c0_15], %42 {strides = array<i32>} : memref<1x32x2xf32, #tpu.memory_space<vmem>>, vector<1x32x1xf32>,
    %c0_16 = arith.constant 0 : index
    %c0_17 = arith.constant 0 : index
    %c1 = arith.constant 1 : index
    %43 = vector.load %arg7[%c0_16, %c0_17, %c1] : memref<1x32x2xf32, #tpu.memory_space<vmem>>, vector<1x32x1xf32>
    %44 = vector.shape_cast %43 : vector<1x32x1xf32> to vector<32x1xf32>
    %45 = vector.shape_cast %39 : vector<32x1xf32> to vector<1x32x1xf32>
    tpu.vector_store %arg7[%c0_16, %c0_17, %c1], %45 {strides = array<i32>} : memref<1x32x2xf32, #tpu.memory_space<vmem>>, vector<1x32x1xf32>,
    return
  }
  func.func @transform_0(%arg0: i32, %arg1: i32) -> (i32, i32, i32) {
    %c0_i32 = arith.constant 0 : i32
    %c0_i32_0 = arith.constant 0 : i32
    return %arg0, %arg1, %c0_i32 : i32, i32, i32
  }
  func.func @transform_1(%arg0: i32, %arg1: i32) -> (i32, i32, i32) {
    %c0_i32 = arith.constant 0 : i32
    %c0_i32_0 = arith.constant 0 : i32
    %c0_i32_1 = arith.constant 0 : i32
    return %arg0, %c0_i32, %c0_i32_0 : i32, i32, i32
  }
  func.func @transform_2(%arg0: i32, %arg1: i32) -> (i32, i32, i32) {
    %c0_i32 = arith.constant 0 : i32
    %c0_i32_0 = arith.constant 0 : i32
    %c0_i32_1 = arith.constant 0 : i32
    return %arg0, %c0_i32, %c0_i32_0 : i32, i32, i32
  }
  func.func @transform_3(%arg0: i32, %arg1: i32) -> (i32, i32) {
    %c0_i32 = arith.constant 0 : i32
    %c0_i32_0 = arith.constant 0 : i32
    %c0_i32_1 = arith.constant 0 : i32
    return %c0_i32, %c0_i32_0 : i32, i32
  }
  func.func @transform_4(%arg0: i32, %arg1: i32) -> (i32, i32) {
    %c0_i32 = arith.constant 0 : i32
    %c0_i32_0 = arith.constant 0 : i32
    %c0_i32_1 = arith.constant 0 : i32
    return %c0_i32, %c0_i32_0 : i32, i32
  }
  func.func @transform_5(%arg0: i32, %arg1: i32) -> (i32, i32, i32) {
    %c0_i32 = arith.constant 0 : i32
    %c0_i32_0 = arith.constant 0 : i32
    return %arg0, %arg1, %c0_i32 : i32, i32, i32
  }
}

</mosaic_0001>

<bundles_post_ra>
// kernel: waveconv1d_forward.11
= control target key start
LH: loop header
LB: loop body
LE: loop exit
PB: predicated region body
PF: predicated region fallthrough
CT: control target
= control target key end

     0   :  { %s1041_s15 = smov 0   ;;  %s1043_s16 = smov 0   ;;  %s1245_s0 = inlined_call_operand.vmem [shape: f32[2,16,256], index: 0, kind: input, shape index: {}]   ;;  %s1246_s1 = inlined_call_operand.vmem [shape: f32[2,1,128], index: 1, kind: input, shape index: {}]   ;;  %s1247_s2 = inlined_call_operand.vmem [shape: f32[3,128,128], index: 2, kind: input, shape index: {}]   ;;  %s1248_s3 = inlined_call_operand.vmem [shape: f32[1,128], index: 3, kind: input, shape index: {}]   ;;  %s1249_s4 = inlined_call_operand.vmem [shape: f32[2,16,128], index: 4, kind: output, shape index: {}]  }
   0x1   :  { %s1045_s17 = smov 0  }
   0x2 LB: > { %s26_s18 = sadd.s32 1, %s1010_s16  ;;  %p667_p0 = scmp.ge.s32.totalorder %s1014_s17, 1  ;;  %s1014_s17 = sphi %s1045_s17, %s14_s17   ;;  %s1010_s16 = sphi %s1043_s16, %s1251_s16   ;;  %s1006_s15 = sphi %s1041_s15, %s1250_s15  }
   0x3   : > { %p28_p1 = scmp.ge.s32.totalorder %s26_s18, 2  ;;  %p192_p2 = scmp.lt.s32.totalorder %s1014_s17, 3 }
   0x5   : > { %s1253_s18 = smov (%p28_p1, %s26_s18), 0  ;;  %p193_p3 = pnand %p667_p0, %p192_p2 }
   0x6   : > { %v269_v0 = vld [vmem:[%s1247_s2] sm:$0xff] (!%p193_p3)  ;;  %v270_v1 = vld [vmem:[%s1247_s2 + $0x8] sm:$0xff] (!%p193_p3)  ;;  %v271_v2 = vld [vmem:[%s1247_s2 + $0x10] sm:$0xff] (!%p193_p3)  ;;  %p231_p4 = scmp.lt.s32.totalorder (!%p193_p3), %s1006_s15, 1  ;;  %vm262_vm0 = vcmask (!%p193_p3), 1040384  }
   0x7   : > { %196 = sbr.rel (%p193_p3) target bundleno = 294 (0x126), region = 36  ;;  %v900_v3 = vpack.c.bf16 (!%p193_p3), %v270_v1, %v269_v0  ;;  %v272_v4 = vld [vmem:[%s1247_s2 + $0x18] sm:$0xff] (!%p193_p3)  ;;  %v273_v6 = vld [vmem:[%s1247_s2 + $0x20] sm:$0xff] (!%p193_p3)  ;;  %v274_v7 = vld [vmem:[%s1247_s2 + $0x28] sm:$0xff] (!%p193_p3) }
   0x8   : > { %v904_v5 = vpack.c.bf16 (!%p193_p3), %v272_v4, %v271_v2  ;;  %v908_v8 = vpack.c.bf16 (!%p193_p3), %v274_v7, %v273_v6  ;;  %v275_v9 = vld [vmem:[%s1247_s2 + $0x30] sm:$0xff] (!%p193_p3)  ;;  %v672_v10 = vld [vmem:[%s1247_s2 + $0x80] sm:$0xff] (!%p193_p3)  ;;  %v673_v11 = vld [vmem:[%s1247_s2 + $0x88] sm:$0xff] (!%p193_p3) }
   0x9   : > { %901 = vmatprep.subr.bf16.mxu0 (!%p193_p3), %v900_v3  ;;  %v276_v12 = vld [vmem:[%s1247_s2 + $0x38] sm:$0xff] (!%p193_p3)  ;;  %v868_v13 = vpack.c.bf16 (!%p193_p3), %v673_v11, %v672_v10  ;;  %v674_v17 = vld [vmem:[%s1247_s2 + $0x90] sm:$0xff] (!%p193_p3)  ;;  %v676_v22 = vld [vmem:[%s1247_s2 + $0xa0] sm:$0xff] (!%p193_p3) }
   0xa   : > { %903 = vmatpush3.bf16.msra.mxu0 (!%p193_p3), %v900_v3  ;;  %v675_v18 = vld [vmem:[%s1247_s2 + $0x98] sm:$0xff] (!%p193_p3)  ;;  %v912_v19 = vpack.c.bf16 (!%p193_p3), %v276_v12, %v275_v9  ;;  %v677_v23 = vld [vmem:[%s1247_s2 + $0xa8] sm:$0xff] (!%p193_p3)  ;;  %v277_v24 = vld [vmem:[%s1247_s2 + $0x40] sm:$0xff] (!%p193_p3) }
   0xb   : > { %905 = vmatprep.subr.bf16.mxu0 (!%p193_p3), %v904_v5  ;;  %869 = vmatprep.subr.bf16.mxu1 (!%p193_p3), %v868_v13  ;;  %v872_v21 = vpack.c.bf16 (!%p193_p3), %v675_v18, %v674_v17  ;;  %v278_v25 = vld [vmem:[%s1247_s2 + $0x48] sm:$0xff] (!%p193_p3)  ;;  %v876_v26 = vpack.c.bf16 (!%p193_p3), %v677_v23, %v676_v22  ;;  %v678_v27 = vld [vmem:[%s1247_s2 + $0xb0] sm:$0xff] (!%p193_p3)  ;;  %v679_v28 = vld [vmem:[%s1247_s2 + $0xb8] sm:$0xff] (!%p193_p3) }
   0xc   : > { %871 = vmatpush3.bf16.msra.mxu1 (!%p193_p3), %v868_v13  ;;  %v916_v29 = vpack.c.bf16 (!%p193_p3), %v278_v25, %v277_v24  ;;  %v279_v30 = vld [vmem:[%s1247_s2 + $0x50] sm:$0xff] (!%p193_p3)  ;;  %v280_v31 = vld [vmem:[%s1247_s2 + $0x58] sm:$0xff] (!%p193_p3)  ;;  %v880_v32 = vpack.c.bf16 (!%p193_p3), %v679_v28, %v678_v27  ;;  %v680_v33 = vld [vmem:[%s1247_s2 + $0xc0] sm:$0xff] (!%p193_p3) }
   0xd   : > { %873 = vmatprep.subr.bf16.mxu1 (!%p193_p3), %v872_v21  ;;  %v681_v34 = vld [vmem:[%s1247_s2 + $0xc8] sm:$0xff] (!%p193_p3)  ;;  %v920_v35 = vpack.c.bf16 (!%p193_p3), %v280_v31, %v279_v30  ;;  %v281_v37 = vld [vmem:[%s1247_s2 + $0x60] sm:$0xff] (!%p193_p3)  ;;  %v682_v40 = vld [vmem:[%s1247_s2 + $0xd0] sm:$0xff] (!%p193_p3) }
   0xe   : > { %s1255_s15 = smov (!%p231_p4, %s1006_s15), 1  ;;  %907 = vmatpush3.bf16.msra.mxu0 %v904_v5  ;;  %v282_v38 = vld [vmem:[%s1247_s2 + $0x68] sm:$0xff]  ;;  %v884_v39 = vpack.c.bf16 %v681_v34, %v680_v33  ;;  %v683_v41 = vld [vmem:[%s1247_s2 + $0xd8] sm:$0xff]  ;;  %v283_v43 = vld [vmem:[%s1247_s2 + $0x70] sm:$0xff] }
   0xf   : > { %s707_s5 = sshll.u32 %s1255_s15, 5  ;;  %s243_s8 = scalar_lea.vmem %s1246_s1, %s1255_s15  ;;  %909 = vmatprep.subr.bf16.mxu0 %v908_v8  ;;  %v924_v42 = vpack.c.bf16 %v282_v38, %v281_v37  ;;  %v284_v44 = vld [vmem:[%s1247_s2 + $0x78] sm:$0xff]  ;;  %v888_v45 = vpack.c.bf16 %v683_v41, %v682_v40  ;;  %v684_v46 = vld [vmem:[%s1247_s2 + $0xe0] sm:$0xff]  ;;  %v685_v47 = vld [vmem:[%s1247_s2 + $0xe8] sm:$0xff] }
  0x10   : > { %s1096_s21 = scalar_lea.vmem %s1245_s0, %s707_s5  ;;  %v259_v15 = vld [vmem:[%s243_s8] sm:$0x1]  ;;  %875 = vmatpush3.bf16.msra.mxu1 %v872_v21  ;;  %v928_v48 = vpack.c.bf16 %v284_v44, %v283_v43  ;;  %v689_v51 = vld [vmem:[%s1247_s2 + $0x108] sm:$0xff]  ;;  %v892_v52 = vpack.c.bf16 %v685_v47, %v684_v46  ;;  %v686_v53 = vld [vmem:[%s1247_s2 + $0xf0] sm:$0xff]  ;;  %s708_s12 = sshll.u32 %s1255_s15, 4 }
  0x11   : > { %v1102_v14 = vld [vmem:[%s1096_s21 + $0x8] sm:$0xff]  ;;  %877 = vmatprep.subr.bf16.mxu1 %v876_v26  ;;  %v254_v36 = vld [vmem:[%s1096_s21] sm:$0xff]  ;;  %v257_v49 = vld [vmem:[%s1096_s21 + $0x18] sm:$0xff]  ;;  %s252_s19 = scalar_lea.vmem %s1249_s4, %s708_s12 }
  0x12   : > { %v263_v16 = vrot.slane %v1102_v14, 7  ;;  %911 = vmatpush3.bf16.msra.mxu0 %v908_v8  ;;  %795 = vmatprep.mubr.f32.mxu1 %v254_v36  ;;  %v688_v50 = vld [vmem:[%s1247_s2 + $0x100] sm:$0xff]  ;;  %v687_v54 = vld [vmem:[%s1247_s2 + $0xf8] sm:$0xff]  ;;  %v264_v55 = vrot.slane %v257_v49, 7  ;;  %v690_v57 = vld [vmem:[%s1247_s2 + $0x110] sm:$0xff] }
  0x13   : > { %913 = vmatprep.subr.bf16.mxu0 %v912_v19  ;;  %v932_v56 = vpack.c.bf16 %v689_v51, %v688_v50  ;;  %v691_v58 = vld [vmem:[%s1247_s2 + $0x118] sm:$0xff]  ;;  %v896_v59 = vpack.c.bf16 %v687_v54, %v686_v53  ;;  %v692_v62 = vld [vmem:[%s1247_s2 + $0x120] sm:$0xff]  ;;  %v693_v63 = vld [vmem:[%s1247_s2 + $0x128] sm:$0xff] }
  0x14   : > { %v268_v20 = vsel %vm262_vm0, %v259_v15, %v263_v16  ;;  %879 = vmatpush3.bf16.msra.mxu1 %v876_v26  ;;  %v265_v60 = vsel %vm262_vm0, %v263_v16, %v264_v55  ;;  %v936_v61 = vpack.c.bf16 %v691_v58, %v690_v57  ;;  %v940_v0 = vpack.c.bf16 %v693_v63, %v692_v62  ;;  %v255_v1 = vld [vmem:[%s1096_s21 + $0x10] sm:$0xff]  ;;  %v695_v3 = vld [vmem:[%s1247_s2 + $0x138] sm:$0xff]  ;;  %v696_v5 = vld [vmem:[%s1247_s2 + $0x140] sm:$0xff] }
  0x15   : > { %830 = vmatprep.mubr.f32.mxu0 %v268_v20  ;;  %881 = vmatprep.subr.bf16.mxu1 %v880_v32  ;;  %v694_v2 = vld [vmem:[%s1247_s2 + $0x130] sm:$0xff]  ;;  %v697_v6 = vld [vmem:[%s1247_s2 + $0x148] sm:$0xff]  ;;  %v699_v9 = vld [vmem:[%s1247_s2 + $0x158] sm:$0xff] }
  0x16   : > { %915 = vmatpush3.bf16.msra.mxu0 %v912_v19  ;;  %v944_v4 = vpack.c.bf16 %v695_v3, %v694_v2  ;;  %v948_v7 = vpack.c.bf16 %v697_v6, %v696_v5  ;;  %v698_v8 = vld [vmem:[%s1247_s2 + $0x150] sm:$0xff]  ;;  %v700_v11 = vld [vmem:[%s1247_s2 + $0x160] sm:$0xff]  ;;  %v701_v12 = vld [vmem:[%s1247_s2 + $0x168] sm:$0xff] }
  0x17   : > { %917 = vmatprep.subr.bf16.mxu0 %v916_v29  ;;  %v952_v10 = vpack.c.bf16 %v699_v9, %v698_v8  ;;  %v956_v13 = vpack.c.bf16 %v701_v12, %v700_v11  ;;  %v703_v15 = vld [vmem:[%s1247_s2 + $0x178] sm:$0xff]  ;;  %v704_v20 = vld [vmem:[%s1248_s3] ss:$0 sm:$0xff] }
  0x18   : > { %883 = vmatpush3.bf16.msra.mxu1 %v880_v32 }
  0x19   : > { %885 = vmatprep.subr.bf16.mxu1 %v884_v39 }
  0x1a   : > { %919 = vmatpush3.bf16.msra.mxu0 %v916_v29 }
  0x1b   : > { %921 = vmatprep.subr.bf16.mxu0 %v920_v35 }
  0x1c   : > { %887 = vmatpush3.bf16.msra.mxu1 %v884_v39 }
  0x1d   : > { %889 = vmatprep.subr.bf16.mxu1 %v888_v45 }
  0x1e   : > { %923 = vmatpush3.bf16.msra.mxu0 %v920_v35 }
  0x1f   : > { %925 = vmatprep.subr.bf16.mxu0 %v924_v42 }
  0x20   : > { %891 = vmatpush3.bf16.msra.mxu1 %v888_v45 }
  0x21   : > { %893 = vmatprep.subr.bf16.mxu1 %v892_v52 }
  0x22   : > { %927 = vmatpush3.bf16.msra.mxu0 %v924_v42 }
  0x23   : > { %929 = vmatprep.subr.bf16.mxu0 %v928_v48 }
  0x24   : > { %895 = vmatpush3.bf16.msra.mxu1 %v892_v52 }
  0x25   : > { %897 = vmatprep.subr.bf16.mxu1 %v896_v59 }
  0x26   : > { %931 = vmatpush3.bf16.msra.mxu0 %v928_v48 }
  0x27   : > { %933 = vmatprep.subr.bf16.mxu0 %v932_v56 }
  0x28   : > { %899 = vmatpush3.bf16.msra.mxu1 %v896_v59 }
  0x29   : > { %831 = vmatmul.mubr.f32.vlgmr.msra.gmra.mrb[0].mxu0 %v265_v60 }
  0x2a   : > { %935 = vmatpush3.bf16.msra.mxu0 %v932_v56  ;;  %865 = vmatprep.mubr.f32.mxu0 %v1102_v14  ;;  %v702_v14 = vld [vmem:[%s1247_s2 + $0x170] sm:$0xff] }
  0x2b   : > { %937 = vmatprep.subr.bf16.mxu0 %v936_v61  ;;  %796 = vmatmul.mubr.f32.vlgmr.msra.gmra.mrb[0].mxu1 %v255_v1  ;;  %v960_v16 = vpack.c.bf16 %v703_v15, %v702_v14 }
  0x2e   : > { %939 = vmatpush3.bf16.msra.mxu0 %v936_v61 }
  0x2f   : > { %941 = vmatprep.subr.bf16.mxu0 %v940_v0 }
  0x32   : > { %943 = vmatpush3.bf16.msra.mxu0 %v940_v0 }
  0x33   : > { %945 = vmatprep.subr.bf16.mxu0 %v944_v4 }
  0x36   : > { %947 = vmatpush3.bf16.msra.mxu0 %v944_v4 }
  0x37   : > { %949 = vmatprep.subr.bf16.mxu0 %v948_v7 }
  0x3a   : > { %951 = vmatpush3.bf16.msra.mxu0 %v948_v7 }
  0x3b   : > { %953 = vmatprep.subr.bf16.mxu0 %v952_v10 }
  0x3e   : > { %955 = vmatpush3.bf16.msra.mxu0 %v952_v10 }
  0x3f   : > { %957 = vmatprep.subr.bf16.mxu0 %v956_v13 }
  0x42   : > { %959 = vmatpush3.bf16.msra.mxu0 %v956_v13 }
  0x43   : > { %961 = vmatprep.subr.bf16.mxu0 %v960_v16 }
  0x46   : > { %963 = vmatpush3.bf16.msra.mxu0 %v960_v16 }
  0x49   : > { %866 = vmatmul.mubr.f32.vlgmr.msra.gmra.mrb[0].mxu0 %v257_v49 }
  0xfe   : > { %v797_v17 = vpop.f32.mrb[0].mxu1 }
  0xff   : > { %v368_v18 = vpop.f32.mrb[1].mxu1 }
 0x11c   : > { %v867_v19 = vpop.f32.mrb[0].mxu0 }
 0x11d   : > { %v964_v21 = vadd.f32 %v867_v19, %v797_v17  ;;  %v535_v22 = vpop.f32.mrb[1].mxu0 }
 0x11e   : > { %v965_v23 = vadd.f32 %v535_v22, %v368_v18 }
 0x11f   : > { %v554_v24 = vadd.f32 %v964_v21, %v704_v20 }
 0x120   : > { %v553_v25 = vadd.f32 %v965_v23, %v704_v20 }
 0x121   : > { %vm556_vm1 = vcmp.ge.f32.partialorder %v554_v24, 0.0  ;;  %v558_v26 = vmul.f32 0.01, %v554_v24 }
 0x122   : > { %vm555_vm2 = vcmp.ge.f32.partialorder %v553_v25, 0.0  ;;  %v557_v27 = vmul.f32 0.01, %v553_v25 }
 0x123   : > { %v560_v28 = vsel %vm556_vm1, %v554_v24, %v558_v26 }
 0x124   : > { %562 = vst [vmem:[%s252_s19 + $0x8] sm:$0xff] %v560_v28  ;;  %v559_v29 = vsel %vm555_vm2, %v553_v25, %v557_v27 }
 0x125   : > { %561 = vst [vmem:[%s252_s19] sm:$0xff] %v559_v29 }
 0x126 PF: > { %s14_s17 = sadd.s32 1, %s1014_s17   ;;  %s1250_s15 = smov %s1010_s16 }
 0x127   : > { %p11_p5 = scmp.ge.s32.totalorder %s14_s17, 4   ;;  %s1251_s16 = smov %s1253_s18 }
 0x129   :  { %13 = sbr.rel (!%p11_p5) target bundleno = 2 (0x2), region = 72 }

// kernel: waveconv1d_forward.12
= control target key start
LH: loop header
LB: loop body
LE: loop exit
PB: predicated region body
PF: predicated region fallthrough
CT: control target
= control target key end

     0   :  { %s967_s15 = smov 0   ;;  %s969_s16 = smov 0   ;;  %s1189_s0 = inlined_call_operand.vmem [shape: f32[2,8,256], index: 0, kind: input, shape index: {}]   ;;  %s1190_s1 = inlined_call_operand.vmem [shape: f32[2,1,128], index: 1, kind: input, shape index: {}]   ;;  %s1191_s2 = inlined_call_operand.vmem [shape: f32[3,128,128], index: 2, kind: input, shape index: {}]   ;;  %s1192_s3 = inlined_call_operand.vmem [shape: f32[1,128], index: 3, kind: input, shape index: {}]   ;;  %s1193_s4 = inlined_call_operand.vmem [shape: f32[2,8,128], index: 4, kind: output, shape index: {}]  }
   0x1   :  { %s971_s17 = smov 0  }
   0x2 LB: > { %s26_s18 = sadd.s32 1, %s933_s16  ;;  %p620_p0 = scmp.ge.s32.totalorder %s937_s17, 1  ;;  %s937_s17 = sphi %s971_s17, %s14_s17   ;;  %s933_s16 = sphi %s969_s16, %s1195_s16   ;;  %s929_s15 = sphi %s967_s15, %s1194_s15  }
   0x3   : > { %p28_p1 = scmp.ge.s32.totalorder %s26_s18, 2  ;;  %p190_p2 = scmp.lt.s32.totalorder %s937_s17, 3 }
   0x5   : > { %s1197_s18 = smov (%p28_p1, %s26_s18), 0  ;;  %p191_p3 = pnand %p620_p0, %p190_p2 }
   0x6   : > { %v624_v0 = vld [vmem:[%s1191_s2 + $0x80] sm:$0xff] (!%p191_p3)  ;;  %v625_v1 = vld [vmem:[%s1191_s2 + $0x88] sm:$0xff] (!%p191_p3)  ;;  %v939_v3 = vmov (!%p191_p3), 0.0|0.0   ;;  %v626_v6 = vld [vmem:[%s1191_s2 + $0x90] sm:$0xff] (!%p191_p3)  ;;  %vm940_vm0 = vmmov (!%p191_p3), 0   ;;  %v941_v11 = vmov (!%p191_p3), 0.0  }
   0x7   : > { %194 = sbr.rel (%p191_p3) target bundleno = 292 (0x124), region = 36  ;;  %v253_v2 = vld [vmem:[%s1191_s2] sm:$0xff] (!%p191_p3)  ;;  %816 = vmatprep.subr.bf16.mxu0 (!%p191_p3), %v939_v3  ;;  %v817_v4 = vpack.c.bf16 (!%p191_p3), %v625_v1, %v624_v0  ;;  %840 = vmatprep.subr.bf16.mxu1 (!%p191_p3), %v939_v3  ;;  %v254_v5 = vld [vmem:[%s1191_s2 + $0x8] sm:$0xff] (!%p191_p3)  ;;  %v627_v7 = vld [vmem:[%s1191_s2 + $0x98] sm:$0xff] (!%p191_p3)  ;;  %p225_p4 = scmp.lt.s32.totalorder (!%p191_p3), %s929_s15, 1  ;;  %vm251_vm1 = vcmask (!%p191_p3), 1040384  }
   0x8   : > { %v841_v8 = vpack.c.bf16 (!%p191_p3), %v254_v5, %v253_v2  ;;  %v255_v9 = vld [vmem:[%s1191_s2 + $0x10] sm:$0xff] (!%p191_p3)  ;;  %v256_v10 = vld [vmem:[%s1191_s2 + $0x18] sm:$0xff] (!%p191_p3)  ;;  %743 = vmatprep.mubr.msk.f32.mxu0 (!%p191_p3), %vm940_vm0, %v941_v11  ;;  %778 = vmatprep.mubr.msk.f32.mxu1 (!%p191_p3), %vm940_vm0, %v941_v11  ;;  %v820_v12 = vpack.c.bf16 (!%p191_p3), %v627_v7, %v626_v6  ;;  %v628_v14 = vld [vmem:[%s1191_s2 + $0xa0] sm:$0xff] (!%p191_p3) }
   0x9   : > { %818 = vmatpush3.bf16.msra.mxu0 (!%p191_p3), %v817_v4  ;;  %v844_v13 = vpack.c.bf16 (!%p191_p3), %v256_v10, %v255_v9  ;;  %v629_v15 = vld [vmem:[%s1191_s2 + $0xa8] sm:$0xff] (!%p191_p3)  ;;  %v257_v16 = vld [vmem:[%s1191_s2 + $0x20] sm:$0xff] (!%p191_p3)  ;;  %v630_v20 = vld [vmem:[%s1191_s2 + $0xb0] sm:$0xff] (!%p191_p3) }
   0xa   : > { %842 = vmatpush3.bf16.msra.mxu1 (!%p191_p3), %v841_v8  ;;  %819 = vmatprep.subr.bf16.mxu0 (!%p191_p3), %v939_v3  ;;  %v258_v17 = vld [vmem:[%s1191_s2 + $0x28] sm:$0xff] (!%p191_p3)  ;;  %v823_v18 = vpack.c.bf16 (!%p191_p3), %v629_v15, %v628_v14  ;;  %v631_v21 = vld [vmem:[%s1191_s2 + $0xb8] sm:$0xff] (!%p191_p3)  ;;  %v259_v22 = vld [vmem:[%s1191_s2 + $0x30] sm:$0xff] (!%p191_p3) }
   0xb   : > { %843 = vmatprep.subr.bf16.mxu1 (!%p191_p3), %v939_v3  ;;  %v847_v19 = vpack.c.bf16 (!%p191_p3), %v258_v17, %v257_v16  ;;  %v260_v23 = vld [vmem:[%s1191_s2 + $0x38] sm:$0xff] (!%p191_p3)  ;;  %v826_v24 = vpack.c.bf16 (!%p191_p3), %v631_v21, %v630_v20  ;;  %v632_v26 = vld [vmem:[%s1191_s2 + $0xc0] sm:$0xff] (!%p191_p3)  ;;  %v633_v27 = vld [vmem:[%s1191_s2 + $0xc8] sm:$0xff] (!%p191_p3) }
   0xc   : > { %v850_v25 = vpack.c.bf16 (!%p191_p3), %v260_v23, %v259_v22  ;;  %v261_v28 = vld [vmem:[%s1191_s2 + $0x40] sm:$0xff] (!%p191_p3)  ;;  %v262_v29 = vld [vmem:[%s1191_s2 + $0x48] sm:$0xff] (!%p191_p3)  ;;  %v829_v30 = vpack.c.bf16 (!%p191_p3), %v633_v27, %v632_v26  ;;  %v634_v32 = vld [vmem:[%s1191_s2 + $0xd0] sm:$0xff] (!%p191_p3) }
   0xd   : > { %821 = vmatpush3.bf16.msra.mxu0 (!%p191_p3), %v820_v12  ;;  %v853_v31 = vpack.c.bf16 (!%p191_p3), %v262_v29, %v261_v28  ;;  %v635_v33 = vld [vmem:[%s1191_s2 + $0xd8] sm:$0xff] (!%p191_p3)  ;;  %v263_v34 = vld [vmem:[%s1191_s2 + $0x50] sm:$0xff] (!%p191_p3)  ;;  %v636_v38 = vld [vmem:[%s1191_s2 + $0xe0] sm:$0xff] (!%p191_p3) }
   0xe   : > { %845 = vmatpush3.bf16.msra.mxu1 %v844_v13  ;;  %822 = vmatprep.subr.bf16.mxu0 %v939_v3  ;;  %s1199_s15 = smov (!%p225_p4, %s929_s15), 1  ;;  %v264_v35 = vld [vmem:[%s1191_s2 + $0x58] sm:$0xff]  ;;  %v832_v36 = vpack.c.bf16 %v635_v33, %v634_v32  ;;  %v637_v39 = vld [vmem:[%s1191_s2 + $0xe8] sm:$0xff]  ;;  %v265_v40 = vld [vmem:[%s1191_s2 + $0x60] sm:$0xff] }
   0xf   : > { %846 = vmatprep.subr.bf16.mxu1 %v939_v3  ;;  %s659_s23 = sshll.u32 %s1199_s15, 4  ;;  %v856_v37 = vpack.c.bf16 %v264_v35, %v263_v34  ;;  %v266_v41 = vld [vmem:[%s1191_s2 + $0x68] sm:$0xff]  ;;  %v835_v42 = vpack.c.bf16 %v637_v39, %v636_v38  ;;  %v638_v44 = vld [vmem:[%s1191_s2 + $0xf0] sm:$0xff]  ;;  %v639_v45 = vld [vmem:[%s1191_s2 + $0xf8] sm:$0xff]  ;;  %s623_s10 = sshll.u32 %s1199_s15, 3 }
  0x10   : > { %s233_s8 = scalar_lea.vmem %s1189_s0, %s659_s23  ;;  %v859_v43 = vpack.c.bf16 %v266_v41, %v265_v40  ;;  %v267_v46 = vld [vmem:[%s1191_s2 + $0x70] sm:$0xff]  ;;  %v268_v47 = vld [vmem:[%s1191_s2 + $0x78] sm:$0xff]  ;;  %s236_s23 = scalar_lea.vmem %s1190_s1, %s1199_s15  ;;  %v838_v49 = vpack.c.bf16 %v639_v45, %v638_v44  ;;  %v640_v52 = vld [vmem:[%s1191_s2 + $0x100] sm:$0xff] }
  0x11   : > { %824 = vmatpush3.bf16.msra.mxu0 %v823_v18  ;;  %v245_v48 = vld [vmem:[%s233_s8 + $0x8] sm:$0xff]  ;;  %v862_v50 = vpack.c.bf16 %v268_v47, %v267_v46  ;;  %v247_v54 = vld [vmem:[%s236_s23] sm:$0x1]  ;;  %v642_v58 = vld [vmem:[%s1191_s2 + $0x110] sm:$0xff]  ;;  %s243_s13 = scalar_lea.vmem %s1193_s4, %s623_s10 }
  0x12   : > { %848 = vmatpush3.bf16.msra.mxu1 %v847_v19  ;;  %825 = vmatprep.subr.bf16.mxu0 %v939_v3  ;;  %v249_v51 = vrot.slane %v245_v48, 7  ;;  %v641_v53 = vld [vmem:[%s1191_s2 + $0x108] sm:$0xff]  ;;  %v244_v55 = vld [vmem:[%s233_s8] sm:$0xff]  ;;  %v643_v59 = vld [vmem:[%s1191_s2 + $0x118] sm:$0xff] }
  0x13   : > { %849 = vmatprep.subr.bf16.mxu1 %v939_v3  ;;  %v865_v56 = vpack.c.bf16 %v641_v53, %v640_v52  ;;  %v868_v60 = vpack.c.bf16 %v643_v59, %v642_v58  ;;  %v644_v61 = vld [vmem:[%s1191_s2 + $0x120] sm:$0xff]  ;;  %v645_v62 = vld [vmem:[%s1191_s2 + $0x128] sm:$0xff]  ;;  %v646_v0 = vld [vmem:[%s1191_s2 + $0x130] sm:$0xff] }
  0x14   : > { %v252_v57 = vsel %vm251_vm1, %v247_v54, %v249_v51  ;;  %v871_v63 = vpack.c.bf16 %v645_v62, %v644_v61  ;;  %v647_v1 = vld [vmem:[%s1191_s2 + $0x138] sm:$0xff]  ;;  %v648_v4 = vld [vmem:[%s1191_s2 + $0x140] sm:$0xff]  ;;  %v649_v5 = vld [vmem:[%s1191_s2 + $0x148] sm:$0xff] }
  0x15   : > { %827 = vmatpush3.bf16.msra.mxu0 %v826_v24  ;;  %v874_v2 = vpack.c.bf16 %v647_v1, %v646_v0  ;;  %v877_v6 = vpack.c.bf16 %v649_v5, %v648_v4  ;;  %v650_v7 = vld [vmem:[%s1191_s2 + $0x150] sm:$0xff]  ;;  %v651_v8 = vld [vmem:[%s1191_s2 + $0x158] sm:$0xff]  ;;  %v652_v10 = vld [vmem:[%s1191_s2 + $0x160] sm:$0xff] }
  0x16   : > { %851 = vmatpush3.bf16.msra.mxu1 %v850_v25  ;;  %828 = vmatprep.subr.bf16.mxu0 %v939_v3  ;;  %v880_v9 = vpack.c.bf16 %v651_v8, %v650_v7  ;;  %v654_v13 = vld [vmem:[%s1191_s2 + $0x170] sm:$0xff]  ;;  %v655_v14 = vld [vmem:[%s1191_s2 + $0x178] sm:$0xff]  ;;  %v656_v22 = vld [vmem:[%s1192_s3] ss:$0 sm:$0xff] }
  0x17   : > { %852 = vmatprep.subr.bf16.mxu1 %v939_v3  ;;  %v886_v15 = vpack.c.bf16 %v655_v14, %v654_v13 }
  0x19   : > { %830 = vmatpush3.bf16.msra.mxu0 %v829_v30 }
  0x1a   : > { %854 = vmatpush3.bf16.msra.mxu1 %v853_v31  ;;  %831 = vmatprep.subr.bf16.mxu0 %v939_v3 }
  0x1b   : > { %855 = vmatprep.subr.bf16.mxu1 %v939_v3 }
  0x1d   : > { %833 = vmatpush3.bf16.msra.mxu0 %v832_v36 }
  0x1e   : > { %857 = vmatpush3.bf16.msra.mxu1 %v856_v37  ;;  %834 = vmatprep.subr.bf16.mxu0 %v939_v3 }
  0x1f   : > { %858 = vmatprep.subr.bf16.mxu1 %v939_v3 }
  0x21   : > { %836 = vmatpush3.bf16.msra.mxu0 %v835_v42 }
  0x22   : > { %860 = vmatpush3.bf16.msra.mxu1 %v859_v43  ;;  %837 = vmatprep.subr.bf16.mxu0 %v939_v3 }
  0x23   : > { %861 = vmatprep.subr.bf16.mxu1 %v939_v3 }
  0x25   : > { %839 = vmatpush3.bf16.msra.mxu0 %v838_v49 }
  0x26   : > { %863 = vmatpush3.bf16.msra.mxu1 %v862_v50  ;;  %864 = vmatprep.subr.bf16.mxu0 %v939_v3 }
  0x28   : > { %744 = vmatmul.mubr.f32.vlgmr.msra.gmra.mrb[0].mxu0 %v244_v55 }
  0x29   : > { %779 = vmatmul.mubr.f32.vlgmr.msra.gmra.mrb[0].mxu1 %v252_v57  ;;  %866 = vmatpush3.bf16.msra.mxu0 %v865_v56 }
  0x2a   : > { %867 = vmatprep.subr.bf16.mxu0 %v939_v3  ;;  %813 = vmatprep.mubr.msk.f32.mxu0 %vm940_vm0, %v941_v11  ;;  %v653_v11 = vld [vmem:[%s1191_s2 + $0x168] sm:$0xff] }
  0x2b   : > { %v883_v12 = vpack.c.bf16 %v653_v11, %v652_v10 }
  0x2d   : > { %869 = vmatpush3.bf16.msra.mxu0 %v868_v60 }
  0x2e   : > { %870 = vmatprep.subr.bf16.mxu0 %v939_v3 }
  0x31   : > { %872 = vmatpush3.bf16.msra.mxu0 %v871_v63 }
  0x32   : > { %873 = vmatprep.subr.bf16.mxu0 %v939_v3 }
  0x35   : > { %875 = vmatpush3.bf16.msra.mxu0 %v874_v2 }
  0x36   : > { %876 = vmatprep.subr.bf16.mxu0 %v939_v3 }
  0x39   : > { %878 = vmatpush3.bf16.msra.mxu0 %v877_v6 }
  0x3a   : > { %879 = vmatprep.subr.bf16.mxu0 %v939_v3 }
  0x3d   : > { %881 = vmatpush3.bf16.msra.mxu0 %v880_v9 }
  0x3e   : > { %882 = vmatprep.subr.bf16.mxu0 %v939_v3 }
  0x41   : > { %884 = vmatpush3.bf16.msra.mxu0 %v883_v12 }
  0x42   : > { %885 = vmatprep.subr.bf16.mxu0 %v939_v3 }
  0x45   : > { %887 = vmatpush3.bf16.msra.mxu0 %v886_v15 }
  0x48   : > { %814 = vmatmul.mubr.f32.vlgmr.msra.gmra.mrb[2].mxu0 %v245_v48 }
  0xfb   : > { %v352_v16 = vpop.f32.mrb[0].mxu0 }
  0xfc   : > { %v745_v17 = vpop.f32.mrb[1].mxu0  ;;  %v422_v18 = vpop.f32.mrb[0].mxu1 }
  0xfd   : > { %v423_v19 = vadd.f32 %v422_v18, %v352_v16  ;;  %v780_v20 = vpop.f32.mrb[1].mxu1 }
 0x11b   : > { %v509_v21 = vpop.f32.mrb[2].mxu0 }
 0x11c   : > { %v513_v23 = vadd.f32 %v509_v21, %v423_v19  ;;  %v815_v24 = vpop.f32.mrb[3].mxu0 }
 0x11e   : > { %v521_v25 = vadd.f32 %v656_v22, %v513_v23 }
 0x120   : > { %vm522_vm2 = vcmp.ge.f32.partialorder %v521_v25, 0.0  ;;  %v523_v3 = vmul.f32 0.01, %v521_v25 }
 0x122   : > { %v524_v26 = vsel %vm522_vm2, %v521_v25, %v523_v3 }
 0x123   : > { %525 = vst [vmem:[%s243_s13] sm:$0xff] %v524_v26 }
 0x124 PF: > { %s14_s17 = sadd.s32 1, %s937_s17   ;;  %s1194_s15 = smov %s933_s16 }
 0x125   : > { %p11_p5 = scmp.ge.s32.totalorder %s14_s17, 4   ;;  %s1195_s16 = smov %s1197_s18 }
 0x127   :  { %13 = sbr.rel (!%p11_p5) target bundleno = 2 (0x2), region = 72 }

// kernel: waveconv1d_forward.13
= control target key start
LH: loop header
LB: loop body
LE: loop exit
PB: predicated region body
PF: predicated region fallthrough
CT: control target
= control target key end

     0   :  { %s967_s15 = smov 0   ;;  %s969_s16 = smov 0   ;;  %s1189_s0 = inlined_call_operand.vmem [shape: f32[2,4,256], index: 0, kind: input, shape index: {}]   ;;  %s1190_s1 = inlined_call_operand.vmem [shape: f32[2,1,128], index: 1, kind: input, shape index: {}]   ;;  %s1191_s2 = inlined_call_operand.vmem [shape: f32[3,128,128], index: 2, kind: input, shape index: {}]   ;;  %s1192_s3 = inlined_call_operand.vmem [shape: f32[1,128], index: 3, kind: input, shape index: {}]   ;;  %s1193_s4 = inlined_call_operand.vmem [shape: f32[2,4,128], index: 4, kind: output, shape index: {}]  }
   0x1   :  { %s971_s17 = smov 0  }
   0x2 LB: > { %s26_s18 = sadd.s32 1, %s933_s16  ;;  %p620_p0 = scmp.ge.s32.totalorder %s937_s17, 1  ;;  %s937_s17 = sphi %s971_s17, %s14_s17   ;;  %s933_s16 = sphi %s969_s16, %s1195_s16   ;;  %s929_s15 = sphi %s967_s15, %s1194_s15  }
   0x3   : > { %p28_p1 = scmp.ge.s32.totalorder %s26_s18, 2  ;;  %p190_p2 = scmp.lt.s32.totalorder %s937_s17, 3 }
   0x5   : > { %s1197_s18 = smov (%p28_p1, %s26_s18), 0  ;;  %p191_p3 = pnand %p620_p0, %p190_p2 }
   0x6   : > { %v624_v0 = vld [vmem:[%s1191_s2 + $0x80] sm:$0xff] (!%p191_p3)  ;;  %v625_v1 = vld [vmem:[%s1191_s2 + $0x88] sm:$0xff] (!%p191_p3)  ;;  %v939_v3 = vmov (!%p191_p3), 0.0|0.0   ;;  %v626_v6 = vld [vmem:[%s1191_s2 + $0x90] sm:$0xff] (!%p191_p3)  ;;  %vm940_vm0 = vmmov (!%p191_p3), 0   ;;  %v941_v11 = vmov (!%p191_p3), 0.0  }
   0x7   : > { %194 = sbr.rel (%p191_p3) target bundleno = 292 (0x124), region = 36  ;;  %v253_v2 = vld [vmem:[%s1191_s2] sm:$0xff] (!%p191_p3)  ;;  %816 = vmatprep.subr.bf16.mxu0 (!%p191_p3), %v939_v3  ;;  %v817_v4 = vpack.c.bf16 (!%p191_p3), %v625_v1, %v624_v0  ;;  %840 = vmatprep.subr.bf16.mxu1 (!%p191_p3), %v939_v3  ;;  %v254_v5 = vld [vmem:[%s1191_s2 + $0x8] sm:$0xff] (!%p191_p3)  ;;  %v627_v7 = vld [vmem:[%s1191_s2 + $0x98] sm:$0xff] (!%p191_p3)  ;;  %p225_p4 = scmp.lt.s32.totalorder (!%p191_p3), %s929_s15, 1  ;;  %vm251_vm1 = vcmask (!%p191_p3), 1040384  }
   0x8   : > { %v841_v8 = vpack.c.bf16 (!%p191_p3), %v254_v5, %v253_v2  ;;  %v255_v9 = vld [vmem:[%s1191_s2 + $0x10] sm:$0xff] (!%p191_p3)  ;;  %v256_v10 = vld [vmem:[%s1191_s2 + $0x18] sm:$0xff] (!%p191_p3)  ;;  %743 = vmatprep.mubr.msk.f32.mxu0 (!%p191_p3), %vm940_vm0, %v941_v11  ;;  %778 = vmatprep.mubr.msk.f32.mxu1 (!%p191_p3), %vm940_vm0, %v941_v11  ;;  %v820_v12 = vpack.c.bf16 (!%p191_p3), %v627_v7, %v626_v6  ;;  %v628_v14 = vld [vmem:[%s1191_s2 + $0xa0] sm:$0xff] (!%p191_p3) }
   0x9   : > { %818 = vmatpush3.bf16.msra.mxu0 (!%p191_p3), %v817_v4  ;;  %v844_v13 = vpack.c.bf16 (!%p191_p3), %v256_v10, %v255_v9  ;;  %v629_v15 = vld [vmem:[%s1191_s2 + $0xa8] sm:$0xff] (!%p191_p3)  ;;  %v257_v16 = vld [vmem:[%s1191_s2 + $0x20] sm:$0xff] (!%p191_p3)  ;;  %v630_v20 = vld [vmem:[%s1191_s2 + $0xb0] sm:$0xff] (!%p191_p3) }
   0xa   : > { %842 = vmatpush3.bf16.msra.mxu1 (!%p191_p3), %v841_v8  ;;  %819 = vmatprep.subr.bf16.mxu0 (!%p191_p3), %v939_v3  ;;  %v258_v17 = vld [vmem:[%s1191_s2 + $0x28] sm:$0xff] (!%p191_p3)  ;;  %v823_v18 = vpack.c.bf16 (!%p191_p3), %v629_v15, %v628_v14  ;;  %v631_v21 = vld [vmem:[%s1191_s2 + $0xb8] sm:$0xff] (!%p191_p3)  ;;  %v259_v22 = vld [vmem:[%s1191_s2 + $0x30] sm:$0xff] (!%p191_p3) }
   0xb   : > { %843 = vmatprep.subr.bf16.mxu1 (!%p191_p3), %v939_v3  ;;  %v847_v19 = vpack.c.bf16 (!%p191_p3), %v258_v17, %v257_v16  ;;  %v260_v23 = vld [vmem:[%s1191_s2 + $0x38] sm:$0xff] (!%p191_p3)  ;;  %v826_v24 = vpack.c.bf16 (!%p191_p3), %v631_v21, %v630_v20  ;;  %v632_v26 = vld [vmem:[%s1191_s2 + $0xc0] sm:$0xff] (!%p191_p3)  ;;  %v633_v27 = vld [vmem:[%s1191_s2 + $0xc8] sm:$0xff] (!%p191_p3) }
   0xc   : > { %v850_v25 = vpack.c.bf16 (!%p191_p3), %v260_v23, %v259_v22  ;;  %v261_v28 = vld [vmem:[%s1191_s2 + $0x40] sm:$0xff] (!%p191_p3)  ;;  %v262_v29 = vld [vmem:[%s1191_s2 + $0x48] sm:$0xff] (!%p191_p3)  ;;  %v829_v30 = vpack.c.bf16 (!%p191_p3), %v633_v27, %v632_v26  ;;  %v634_v32 = vld [vmem:[%s1191_s2 + $0xd0] sm:$0xff] (!%p191_p3) }
   0xd   : > { %821 = vmatpush3.bf16.msra.mxu0 (!%p191_p3), %v820_v12  ;;  %v853_v31 = vpack.c.bf16 (!%p191_p3), %v262_v29, %v261_v28  ;;  %v635_v33 = vld [vmem:[%s1191_s2 + $0xd8] sm:$0xff] (!%p191_p3)  ;;  %v263_v34 = vld [vmem:[%s1191_s2 + $0x50] sm:$0xff] (!%p191_p3)  ;;  %v636_v38 = vld [vmem:[%s1191_s2 + $0xe0] sm:$0xff] (!%p191_p3) }
   0xe   : > { %845 = vmatpush3.bf16.msra.mxu1 %v844_v13  ;;  %822 = vmatprep.subr.bf16.mxu0 %v939_v3  ;;  %s1199_s15 = smov (!%p225_p4, %s929_s15), 1  ;;  %v264_v35 = vld [vmem:[%s1191_s2 + $0x58] sm:$0xff]  ;;  %v832_v36 = vpack.c.bf16 %v635_v33, %v634_v32  ;;  %v637_v39 = vld [vmem:[%s1191_s2 + $0xe8] sm:$0xff]  ;;  %v265_v40 = vld [vmem:[%s1191_s2 + $0x60] sm:$0xff] }
   0xf   : > { %846 = vmatprep.subr.bf16.mxu1 %v939_v3  ;;  %s659_s23 = sshll.u32 %s1199_s15, 3  ;;  %v856_v37 = vpack.c.bf16 %v264_v35, %v263_v34  ;;  %v266_v41 = vld [vmem:[%s1191_s2 + $0x68] sm:$0xff]  ;;  %v835_v42 = vpack.c.bf16 %v637_v39, %v636_v38  ;;  %v638_v44 = vld [vmem:[%s1191_s2 + $0xf0] sm:$0xff]  ;;  %v639_v45 = vld [vmem:[%s1191_s2 + $0xf8] sm:$0xff]  ;;  %s623_s10 = sshll.u32 %s1199_s15, 2 }
  0x10   : > { %s233_s8 = scalar_lea.vmem %s1189_s0, %s659_s23  ;;  %v859_v43 = vpack.c.bf16 %v266_v41, %v265_v40  ;;  %v267_v46 = vld [vmem:[%s1191_s2 + $0x70] sm:$0xff]  ;;  %v268_v47 = vld [vmem:[%s1191_s2 + $0x78] sm:$0xff]  ;;  %s236_s23 = scalar_lea.vmem %s1190_s1, %s1199_s15  ;;  %v838_v49 = vpack.c.bf16 %v639_v45, %v638_v44  ;;  %v640_v52 = vld [vmem:[%s1191_s2 + $0x100] sm:$0xff] }
  0x11   : > { %824 = vmatpush3.bf16.msra.mxu0 %v823_v18  ;;  %v245_v48 = vld [vmem:[%s233_s8 + $0x4] sm:$0xf]  ;;  %v862_v50 = vpack.c.bf16 %v268_v47, %v267_v46  ;;  %v641_v53 = vld [vmem:[%s1191_s2 + $0x108] sm:$0xff]  ;;  %v247_v54 = vld [vmem:[%s236_s23] sm:$0x1]  ;;  %s243_s13 = scalar_lea.vmem %s1193_s4, %s623_s10 }
  0x12   : > { %848 = vmatpush3.bf16.msra.mxu1 %v847_v19  ;;  %825 = vmatprep.subr.bf16.mxu0 %v939_v3  ;;  %v249_v51 = vrot.slane %v245_v48, 7  ;;  %v244_v55 = vld [vmem:[%s233_s8] sm:$0xf]  ;;  %v865_v56 = vpack.c.bf16 %v641_v53, %v640_v52  ;;  %v642_v58 = vld [vmem:[%s1191_s2 + $0x110] sm:$0xff]  ;;  %v643_v59 = vld [vmem:[%s1191_s2 + $0x118] sm:$0xff] }
  0x13   : > { %849 = vmatprep.subr.bf16.mxu1 %v939_v3  ;;  %v868_v60 = vpack.c.bf16 %v643_v59, %v642_v58  ;;  %v644_v61 = vld [vmem:[%s1191_s2 + $0x120] sm:$0xff]  ;;  %v645_v62 = vld [vmem:[%s1191_s2 + $0x128] sm:$0xff]  ;;  %v646_v0 = vld [vmem:[%s1191_s2 + $0x130] sm:$0xff] }
  0x14   : > { %v252_v57 = vsel %vm251_vm1, %v247_v54, %v249_v51  ;;  %v871_v63 = vpack.c.bf16 %v645_v62, %v644_v61  ;;  %v647_v1 = vld [vmem:[%s1191_s2 + $0x138] sm:$0xff]  ;;  %v648_v4 = vld [vmem:[%s1191_s2 + $0x140] sm:$0xff]  ;;  %v649_v5 = vld [vmem:[%s1191_s2 + $0x148] sm:$0xff] }
  0x15   : > { %827 = vmatpush3.bf16.msra.mxu0 %v826_v24  ;;  %v874_v2 = vpack.c.bf16 %v647_v1, %v646_v0  ;;  %v877_v6 = vpack.c.bf16 %v649_v5, %v648_v4  ;;  %v650_v7 = vld [vmem:[%s1191_s2 + $0x150] sm:$0xff]  ;;  %v651_v8 = vld [vmem:[%s1191_s2 + $0x158] sm:$0xff]  ;;  %v652_v10 = vld [vmem:[%s1191_s2 + $0x160] sm:$0xff] }
  0x16   : > { %851 = vmatpush3.bf16.msra.mxu1 %v850_v25  ;;  %828 = vmatprep.subr.bf16.mxu0 %v939_v3  ;;  %v880_v9 = vpack.c.bf16 %v651_v8, %v650_v7  ;;  %v654_v13 = vld [vmem:[%s1191_s2 + $0x170] sm:$0xff]  ;;  %v655_v14 = vld [vmem:[%s1191_s2 + $0x178] sm:$0xff]  ;;  %v656_v22 = vld [vmem:[%s1192_s3] ss:$0 sm:$0xff] }
  0x17   : > { %852 = vmatprep.subr.bf16.mxu1 %v939_v3  ;;  %v886_v15 = vpack.c.bf16 %v655_v14, %v654_v13 }
  0x19   : > { %830 = vmatpush3.bf16.msra.mxu0 %v829_v30 }
  0x1a   : > { %854 = vmatpush3.bf16.msra.mxu1 %v853_v31  ;;  %831 = vmatprep.subr.bf16.mxu0 %v939_v3 }
  0x1b   : > { %855 = vmatprep.subr.bf16.mxu1 %v939_v3 }
  0x1d   : > { %833 = vmatpush3.bf16.msra.mxu0 %v832_v36 }
  0x1e   : > { %857 = vmatpush3.bf16.msra.mxu1 %v856_v37  ;;  %834 = vmatprep.subr.bf16.mxu0 %v939_v3 }
  0x1f   : > { %858 = vmatprep.subr.bf16.mxu1 %v939_v3 }
  0x21   : > { %836 = vmatpush3.bf16.msra.mxu0 %v835_v42 }
  0x22   : > { %860 = vmatpush3.bf16.msra.mxu1 %v859_v43  ;;  %837 = vmatprep.subr.bf16.mxu0 %v939_v3 }
  0x23   : > { %861 = vmatprep.subr.bf16.mxu1 %v939_v3 }
  0x25   : > { %839 = vmatpush3.bf16.msra.mxu0 %v838_v49 }
  0x26   : > { %863 = vmatpush3.bf16.msra.mxu1 %v862_v50  ;;  %864 = vmatprep.subr.bf16.mxu0 %v939_v3 }
  0x28   : > { %744 = vmatmul.mubr.f32.vlgmr.msra.gmra.mrb[0].mxu0 %v244_v55 }
  0x29   : > { %779 = vmatmul.mubr.f32.vlgmr.msra.gmra.mrb[0].mxu1 %v252_v57  ;;  %866 = vmatpush3.bf16.msra.mxu0 %v865_v56 }
  0x2a   : > { %867 = vmatprep.subr.bf16.mxu0 %v939_v3  ;;  %813 = vmatprep.mubr.msk.f32.mxu0 %vm940_vm0, %v941_v11  ;;  %v653_v11 = vld [vmem:[%s1191_s2 + $0x168] sm:$0xff] }
  0x2b   : > { %v883_v12 = vpack.c.bf16 %v653_v11, %v652_v10 }
  0x2d   : > { %869 = vmatpush3.bf16.msra.mxu0 %v868_v60 }
  0x2e   : > { %870 = vmatprep.subr.bf16.mxu0 %v939_v3 }
  0x31   : > { %872 = vmatpush3.bf16.msra.mxu0 %v871_v63 }
  0x32   : > { %873 = vmatprep.subr.bf16.mxu0 %v939_v3 }
  0x35   : > { %875 = vmatpush3.bf16.msra.mxu0 %v874_v2 }
  0x36   : > { %876 = vmatprep.subr.bf16.mxu0 %v939_v3 }
  0x39   : > { %878 = vmatpush3.bf16.msra.mxu0 %v877_v6 }
  0x3a   : > { %879 = vmatprep.subr.bf16.mxu0 %v939_v3 }
  0x3d   : > { %881 = vmatpush3.bf16.msra.mxu0 %v880_v9 }
  0x3e   : > { %882 = vmatprep.subr.bf16.mxu0 %v939_v3 }
  0x41   : > { %884 = vmatpush3.bf16.msra.mxu0 %v883_v12 }
  0x42   : > { %885 = vmatprep.subr.bf16.mxu0 %v939_v3 }
  0x45   : > { %887 = vmatpush3.bf16.msra.mxu0 %v886_v15 }
  0x48   : > { %814 = vmatmul.mubr.f32.vlgmr.msra.gmra.mrb[2].mxu0 %v245_v48 }
  0xfb   : > { %v352_v16 = vpop.f32.mrb[0].mxu0 }
  0xfc   : > { %v745_v17 = vpop.f32.mrb[1].mxu0  ;;  %v422_v18 = vpop.f32.mrb[0].mxu1 }
  0xfd   : > { %v423_v19 = vadd.f32 %v422_v18, %v352_v16  ;;  %v780_v20 = vpop.f32.mrb[1].mxu1 }
 0x11b   : > { %v509_v21 = vpop.f32.mrb[2].mxu0 }
 0x11c   : > { %v513_v23 = vadd.f32 %v509_v21, %v423_v19  ;;  %v815_v24 = vpop.f32.mrb[3].mxu0 }
 0x11e   : > { %v521_v25 = vadd.f32 %v656_v22, %v513_v23 }
 0x120   : > { %vm522_vm2 = vcmp.ge.f32.partialorder %v521_v25, 0.0  ;;  %v523_v3 = vmul.f32 0.01, %v521_v25 }
 0x122   : > { %v524_v26 = vsel %vm522_vm2, %v521_v25, %v523_v3 }
 0x123   : > { %525 = vst [vmem:[%s243_s13] sm:$0xf] %v524_v26 }
 0x124 PF: > { %s14_s17 = sadd.s32 1, %s937_s17   ;;  %s1194_s15 = smov %s933_s16 }
 0x125   : > { %p11_p5 = scmp.ge.s32.totalorder %s14_s17, 4   ;;  %s1195_s16 = smov %s1197_s18 }
 0x127   :  { %13 = sbr.rel (!%p11_p5) target bundleno = 2 (0x2), region = 72 }

// kernel: waveconv1d_forward.10
= control target key start
LH: loop header
LB: loop body
LE: loop exit
PB: predicated region body
PF: predicated region fallthrough
CT: control target
= control target key end

     0   :  { %s589_s15 = smov 0   ;;  %s591_s16 = smov 0   ;;  %s655_s0 = inlined_call_operand.vmem [shape: f32[2,32,2], index: 0, kind: input, shape index: {}]   ;;  %s656_s1 = inlined_call_operand.vmem [shape: f32[2,1,1], index: 1, kind: input, shape index: {}]   ;;  %s657_s2 = inlined_call_operand.vmem [shape: f32[3,128], index: 2, kind: input, shape index: {}]   ;;  %s658_s3 = inlined_call_operand.vmem [shape: f32[1,128], index: 3, kind: input, shape index: {}]   ;;  %s659_s4 = inlined_call_operand.vmem [shape: f32[2,32,128], index: 4, kind: output, shape index: {}]  }
   0x1   :  { %s593_s17 = smov 0  }
   0x2 LB: > { %s26_s18 = sadd.s32 1, %s555_s16  ;;  %p491_p0 = scmp.ge.s32.totalorder %s559_s17, 1  ;;  %s559_s17 = sphi %s593_s17, %s14_s17   ;;  %s555_s16 = sphi %s591_s16, %s661_s16   ;;  %s551_s15 = sphi %s589_s15, %s660_s15  }
   0x3   : > { %p28_p1 = scmp.ge.s32.totalorder %s26_s18, 2  ;;  %p191_p2 = scmp.lt.s32.totalorder %s559_s17, 3 }
   0x5   : > { %s663_s18 = smov (%p28_p1, %s26_s18), 0  ;;  %p192_p3 = pnand %p491_p0, %p191_p2 }
   0x6   : > { %p229_p4 = scmp.lt.s32.totalorder (!%p192_p3), %s551_s15, 1  ;;  %v561_v0 = vmov (!%p192_p3), 0   ;;  %vm261_vm0 = vcmask (!%p192_p3), 1040384   ;;  %s562_s23 = smov (!%p192_p3), 127   ;;  %v563_v12 = vmov (!%p192_p3), 1  }
   0x7   : > { %195 = sbr.rel (%p192_p3) target bundleno = 290 (0x122), region = 36  ;;  %531 = vset.pattern.permute.xlu1 (!%p192_p3), %v561_v0  ;;  %532 = vset.pattern.permute.xlu0 (!%p192_p3), %v561_v0  ;;  %v497_v24 = vld [vmem:[%s657_s2 + $0x1] ss:$0 sm:$0xff] (!%p192_p3)  ;;  %v496_v25 = vld [vmem:[%s657_s2] ss:$0 sm:$0xff] (!%p192_p3) }
   0x8   : > { %v498_v26 = vld [vmem:[%s657_s2 + $0x2] ss:$0 sm:$0xff] (!%p192_p3)  ;;  %v499_v33 = vld [vmem:[%s658_s3] ss:$0 sm:$0xff] (!%p192_p3) }
   0xe   : > { %s665_s15 = smov (!%p229_p4, %s551_s15), 1 }
   0xf   : > { %s502_s19 = sshll.u32 %s665_s15, 5  ;;  %s240_s26 = scalar_lea.vmem %s656_s1, %s665_s15 }
  0x10   : > { %s236_s22 = scalar_lea.vmem %s655_s0, %s502_s19  ;;  %v256_v13 = vld [vmem:[%s240_s26] sm:$0x1]  ;;  %s640_s11 = scalar_lea.vmem %s659_s4, %s502_s19 }
  0x11   : > { %v251_v1 = vld [vmem:[%s236_s22] sm:$0xff]  ;;  %v252_v2 = vld [vmem:[%s236_s22 + $0x8] sm:$0xff]  ;;  %v253_v3 = vld [vmem:[%s236_s22 + $0x10] sm:$0xff] }
  0x12   : > { %v262_v4 = vrot.slane %v251_v1, 7  ;;  %v263_v5 = vrot.slane %v252_v2, 7  ;;  %v265_v6 = vrot.slane %v253_v3, 7  ;;  %v254_v7 = vld [vmem:[%s236_s22 + $0x18] sm:$0xff] }
  0x13   : > { %v267_v8 = vrot.slane %v254_v7, 7 }
  0x14   : > { %269 = vrot.lane.b32.xlu0 %v262_v4, %s562_s23  ;;  %v266_v9 = vsel %vm261_vm0, %v263_v5, %v265_v6  ;;  %v264_v10 = vsel %vm261_vm0, %v262_v4, %v263_v5 }
  0x15   : > { %273 = vrot.lane.b32.xlu1 %v266_v9, %s562_s23  ;;  %v268_v11 = vsel %vm261_vm0, %v265_v6, %v267_v8 }
  0x18   : > { %271 = vrot.lane.b32.xlu0 %v264_v10, %s562_s23 }
  0x19   : > { %275 = vrot.lane.b32.xlu1 %v268_v11, %s562_s23 }
  0x1c   : > { %311 = vperm.xlu0 %532, %v252_v2  }
  0x1d   : > { %307 = vperm.xlu1 %531, %v251_v1  }
  0x20   : > { %319 = vperm.xlu0 %532, %v254_v7  }
  0x21   : > { %315 = vperm.xlu1 %531, %v253_v3  }
  0x25   : > { %533 = vset.pattern.permute.xlu1 %v563_v12 }
  0x26   : > { %336 = vperm.xlu1 %533, %v251_v1  }
  0x2a   : > { %534 = vset.pattern.permute.xlu1 %v561_v0 }
  0x86   : > { %v270_v14 = vpop.permute.xlu0 %269 }
  0x87   : > { %v274_v15 = vpop.permute.xlu1 %273  ;;  %v278_v16 = vsel %vm261_vm0, %v256_v13, %v270_v14 }
  0x88   : > { %282 = vperm.xlu0 %532, %v278_v16  }
  0x8a   : > { %v272_v17 = vpop.permute.xlu0 %271 }
  0x8b   : > { %v276_v18 = vpop.permute.xlu1 %275  ;;  %286 = vperm.xlu1 %534, %v272_v17  }
  0x8c   : > { %294 = vperm.xlu0 %532, %v276_v18  }
  0x8f   : > { %290 = vperm.xlu1 %534, %v274_v15  }
  0x90   : > { %535 = vset.pattern.permute.xlu0 %v563_v12 }
  0x91   : > { %340 = vperm.xlu0 %535, %v252_v2  }
  0x93   : > { %536 = vset.pattern.permute.xlu1 %v563_v12 }
  0x94   : > { %344 = vperm.xlu1 %536, %v253_v3  }
  0x98   : > { %348 = vperm.xlu1 %536, %v254_v7  }
  0x9b   : > { %v312_v20 = vpop.permute.xlu0 %311 }
  0x9c   : > { %v308_v19 = vpop.permute.xlu1 %307  ;;  %v327_v39 = vmul.f32 %v497_v24, %v312_v20 }
  0x9d   : > { %v326_v28 = vmul.f32 %v497_v24, %v308_v19 }
  0x9f   : > { %v320_v22 = vpop.permute.xlu0 %319 }
  0xa0   : > { %v316_v21 = vpop.permute.xlu1 %315  ;;  %v329_v53 = vmul.f32 %v497_v24, %v320_v22 }
  0xa1   : > { %v328_v45 = vmul.f32 %v497_v24, %v316_v21 }
  0xa5   : > { %v337_v23 = vpop.permute.xlu1 %336 }
  0xa6   : > { %v355_v30 = vmul.f32 %v498_v26, %v337_v23 }
 0x107   : > { %v283_v27 = vpop.permute.xlu0 %282 }
 0x108   : > { %v301_v29 = vmul.f32 %v496_v25, %v283_v27 }
 0x10a   : > { %v330_v31 = vadd.f32 %v326_v28, %v301_v29  ;;  %v287_v32 = vpop.permute.xlu1 %286 }
 0x10b   : > { %v295_v34 = vpop.permute.xlu0 %294  ;;  %v302_v36 = vmul.f32 %v496_v25, %v287_v32 }
 0x10c   : > { %v359_v35 = vadd.f32 %v355_v30, %v330_v31  ;;  %v304_v49 = vmul.f32 %v496_v25, %v295_v34 }
 0x10d   : > { %v331_v43 = vadd.f32 %v327_v39, %v302_v36 }
 0x10e   : > { %v370_v37 = vadd.f32 %v499_v33, %v359_v35  ;;  %v291_v38 = vpop.permute.xlu1 %290  ;;  %v333_v57 = vadd.f32 %v329_v53, %v304_v49 }
 0x10f   : > { %v303_v41 = vmul.f32 %v496_v25, %v291_v38 }
 0x110   : > { %vm374_vm1 = vcmp.ge.f32.partialorder %v370_v37, 0.0  ;;  %v378_v40 = vmul.f32 0.01, %v370_v37  ;;  %v341_v42 = vpop.permute.xlu0 %340 }
 0x111   : > { %v356_v44 = vmul.f32 %v498_v26, %v341_v42  ;;  %v332_v50 = vadd.f32 %v328_v45, %v303_v41 }
 0x112   : > { %v382_v46 = vsel %vm374_vm1, %v370_v37, %v378_v40 }
 0x113   : > { %386 = vst [vmem:[%s640_s11] sm:$0xff] %v382_v46  ;;  %v360_v47 = vadd.f32 %v356_v44, %v331_v43  ;;  %v345_v48 = vpop.permute.xlu1 %344 }
 0x114   : > { %v357_v51 = vmul.f32 %v498_v26, %v345_v48 }
 0x115   : > { %v371_v52 = vadd.f32 %v499_v33, %v360_v47 }
 0x116   : > { %v361_v54 = vadd.f32 %v357_v51, %v332_v50 }
 0x117   : > { %vm375_vm2 = vcmp.ge.f32.partialorder %v371_v52, 0.0  ;;  %v379_v55 = vmul.f32 0.01, %v371_v52  ;;  %v349_v56 = vpop.permute.xlu1 %348 }
 0x118   : > { %v372_v58 = vadd.f32 %v499_v33, %v361_v54  ;;  %v358_v59 = vmul.f32 %v498_v26, %v349_v56 }
 0x119   : > { %v383_v60 = vsel %vm375_vm2, %v371_v52, %v379_v55 }
 0x11a   : > { %387 = vst [vmem:[%s640_s11 + $0x8] sm:$0xff] %v383_v60  ;;  %vm376_vm3 = vcmp.ge.f32.partialorder %v372_v58, 0.0  ;;  %v380_v61 = vmul.f32 0.01, %v372_v58  ;;  %v362_v62 = vadd.f32 %v358_v59, %v333_v57 }
 0x11c   : > { %v384_v63 = vsel %vm376_vm3, %v372_v58, %v380_v61  ;;  %v373_v0 = vadd.f32 %v499_v33, %v362_v62 }
 0x11d   : > { %388 = vst [vmem:[%s640_s11 + $0x10] sm:$0xff] %v384_v63 }
 0x11e   : > { %vm377_vm4 = vcmp.ge.f32.partialorder %v373_v0, 0.0  ;;  %v381_v1 = vmul.f32 0.01, %v373_v0 }
 0x120   : > { %v385_v2 = vsel %vm377_vm4, %v373_v0, %v381_v1 }
 0x121   : > { %389 = vst [vmem:[%s640_s11 + $0x18] sm:$0xff] %v385_v2 }
 0x122 PF: > { %s14_s17 = sadd.s32 1, %s559_s17   ;;  %s660_s15 = smov %s555_s16 }
 0x123   : > { %p11_p5 = scmp.ge.s32.totalorder %s14_s17, 4   ;;  %s661_s16 = smov %s663_s18 }
 0x125   :  { %13 = sbr.rel (!%p11_p5) target bundleno = 2 (0x2), region = 70 }

// kernel: waveconv1d_forward.14
= control target key start
LH: loop header
LB: loop body
LE: loop exit
PB: predicated region body
PF: predicated region fallthrough
CT: control target
= control target key end

     0   :  { %s967_s15 = smov 0   ;;  %s969_s16 = smov 0   ;;  %s1189_s0 = inlined_call_operand.vmem [shape: f32[2,2,256], index: 0, kind: input, shape index: {}]   ;;  %s1190_s1 = inlined_call_operand.vmem [shape: f32[2,1,128], index: 1, kind: input, shape index: {}]   ;;  %s1191_s2 = inlined_call_operand.vmem [shape: f32[3,128,128], index: 2, kind: input, shape index: {}]   ;;  %s1192_s3 = inlined_call_operand.vmem [shape: f32[1,128], index: 3, kind: input, shape index: {}]   ;;  %s1193_s4 = inlined_call_operand.vmem [shape: f32[2,2,128], index: 4, kind: output, shape index: {}]  }
   0x1   :  { %s971_s17 = smov 0  }
   0x2 LB: > { %s26_s18 = sadd.s32 1, %s933_s16  ;;  %p620_p0 = scmp.ge.s32.totalorder %s937_s17, 1  ;;  %s937_s17 = sphi %s971_s17, %s14_s17   ;;  %s933_s16 = sphi %s969_s16, %s1195_s16   ;;  %s929_s15 = sphi %s967_s15, %s1194_s15  }
   0x3   : > { %p28_p1 = scmp.ge.s32.totalorder %s26_s18, 2  ;;  %p190_p2 = scmp.lt.s32.totalorder %s937_s17, 3 }
   0x5   : > { %s1197_s18 = smov (%p28_p1, %s26_s18), 0  ;;  %p191_p3 = pnand %p620_p0, %p190_p2 }
   0x6   : > { %v624_v0 = vld [vmem:[%s1191_s2 + $0x80] sm:$0xff] (!%p191_p3)  ;;  %v625_v1 = vld [vmem:[%s1191_s2 + $0x88] sm:$0xff] (!%p191_p3)  ;;  %v939_v3 = vmov (!%p191_p3), 0.0|0.0   ;;  %v626_v6 = vld [vmem:[%s1191_s2 + $0x90] sm:$0xff] (!%p191_p3)  ;;  %vm940_vm0 = vmmov (!%p191_p3), 0   ;;  %v941_v11 = vmov (!%p191_p3), 0.0   ;;  %v249_v34 = vlaneseq (!%p191_p3) }
   0x7   : > { %194 = sbr.rel (%p191_p3) target bundleno = 289 (0x121), region = 36  ;;  %v256_v2 = vld [vmem:[%s1191_s2] sm:$0xff] (!%p191_p3)  ;;  %816 = vmatprep.subr.bf16.mxu0 (!%p191_p3), %v939_v3  ;;  %v817_v4 = vpack.c.bf16 (!%p191_p3), %v625_v1, %v624_v0  ;;  %840 = vmatprep.subr.bf16.mxu1 (!%p191_p3), %v939_v3  ;;  %v257_v5 = vld [vmem:[%s1191_s2 + $0x8] sm:$0xff] (!%p191_p3)  ;;  %v627_v7 = vld [vmem:[%s1191_s2 + $0x98] sm:$0xff] (!%p191_p3)  ;;  %p225_p4 = scmp.lt.s32.totalorder (!%p191_p3), %s929_s15, 1  ;;  %vm254_vm1 = vcmask (!%p191_p3), 1040384  }
   0x8   : > { %v841_v8 = vpack.c.bf16 (!%p191_p3), %v257_v5, %v256_v2  ;;  %v258_v9 = vld [vmem:[%s1191_s2 + $0x10] sm:$0xff] (!%p191_p3)  ;;  %v259_v10 = vld [vmem:[%s1191_s2 + $0x18] sm:$0xff] (!%p191_p3)  ;;  %743 = vmatprep.mubr.msk.f32.mxu0 (!%p191_p3), %vm940_vm0, %v941_v11  ;;  %778 = vmatprep.mubr.msk.f32.mxu1 (!%p191_p3), %vm940_vm0, %v941_v11  ;;  %v820_v12 = vpack.c.bf16 (!%p191_p3), %v627_v7, %v626_v6  ;;  %v628_v14 = vld [vmem:[%s1191_s2 + $0xa0] sm:$0xff] (!%p191_p3)  ;;  %v250_v41 = vshrl.u32 (!%p191_p3), %v249_v34, 7 }
   0x9   : > { %818 = vmatpush3.bf16.msra.mxu0 (!%p191_p3), %v817_v4  ;;  %v844_v13 = vpack.c.bf16 (!%p191_p3), %v259_v10, %v258_v9  ;;  %v629_v15 = vld [vmem:[%s1191_s2 + $0xa8] sm:$0xff] (!%p191_p3)  ;;  %v260_v16 = vld [vmem:[%s1191_s2 + $0x20] sm:$0xff] (!%p191_p3)  ;;  %v630_v20 = vld [vmem:[%s1191_s2 + $0xb0] sm:$0xff] (!%p191_p3) }
   0xa   : > { %842 = vmatpush3.bf16.msra.mxu1 (!%p191_p3), %v841_v8  ;;  %819 = vmatprep.subr.bf16.mxu0 (!%p191_p3), %v939_v3  ;;  %v261_v17 = vld [vmem:[%s1191_s2 + $0x28] sm:$0xff] (!%p191_p3)  ;;  %v823_v18 = vpack.c.bf16 (!%p191_p3), %v629_v15, %v628_v14  ;;  %v631_v21 = vld [vmem:[%s1191_s2 + $0xb8] sm:$0xff] (!%p191_p3)  ;;  %v262_v22 = vld [vmem:[%s1191_s2 + $0x30] sm:$0xff] (!%p191_p3)  ;;  %v251_v48 = vsub.s32 (!%p191_p3), 0, %v250_v41 }
   0xb   : > { %843 = vmatprep.subr.bf16.mxu1 (!%p191_p3), %v939_v3  ;;  %v847_v19 = vpack.c.bf16 (!%p191_p3), %v261_v17, %v260_v16  ;;  %v263_v23 = vld [vmem:[%s1191_s2 + $0x38] sm:$0xff] (!%p191_p3)  ;;  %v826_v24 = vpack.c.bf16 (!%p191_p3), %v631_v21, %v630_v20  ;;  %v632_v26 = vld [vmem:[%s1191_s2 + $0xc0] sm:$0xff] (!%p191_p3)  ;;  %v633_v27 = vld [vmem:[%s1191_s2 + $0xc8] sm:$0xff] (!%p191_p3) }
   0xc   : > { %v850_v25 = vpack.c.bf16 (!%p191_p3), %v263_v23, %v262_v22  ;;  %v264_v28 = vld [vmem:[%s1191_s2 + $0x40] sm:$0xff] (!%p191_p3)  ;;  %v265_v29 = vld [vmem:[%s1191_s2 + $0x48] sm:$0xff] (!%p191_p3)  ;;  %v829_v30 = vpack.c.bf16 (!%p191_p3), %v633_v27, %v632_v26  ;;  %v634_v32 = vld [vmem:[%s1191_s2 + $0xd0] sm:$0xff] (!%p191_p3) }
   0xd   : > { %821 = vmatpush3.bf16.msra.mxu0 (!%p191_p3), %v820_v12  ;;  %v853_v31 = vpack.c.bf16 (!%p191_p3), %v265_v29, %v264_v28  ;;  %v635_v33 = vld [vmem:[%s1191_s2 + $0xd8] sm:$0xff] (!%p191_p3)  ;;  %v266_v35 = vld [vmem:[%s1191_s2 + $0x50] sm:$0xff] (!%p191_p3)  ;;  %v636_v39 = vld [vmem:[%s1191_s2 + $0xe0] sm:$0xff] (!%p191_p3) }
   0xe   : > { %845 = vmatpush3.bf16.msra.mxu1 %v844_v13  ;;  %822 = vmatprep.subr.bf16.mxu0 %v939_v3  ;;  %s1199_s15 = smov (!%p225_p4, %s929_s15), 1  ;;  %v267_v36 = vld [vmem:[%s1191_s2 + $0x58] sm:$0xff]  ;;  %v832_v37 = vpack.c.bf16 %v635_v33, %v634_v32  ;;  %v637_v40 = vld [vmem:[%s1191_s2 + $0xe8] sm:$0xff]  ;;  %v268_v42 = vld [vmem:[%s1191_s2 + $0x60] sm:$0xff] }
   0xf   : > { %846 = vmatprep.subr.bf16.mxu1 %v939_v3  ;;  %s659_s23 = sshll.u32 %s1199_s15, 2  ;;  %v856_v38 = vpack.c.bf16 %v267_v36, %v266_v35  ;;  %v269_v43 = vld [vmem:[%s1191_s2 + $0x68] sm:$0xff]  ;;  %v835_v44 = vpack.c.bf16 %v637_v40, %v636_v39  ;;  %v638_v46 = vld [vmem:[%s1191_s2 + $0xf0] sm:$0xff]  ;;  %v639_v47 = vld [vmem:[%s1191_s2 + $0xf8] sm:$0xff] }
  0x10   : > { %s233_s8 = scalar_lea.vmem %s1189_s0, %s659_s23  ;;  %v859_v45 = vpack.c.bf16 %v269_v43, %v268_v42  ;;  %v270_v49 = vld [vmem:[%s1191_s2 + $0x70] sm:$0xff]  ;;  %v271_v50 = vld [vmem:[%s1191_s2 + $0x78] sm:$0xff]  ;;  %s236_s23 = scalar_lea.vmem %s1190_s1, %s1199_s15  ;;  %v838_v52 = vpack.c.bf16 %v639_v47, %v638_v46  ;;  %v640_v55 = vld [vmem:[%s1191_s2 + $0x100] sm:$0xff] }
  0x11   : > { %824 = vmatpush3.bf16.msra.mxu0 %v823_v18  ;;  %v245_v51 = vld [vmem:[%s233_s8 + $0x2] sm:$0x3]  ;;  %v862_v53 = vpack.c.bf16 %v271_v50, %v270_v49  ;;  %v641_v56 = vld [vmem:[%s1191_s2 + $0x108] sm:$0xff]  ;;  %v247_v57 = vld [vmem:[%s236_s23] sm:$0x1] }
  0x12   : > { %848 = vmatpush3.bf16.msra.mxu1 %v847_v19  ;;  %825 = vmatprep.subr.bf16.mxu0 %v939_v3  ;;  %v252_v54 = vrot.slane %v245_v51, %v251_v48  ;;  %v244_v58 = vld [vmem:[%s233_s8] sm:$0x3]  ;;  %v865_v59 = vpack.c.bf16 %v641_v56, %v640_v55  ;;  %v642_v61 = vld [vmem:[%s1191_s2 + $0x110] sm:$0xff]  ;;  %v643_v62 = vld [vmem:[%s1191_s2 + $0x118] sm:$0xff]  ;;  %s623_s8 = sshll.u32 %s1199_s15, 1 }
  0x13   : > { %849 = vmatprep.subr.bf16.mxu1 %v939_v3  ;;  %v868_v63 = vpack.c.bf16 %v643_v62, %v642_v61  ;;  %v644_v0 = vld [vmem:[%s1191_s2 + $0x120] sm:$0xff]  ;;  %v645_v1 = vld [vmem:[%s1191_s2 + $0x128] sm:$0xff]  ;;  %v646_v4 = vld [vmem:[%s1191_s2 + $0x130] sm:$0xff]  ;;  %s243_s13 = scalar_lea.vmem %s1193_s4, %s623_s8 }
  0x14   : > { %v255_v60 = vsel %vm254_vm1, %v247_v57, %v252_v54  ;;  %v871_v2 = vpack.c.bf16 %v645_v1, %v644_v0  ;;  %v647_v5 = vld [vmem:[%s1191_s2 + $0x138] sm:$0xff]  ;;  %v648_v7 = vld [vmem:[%s1191_s2 + $0x140] sm:$0xff]  ;;  %v649_v8 = vld [vmem:[%s1191_s2 + $0x148] sm:$0xff] }
  0x15   : > { %827 = vmatpush3.bf16.msra.mxu0 %v826_v24  ;;  %v874_v6 = vpack.c.bf16 %v647_v5, %v646_v4  ;;  %v877_v9 = vpack.c.bf16 %v649_v8, %v648_v7  ;;  %v650_v10 = vld [vmem:[%s1191_s2 + $0x150] sm:$0xff]  ;;  %v652_v13 = vld [vmem:[%s1191_s2 + $0x160] sm:$0xff]  ;;  %v653_v14 = vld [vmem:[%s1191_s2 + $0x168] sm:$0xff] }
  0x16   : > { %851 = vmatpush3.bf16.msra.mxu1 %v850_v25  ;;  %828 = vmatprep.subr.bf16.mxu0 %v939_v3  ;;  %v883_v15 = vpack.c.bf16 %v653_v14, %v652_v13  ;;  %v654_v16 = vld [vmem:[%s1191_s2 + $0x170] sm:$0xff]  ;;  %v655_v17 = vld [vmem:[%s1191_s2 + $0x178] sm:$0xff]  ;;  %v656_v25 = vld [vmem:[%s1192_s3] ss:$0 sm:$0xff] }
  0x17   : > { %852 = vmatprep.subr.bf16.mxu1 %v939_v3  ;;  %v886_v18 = vpack.c.bf16 %v655_v17, %v654_v16 }
  0x19   : > { %830 = vmatpush3.bf16.msra.mxu0 %v829_v30 }
  0x1a   : > { %854 = vmatpush3.bf16.msra.mxu1 %v853_v31  ;;  %831 = vmatprep.subr.bf16.mxu0 %v939_v3 }
  0x1b   : > { %855 = vmatprep.subr.bf16.mxu1 %v939_v3 }
  0x1d   : > { %833 = vmatpush3.bf16.msra.mxu0 %v832_v37 }
  0x1e   : > { %857 = vmatpush3.bf16.msra.mxu1 %v856_v38  ;;  %834 = vmatprep.subr.bf16.mxu0 %v939_v3 }
  0x1f   : > { %858 = vmatprep.subr.bf16.mxu1 %v939_v3 }
  0x21   : > { %836 = vmatpush3.bf16.msra.mxu0 %v835_v44 }
  0x22   : > { %860 = vmatpush3.bf16.msra.mxu1 %v859_v45  ;;  %837 = vmatprep.subr.bf16.mxu0 %v939_v3 }
  0x23   : > { %861 = vmatprep.subr.bf16.mxu1 %v939_v3 }
  0x25   : > { %839 = vmatpush3.bf16.msra.mxu0 %v838_v52 }
  0x26   : > { %863 = vmatpush3.bf16.msra.mxu1 %v862_v53  ;;  %864 = vmatprep.subr.bf16.mxu0 %v939_v3 }
  0x28   : > { %744 = vmatmul.mubr.f32.vlgmr.msra.gmra.mrb[0].mxu0 %v244_v58 }
  0x29   : > { %779 = vmatmul.mubr.f32.vlgmr.msra.gmra.mrb[0].mxu1 %v255_v60  ;;  %866 = vmatpush3.bf16.msra.mxu0 %v865_v59 }
  0x2a   : > { %867 = vmatprep.subr.bf16.mxu0 %v939_v3  ;;  %813 = vmatprep.mubr.msk.f32.mxu0 %vm940_vm0, %v941_v11  ;;  %v651_v11 = vld [vmem:[%s1191_s2 + $0x158] sm:$0xff] }
  0x2b   : > { %v880_v12 = vpack.c.bf16 %v651_v11, %v650_v10 }
  0x2d   : > { %869 = vmatpush3.bf16.msra.mxu0 %v868_v63 }
  0x2e   : > { %870 = vmatprep.subr.bf16.mxu0 %v939_v3 }
  0x31   : > { %872 = vmatpush3.bf16.msra.mxu0 %v871_v2 }
  0x32   : > { %873 = vmatprep.subr.bf16.mxu0 %v939_v3 }
  0x35   : > { %875 = vmatpush3.bf16.msra.mxu0 %v874_v6 }
  0x36   : > { %876 = vmatprep.subr.bf16.mxu0 %v939_v3 }
  0x39   : > { %878 = vmatpush3.bf16.msra.mxu0 %v877_v9 }
  0x3a   : > { %879 = vmatprep.subr.bf16.mxu0 %v939_v3 }
  0x3d   : > { %881 = vmatpush3.bf16.msra.mxu0 %v880_v12 }
  0x3e   : > { %882 = vmatprep.subr.bf16.mxu0 %v939_v3 }
  0x41   : > { %884 = vmatpush3.bf16.msra.mxu0 %v883_v15 }
  0x42   : > { %885 = vmatprep.subr.bf16.mxu0 %v939_v3 }
  0x45   : > { %887 = vmatpush3.bf16.msra.mxu0 %v886_v18 }
  0x48   : > { %814 = vmatmul.mubr.f32.vlgmr.msra.gmra.mrb[2].mxu0 %v245_v51 }
  0xfb   : > { %v355_v19 = vpop.f32.mrb[0].mxu0 }
  0xfc   : > { %v745_v20 = vpop.f32.mrb[1].mxu0  ;;  %v425_v21 = vpop.f32.mrb[0].mxu1 }
  0xfd   : > { %v426_v22 = vadd.f32 %v425_v21, %v355_v19  ;;  %v780_v23 = vpop.f32.mrb[1].mxu1 }
 0x11b   : > { %v512_v24 = vpop.f32.mrb[2].mxu0 }
 0x11c   : > { %v516_v26 = vadd.f32 %v512_v24, %v426_v22  ;;  %v815_v27 = vpop.f32.mrb[3].mxu0 }
 0x11e   : > { %v524_v3 = vadd.f32 %v656_v25, %v516_v26 }
 0x120   : > { %525 = vst [vmem:[%s243_s13] sm:$0x3] %v524_v3 }
 0x121 PF: > { %s14_s17 = sadd.s32 1, %s937_s17   ;;  %s1194_s15 = smov %s933_s16 }
 0x122   : > { %p11_p5 = scmp.ge.s32.totalorder %s14_s17, 4   ;;  %s1195_s16 = smov %s1197_s18 }
 0x124   :  { %13 = sbr.rel (!%p11_p5) target bundleno = 2 (0x2), region = 72 }

// kernel: waveconv1d_forward.16
= control target key start
LH: loop header
LB: loop body
LE: loop exit
PB: predicated region body
PF: predicated region fallthrough
CT: control target
= control target key end

     0   :  { %s1222_s18 = smov 0   ;;  %s1224_s19 = smov 0   ;;  %s1512_s0 = inlined_call_operand.vmem [shape: f32[2,4,128], index: 0, kind: input, shape index: {}]   ;;  %s1513_s1 = inlined_call_operand.vmem [shape: f32[2,1,128], index: 1, kind: input, shape index: {}, may-alias: {1,2}]   ;;  %s1514_s2 = inlined_call_operand.vmem [shape: f32[2,1,128], index: 2, kind: input, shape index: {}, may-alias: {1,2}]   ;;  %s1515_s3 = inlined_call_operand.vmem [shape: f32[4,128,128], index: 3, kind: input, shape index: {}]   ;;  %s1516_s4 = inlined_call_operand.vmem [shape: f32[1,128], index: 4, kind: input, shape index: {}]   ;;  %s1517_s5 = inlined_call_operand.vmem [shape: f32[2,4,256], index: 5, kind: output, shape index: {}]  }
   0x1   :  { %s1226_s20 = smov 0  }
   0x2 LB: > { %s27_s21 = sadd.s32 1, %s1183_s19  ;;  %p777_p0 = scmp.ge.s32.totalorder %s1187_s20, 1  ;;  %s1187_s20 = sphi %s1226_s20, %s15_s20   ;;  %s1183_s19 = sphi %s1224_s19, %s1519_s19   ;;  %s1179_s18 = sphi %s1222_s18, %s1518_s18  }
   0x3   : > { %p29_p1 = scmp.ge.s32.totalorder %s27_s21, 2  ;;  %p221_p2 = scmp.lt.s32.totalorder %s1187_s20, 3 }
   0x5   : > { %s1521_s21 = smov (%p29_p1, %s27_s21), 0  ;;  %p222_p3 = pnand %p777_p0, %p221_p2 }
   0x6   : > { %v798_v0 = vld [vmem:[%s1515_s3 + $0x180] sm:$0xff] (!%p222_p3)  ;;  %v799_v1 = vld [vmem:[%s1515_s3 + $0x188] sm:$0xff] (!%p222_p3)  ;;  %v1189_v3 = vmov (!%p222_p3), 0.0|0.0   ;;  %v800_v6 = vld [vmem:[%s1515_s3 + $0x190] sm:$0xff] (!%p222_p3)  ;;  %vm1190_vm0 = vmmov (!%p222_p3), 0   ;;  %v1191_v11 = vmov (!%p222_p3), 0.0  }
   0x7   : > { %225 = sbr.rel (%p222_p3) target bundleno = 293 (0x125), region = 40  ;;  %v782_v2 = vld [vmem:[%s1515_s3 + $0x80] sm:$0xff] (!%p222_p3)  ;;  %1042 = vmatprep.subr.bf16.mxu0 (!%p222_p3), %v1189_v3  ;;  %1066 = vmatprep.subr.bf16.mxu1 (!%p222_p3), %v1189_v3  ;;  %v1043_v4 = vpack.c.bf16 (!%p222_p3), %v799_v1, %v798_v0  ;;  %v783_v5 = vld [vmem:[%s1515_s3 + $0x88] sm:$0xff] (!%p222_p3)  ;;  %v801_v7 = vld [vmem:[%s1515_s3 + $0x198] sm:$0xff] (!%p222_p3)  ;;  %p261_p4 = scmp.lt.s32.totalorder (!%p222_p3), %s1179_s18, 1  ;;  %vm291_vm1 = vcmask (!%p222_p3), 1040384  }
   0x8   : > { %v1067_v8 = vpack.c.bf16 (!%p222_p3), %v783_v5, %v782_v2  ;;  %v784_v9 = vld [vmem:[%s1515_s3 + $0x90] sm:$0xff] (!%p222_p3)  ;;  %v785_v10 = vld [vmem:[%s1515_s3 + $0x98] sm:$0xff] (!%p222_p3)  ;;  %934 = vmatprep.mubr.msk.f32.mxu0 (!%p222_p3), %vm1190_vm0, %v1191_v11  ;;  %969 = vmatprep.mubr.msk.f32.mxu1 (!%p222_p3), %vm1190_vm0, %v1191_v11  ;;  %v1046_v12 = vpack.c.bf16 (!%p222_p3), %v801_v7, %v800_v6  ;;  %v802_v14 = vld [vmem:[%s1515_s3 + $0x1a0] sm:$0xff] (!%p222_p3)  ;;  %vm301_vm2 = vcmask (!%p222_p3), 1042432  }
   0x9   : > { %1044 = vmatpush3.bf16.msra.mxu0 (!%p222_p3), %v1043_v4  ;;  %v1070_v13 = vpack.c.bf16 (!%p222_p3), %v785_v10, %v784_v9  ;;  %v803_v15 = vld [vmem:[%s1515_s3 + $0x1a8] sm:$0xff] (!%p222_p3)  ;;  %v786_v16 = vld [vmem:[%s1515_s3 + $0xa0] sm:$0xff] (!%p222_p3)  ;;  %v804_v20 = vld [vmem:[%s1515_s3 + $0x1b0] sm:$0xff] (!%p222_p3) }
   0xa   : > { %1068 = vmatpush3.bf16.msra.mxu1 (!%p222_p3), %v1067_v8  ;;  %1045 = vmatprep.subr.bf16.mxu0 (!%p222_p3), %v1189_v3  ;;  %v787_v17 = vld [vmem:[%s1515_s3 + $0xa8] sm:$0xff] (!%p222_p3)  ;;  %v1049_v18 = vpack.c.bf16 (!%p222_p3), %v803_v15, %v802_v14  ;;  %v805_v21 = vld [vmem:[%s1515_s3 + $0x1b8] sm:$0xff] (!%p222_p3)  ;;  %v788_v22 = vld [vmem:[%s1515_s3 + $0xb0] sm:$0xff] (!%p222_p3) }
   0xb   : > { %1069 = vmatprep.subr.bf16.mxu1 (!%p222_p3), %v1189_v3  ;;  %v1073_v19 = vpack.c.bf16 (!%p222_p3), %v787_v17, %v786_v16  ;;  %v789_v23 = vld [vmem:[%s1515_s3 + $0xb8] sm:$0xff] (!%p222_p3)  ;;  %v1052_v24 = vpack.c.bf16 (!%p222_p3), %v805_v21, %v804_v20  ;;  %v806_v26 = vld [vmem:[%s1515_s3 + $0x1c0] sm:$0xff] (!%p222_p3)  ;;  %v807_v27 = vld [vmem:[%s1515_s3 + $0x1c8] sm:$0xff] (!%p222_p3) }
   0xc   : > { %v1076_v25 = vpack.c.bf16 (!%p222_p3), %v789_v23, %v788_v22  ;;  %v790_v28 = vld [vmem:[%s1515_s3 + $0xc0] sm:$0xff] (!%p222_p3)  ;;  %v791_v29 = vld [vmem:[%s1515_s3 + $0xc8] sm:$0xff] (!%p222_p3)  ;;  %v1055_v30 = vpack.c.bf16 (!%p222_p3), %v807_v27, %v806_v26  ;;  %v808_v32 = vld [vmem:[%s1515_s3 + $0x1d0] sm:$0xff] (!%p222_p3) }
   0xd   : > { %1047 = vmatpush3.bf16.msra.mxu0 (!%p222_p3), %v1046_v12  ;;  %v1079_v31 = vpack.c.bf16 (!%p222_p3), %v791_v29, %v790_v28  ;;  %v809_v33 = vld [vmem:[%s1515_s3 + $0x1d8] sm:$0xff] (!%p222_p3)  ;;  %v792_v34 = vld [vmem:[%s1515_s3 + $0xd0] sm:$0xff] (!%p222_p3)  ;;  %v810_v38 = vld [vmem:[%s1515_s3 + $0x1e0] sm:$0xff] (!%p222_p3) }
   0xe   : > { %1071 = vmatpush3.bf16.msra.mxu1 %v1070_v13  ;;  %1048 = vmatprep.subr.bf16.mxu0 %v1189_v3  ;;  %s1523_s18 = smov (!%p261_p4, %s1179_s18), 1  ;;  %v793_v35 = vld [vmem:[%s1515_s3 + $0xd8] sm:$0xff]  ;;  %v1058_v36 = vpack.c.bf16 %v809_v33, %v808_v32  ;;  %v811_v39 = vld [vmem:[%s1515_s3 + $0x1e8] sm:$0xff]  ;;  %v794_v40 = vld [vmem:[%s1515_s3 + $0xe0] sm:$0xff] }
   0xf   : > { %1072 = vmatprep.subr.bf16.mxu1 %v1189_v3  ;;  %s778_s28 = sshll.u32 %s1523_s18, 2  ;;  %v1082_v37 = vpack.c.bf16 %v793_v35, %v792_v34  ;;  %v795_v41 = vld [vmem:[%s1515_s3 + $0xe8] sm:$0xff]  ;;  %v1061_v42 = vpack.c.bf16 %v811_v39, %v810_v38  ;;  %v812_v44 = vld [vmem:[%s1515_s3 + $0x1f0] sm:$0xff]  ;;  %v813_v45 = vld [vmem:[%s1515_s3 + $0x1f8] sm:$0xff]  ;;  %s270_s29 = scalar_lea.vmem %s1513_s1, %s1523_s18 }
  0x10   : > { %s267_s14 = scalar_lea.vmem %s1512_s0, %s778_s28  ;;  %v1085_v43 = vpack.c.bf16 %v795_v41, %v794_v40  ;;  %v796_v47 = vld [vmem:[%s1515_s3 + $0xf0] sm:$0xff]  ;;  %v797_v48 = vld [vmem:[%s1515_s3 + $0xf8] sm:$0xff]  ;;  %v1064_v49 = vpack.c.bf16 %v813_v45, %v812_v44  ;;  %v285_v52 = vld [vmem:[%s270_s29] sm:$0x1]  ;;  %s273_s8 = scalar_lea.vmem %s1514_s2, %s1523_s18 }
  0x11   : > { %1050 = vmatpush3.bf16.msra.mxu0 %v1049_v18  ;;  %v1357_v46 = vld [vmem:[%s267_s14] sm:$0xf]  ;;  %v1088_v51 = vpack.c.bf16 %v797_v48, %v796_v47  ;;  %v816_v54 = vld [vmem:[%s1515_s3 + $0x108] sm:$0xff]  ;;  %v817_v60 = vld [vmem:[%s1515_s3 + $0x110] sm:$0xff]  ;;  %s833_s11 = sshll.u32 %s1523_s18, 3 }
  0x12   : > { %1074 = vmatpush3.bf16.msra.mxu1 %v1073_v19  ;;  %1051 = vmatprep.subr.bf16.mxu0 %v1189_v3  ;;  %v289_v50 = vrot.slane %v1357_v46, 7  ;;  %v815_v53 = vld [vmem:[%s1515_s3 + $0x100] sm:$0xff]  ;;  %v486_v56 = vld [vmem:[%s1515_s3 + $0x8] sm:$0xff]  ;;  %v818_v61 = vld [vmem:[%s1515_s3 + $0x118] sm:$0xff]  ;;  %v293_v39 = vrot.slane %v1357_v46, 1  ;;  %s282_s14 = scalar_lea.vmem %s1517_s5, %s833_s11 }
  0x13   : > { %1075 = vmatprep.subr.bf16.mxu1 %v1189_v3  ;;  %v485_v55 = vld [vmem:[%s1515_s3] sm:$0xff]  ;;  %v1091_v58 = vpack.c.bf16 %v816_v54, %v815_v53  ;;  %v487_v62 = vld [vmem:[%s1515_s3 + $0x10] sm:$0xff]  ;;  %v488_v63 = vld [vmem:[%s1515_s3 + $0x18] sm:$0xff]  ;;  %v1094_v0 = vpack.c.bf16 %v818_v61, %v817_v60 }
  0x14   : > { %v292_v57 = vsel %vm291_vm1, %v285_v52, %v289_v50  ;;  %v1115_v59 = vpack.c.bf16 %v486_v56, %v485_v55  ;;  %v1118_v1 = vpack.c.bf16 %v488_v63, %v487_v62  ;;  %v819_v2 = vld [vmem:[%s1515_s3 + $0x120] sm:$0xff]  ;;  %v820_v4 = vld [vmem:[%s1515_s3 + $0x128] sm:$0xff]  ;;  %v821_v9 = vld [vmem:[%s1515_s3 + $0x130] sm:$0xff] }
  0x15   : > { %1053 = vmatpush3.bf16.msra.mxu0 %v1052_v24  ;;  %v489_v5 = vld [vmem:[%s1515_s3 + $0x20] sm:$0xff]  ;;  %v490_v6 = vld [vmem:[%s1515_s3 + $0x28] sm:$0xff]  ;;  %v1097_v7 = vpack.c.bf16 %v820_v4, %v819_v2  ;;  %v822_v10 = vld [vmem:[%s1515_s3 + $0x138] sm:$0xff] }
  0x16   : > { %1077 = vmatpush3.bf16.msra.mxu1 %v1076_v25  ;;  %1054 = vmatprep.subr.bf16.mxu0 %v1189_v3  ;;  %v1121_v8 = vpack.c.bf16 %v490_v6, %v489_v5  ;;  %v492_v12 = vld [vmem:[%s1515_s3 + $0x38] sm:$0xff]  ;;  %v1100_v13 = vpack.c.bf16 %v822_v10, %v821_v9  ;;  %v823_v15 = vld [vmem:[%s1515_s3 + $0x140] sm:$0xff]  ;;  %v824_v16 = vld [vmem:[%s1515_s3 + $0x148] sm:$0xff] }
  0x17   : > { %1078 = vmatprep.subr.bf16.mxu1 %v1189_v3  ;;  %v493_v17 = vld [vmem:[%s1515_s3 + $0x40] sm:$0xff]  ;;  %v494_v18 = vld [vmem:[%s1515_s3 + $0x48] sm:$0xff]  ;;  %v1103_v19 = vpack.c.bf16 %v824_v16, %v823_v15  ;;  %v825_v21 = vld [vmem:[%s1515_s3 + $0x150] sm:$0xff] }
  0x18   : > { %v1127_v20 = vpack.c.bf16 %v494_v18, %v493_v17  ;;  %v826_v22 = vld [vmem:[%s1515_s3 + $0x158] sm:$0xff]  ;;  %v495_v23 = vld [vmem:[%s1515_s3 + $0x50] sm:$0xff]  ;;  %v827_v27 = vld [vmem:[%s1515_s3 + $0x160] sm:$0xff] }
  0x19   : > { %1056 = vmatpush3.bf16.msra.mxu0 %v1055_v30  ;;  %v496_v24 = vld [vmem:[%s1515_s3 + $0x58] sm:$0xff]  ;;  %v1106_v25 = vpack.c.bf16 %v826_v22, %v825_v21  ;;  %v828_v28 = vld [vmem:[%s1515_s3 + $0x168] sm:$0xff]  ;;  %v497_v29 = vld [vmem:[%s1515_s3 + $0x60] sm:$0xff] }
  0x1a   : > { %1080 = vmatpush3.bf16.msra.mxu1 %v1079_v31  ;;  %1057 = vmatprep.subr.bf16.mxu0 %v1189_v3  ;;  %v1130_v26 = vpack.c.bf16 %v496_v24, %v495_v23  ;;  %v498_v30 = vld [vmem:[%s1515_s3 + $0x68] sm:$0xff]  ;;  %v1109_v31 = vpack.c.bf16 %v828_v28, %v827_v27  ;;  %v829_v33 = vld [vmem:[%s1515_s3 + $0x170] sm:$0xff]  ;;  %v830_v34 = vld [vmem:[%s1515_s3 + $0x178] sm:$0xff] }
  0x1b   : > { %1081 = vmatprep.subr.bf16.mxu1 %v1189_v3  ;;  %v1133_v32 = vpack.c.bf16 %v498_v30, %v497_v29  ;;  %v499_v35 = vld [vmem:[%s1515_s3 + $0x70] sm:$0xff]  ;;  %v781_v40 = vld [vmem:[%s273_s8] ss:$0 sm:$0xff] }
  0x1c   : > { %v302_v41 = vsel %vm301_vm2, %v293_v39, %v781_v40  ;;  %v814_v44 = vld [vmem:[%s1516_s4] ss:$0 sm:$0xff] }
  0x1d   : > { %1059 = vmatpush3.bf16.msra.mxu0 %v1058_v36  ;;  %v500_v36 = vld [vmem:[%s1515_s3 + $0x78] sm:$0xff] }
  0x1e   : > { %1083 = vmatpush3.bf16.msra.mxu1 %v1082_v37  ;;  %1060 = vmatprep.subr.bf16.mxu0 %v1189_v3  ;;  %v1112_v37 = vpack.c.bf16 %v830_v34, %v829_v33  ;;  %v1136_v38 = vpack.c.bf16 %v500_v36, %v499_v35 }
  0x1f   : > { %1084 = vmatprep.subr.bf16.mxu1 %v1189_v3 }
  0x21   : > { %1062 = vmatpush3.bf16.msra.mxu0 %v1061_v42 }
  0x22   : > { %1086 = vmatpush3.bf16.msra.mxu1 %v1085_v43  ;;  %1063 = vmatprep.subr.bf16.mxu0 %v1189_v3 }
  0x23   : > { %1087 = vmatprep.subr.bf16.mxu1 %v1189_v3 }
  0x25   : > { %1065 = vmatpush3.bf16.msra.mxu0 %v1064_v49 }
  0x26   : > { %1089 = vmatpush3.bf16.msra.mxu1 %v1088_v51  ;;  %1090 = vmatprep.subr.bf16.mxu0 %v1189_v3 }
  0x27   : > { %1114 = vmatprep.subr.bf16.mxu1 %v1189_v3 }
  0x28   : > { %935 = vmatmul.mubr.f32.vlgmr.msra.gmra.mrb[0].mxu0 %v292_v57 }
  0x29   : > { %970 = vmatmul.mubr.f32.vlgmr.msra.gmra.mrb[0].mxu1 %v1357_v46  ;;  %1092 = vmatpush3.bf16.msra.mxu0 %v1091_v58 }
  0x2a   : > { %1116 = vmatpush3.bf16.msra.mxu1 %v1115_v59  ;;  %1093 = vmatprep.subr.bf16.mxu0 %v1189_v3 }
  0x2b   : > { %1117 = vmatprep.subr.bf16.mxu1 %v1189_v3  ;;  %1004 = vmatprep.mubr.msk.f32.mxu0 %vm1190_vm0, %v1191_v11 }
  0x2c   : > { %1039 = vmatprep.mubr.msk.f32.mxu1 %vm1190_vm0, %v1191_v11  ;;  %v491_v11 = vld [vmem:[%s1515_s3 + $0x30] sm:$0xff] }
  0x2d   : > { %1095 = vmatpush3.bf16.msra.mxu0 %v1094_v0  ;;  %v1124_v14 = vpack.c.bf16 %v492_v12, %v491_v11 }
  0x2e   : > { %1119 = vmatpush3.bf16.msra.mxu1 %v1118_v1  ;;  %1096 = vmatprep.subr.bf16.mxu0 %v1189_v3 }
  0x2f   : > { %1120 = vmatprep.subr.bf16.mxu1 %v1189_v3 }
  0x31   : > { %1098 = vmatpush3.bf16.msra.mxu0 %v1097_v7 }
  0x32   : > { %1122 = vmatpush3.bf16.msra.mxu1 %v1121_v8  ;;  %1099 = vmatprep.subr.bf16.mxu0 %v1189_v3 }
  0x33   : > { %1123 = vmatprep.subr.bf16.mxu1 %v1189_v3 }
  0x35   : > { %1101 = vmatpush3.bf16.msra.mxu0 %v1100_v13 }
  0x36   : > { %1125 = vmatpush3.bf16.msra.mxu1 %v1124_v14  ;;  %1102 = vmatprep.subr.bf16.mxu0 %v1189_v3 }
  0x37   : > { %1126 = vmatprep.subr.bf16.mxu1 %v1189_v3 }
  0x39   : > { %1104 = vmatpush3.bf16.msra.mxu0 %v1103_v19 }
  0x3a   : > { %1128 = vmatpush3.bf16.msra.mxu1 %v1127_v20  ;;  %1105 = vmatprep.subr.bf16.mxu0 %v1189_v3 }
  0x3b   : > { %1129 = vmatprep.subr.bf16.mxu1 %v1189_v3 }
  0x3d   : > { %1107 = vmatpush3.bf16.msra.mxu0 %v1106_v25 }
  0x3e   : > { %1131 = vmatpush3.bf16.msra.mxu1 %v1130_v26  ;;  %1108 = vmatprep.subr.bf16.mxu0 %v1189_v3 }
  0x3f   : > { %1132 = vmatprep.subr.bf16.mxu1 %v1189_v3 }
  0x41   : > { %1110 = vmatpush3.bf16.msra.mxu0 %v1109_v31 }
  0x42   : > { %1134 = vmatpush3.bf16.msra.mxu1 %v1133_v32  ;;  %1111 = vmatprep.subr.bf16.mxu0 %v1189_v3 }
  0x43   : > { %1135 = vmatprep.subr.bf16.mxu1 %v1189_v3 }
  0x45   : > { %1113 = vmatpush3.bf16.msra.mxu0 %v1112_v37 }
  0x46   : > { %1137 = vmatpush3.bf16.msra.mxu1 %v1136_v38 }
  0x48   : > { %1005 = vmatmul.mubr.f32.vlgmr.msra.gmra.mrb[2].mxu0 %v1357_v46 }
  0x49   : > { %1040 = vmatmul.mubr.f32.vlgmr.msra.gmra.mrb[2].mxu1 %v302_v41 }
  0xfb   : > { %v403_v42 = vpop.f32.mrb[0].mxu0 }
  0xfc   : > { %v473_v43 = vpop.f32.mrb[0].mxu1  ;;  %v936_v45 = vpop.f32.mrb[1].mxu0 }
  0xfd   : > { %v474_v47 = vadd.f32 %v473_v43, %v403_v42  ;;  %v971_v48 = vpop.f32.mrb[1].mxu1 }
  0xff   : > { %v484_v49 = vadd.f32 %v814_v44, %v474_v47 }
 0x101   : > { %vm659_vm3 = vcmp.ge.f32.partialorder %v484_v49, 0.0  ;;  %v660_v3 = vmul.f32 0.01, %v484_v49 }
 0x103   : > { %v661_v50 = vsel %vm659_vm3, %v484_v49, %v660_v3 }
 0x104   : > { %665 = vst [vmem:[%s282_s14] sm:$0xf] %v661_v50 }
 0x11b   : > { %v584_v46 = vpop.f32.mrb[2].mxu0 }
 0x11c   : > { %v654_v51 = vpop.f32.mrb[2].mxu1  ;;  %v1006_v52 = vpop.f32.mrb[3].mxu0 }
 0x11d   : > { %v655_v53 = vadd.f32 %v654_v51, %v584_v46  ;;  %v1041_v54 = vpop.f32.mrb[3].mxu1 }
 0x11f   : > { %v658_v55 = vadd.f32 %v814_v44, %v655_v53 }
 0x121   : > { %vm662_vm4 = vcmp.ge.f32.partialorder %v658_v55, 0.0  ;;  %v663_v56 = vmul.f32 0.01, %v658_v55 }
 0x123   : > { %v664_v57 = vsel %vm662_vm4, %v658_v55, %v663_v56 }
 0x124   : > { %666 = vst [vmem:[%s282_s14 + $0x4] sm:$0xf] %v664_v57 }
 0x125 PF: > { %s15_s20 = sadd.s32 1, %s1187_s20   ;;  %s1518_s18 = smov %s1183_s19 }
 0x126   : > { %p12_p5 = scmp.ge.s32.totalorder %s15_s20, 4   ;;  %s1519_s19 = smov %s1521_s21 }
 0x128   :  { %14 = sbr.rel (!%p12_p5) target bundleno = 2 (0x2), region = 81 }

// kernel: waveconv1d_forward.17
= control target key start
LH: loop header
LB: loop body
LE: loop exit
PB: predicated region body
PF: predicated region fallthrough
CT: control target
= control target key end

     0   :  { %s1222_s18 = smov 0   ;;  %s1224_s19 = smov 0   ;;  %s1512_s0 = inlined_call_operand.vmem [shape: f32[2,8,128], index: 0, kind: input, shape index: {}]   ;;  %s1513_s1 = inlined_call_operand.vmem [shape: f32[2,1,128], index: 1, kind: input, shape index: {}, may-alias: {1,2}]   ;;  %s1514_s2 = inlined_call_operand.vmem [shape: f32[2,1,128], index: 2, kind: input, shape index: {}, may-alias: {1,2}]   ;;  %s1515_s3 = inlined_call_operand.vmem [shape: f32[4,128,128], index: 3, kind: input, shape index: {}]   ;;  %s1516_s4 = inlined_call_operand.vmem [shape: f32[1,128], index: 4, kind: input, shape index: {}]   ;;  %s1517_s5 = inlined_call_operand.vmem [shape: f32[2,8,256], index: 5, kind: output, shape index: {}]  }
   0x1   :  { %s1226_s20 = smov 0  }
   0x2 LB: > { %s27_s21 = sadd.s32 1, %s1183_s19  ;;  %p777_p0 = scmp.ge.s32.totalorder %s1187_s20, 1  ;;  %s1187_s20 = sphi %s1226_s20, %s15_s20   ;;  %s1183_s19 = sphi %s1224_s19, %s1519_s19   ;;  %s1179_s18 = sphi %s1222_s18, %s1518_s18  }
   0x3   : > { %p29_p1 = scmp.ge.s32.totalorder %s27_s21, 2  ;;  %p221_p2 = scmp.lt.s32.totalorder %s1187_s20, 3 }
   0x5   : > { %s1521_s21 = smov (%p29_p1, %s27_s21), 0  ;;  %p222_p3 = pnand %p777_p0, %p221_p2 }
   0x6   : > { %v798_v0 = vld [vmem:[%s1515_s3 + $0x180] sm:$0xff] (!%p222_p3)  ;;  %v799_v1 = vld [vmem:[%s1515_s3 + $0x188] sm:$0xff] (!%p222_p3)  ;;  %v1189_v3 = vmov (!%p222_p3), 0.0|0.0   ;;  %v800_v6 = vld [vmem:[%s1515_s3 + $0x190] sm:$0xff] (!%p222_p3)  ;;  %vm1190_vm0 = vmmov (!%p222_p3), 0   ;;  %v1191_v11 = vmov (!%p222_p3), 0.0  }
   0x7   : > { %225 = sbr.rel (%p222_p3) target bundleno = 293 (0x125), region = 40  ;;  %v782_v2 = vld [vmem:[%s1515_s3 + $0x80] sm:$0xff] (!%p222_p3)  ;;  %1042 = vmatprep.subr.bf16.mxu0 (!%p222_p3), %v1189_v3  ;;  %1066 = vmatprep.subr.bf16.mxu1 (!%p222_p3), %v1189_v3  ;;  %v1043_v4 = vpack.c.bf16 (!%p222_p3), %v799_v1, %v798_v0  ;;  %v783_v5 = vld [vmem:[%s1515_s3 + $0x88] sm:$0xff] (!%p222_p3)  ;;  %v801_v7 = vld [vmem:[%s1515_s3 + $0x198] sm:$0xff] (!%p222_p3)  ;;  %p261_p4 = scmp.lt.s32.totalorder (!%p222_p3), %s1179_s18, 1  ;;  %vm291_vm1 = vcmask (!%p222_p3), 1040384  }
   0x8   : > { %v1067_v8 = vpack.c.bf16 (!%p222_p3), %v783_v5, %v782_v2  ;;  %v784_v9 = vld [vmem:[%s1515_s3 + $0x90] sm:$0xff] (!%p222_p3)  ;;  %v785_v10 = vld [vmem:[%s1515_s3 + $0x98] sm:$0xff] (!%p222_p3)  ;;  %934 = vmatprep.mubr.msk.f32.mxu0 (!%p222_p3), %vm1190_vm0, %v1191_v11  ;;  %969 = vmatprep.mubr.msk.f32.mxu1 (!%p222_p3), %vm1190_vm0, %v1191_v11  ;;  %v1046_v12 = vpack.c.bf16 (!%p222_p3), %v801_v7, %v800_v6  ;;  %v802_v14 = vld [vmem:[%s1515_s3 + $0x1a0] sm:$0xff] (!%p222_p3)  ;;  %vm301_vm2 = vcmask (!%p222_p3), 1046528  }
   0x9   : > { %1044 = vmatpush3.bf16.msra.mxu0 (!%p222_p3), %v1043_v4  ;;  %v1070_v13 = vpack.c.bf16 (!%p222_p3), %v785_v10, %v784_v9  ;;  %v803_v15 = vld [vmem:[%s1515_s3 + $0x1a8] sm:$0xff] (!%p222_p3)  ;;  %v786_v16 = vld [vmem:[%s1515_s3 + $0xa0] sm:$0xff] (!%p222_p3)  ;;  %v804_v20 = vld [vmem:[%s1515_s3 + $0x1b0] sm:$0xff] (!%p222_p3) }
   0xa   : > { %1068 = vmatpush3.bf16.msra.mxu1 (!%p222_p3), %v1067_v8  ;;  %1045 = vmatprep.subr.bf16.mxu0 (!%p222_p3), %v1189_v3  ;;  %v787_v17 = vld [vmem:[%s1515_s3 + $0xa8] sm:$0xff] (!%p222_p3)  ;;  %v1049_v18 = vpack.c.bf16 (!%p222_p3), %v803_v15, %v802_v14  ;;  %v805_v21 = vld [vmem:[%s1515_s3 + $0x1b8] sm:$0xff] (!%p222_p3)  ;;  %v788_v22 = vld [vmem:[%s1515_s3 + $0xb0] sm:$0xff] (!%p222_p3) }
   0xb   : > { %1069 = vmatprep.subr.bf16.mxu1 (!%p222_p3), %v1189_v3  ;;  %v1073_v19 = vpack.c.bf16 (!%p222_p3), %v787_v17, %v786_v16  ;;  %v789_v23 = vld [vmem:[%s1515_s3 + $0xb8] sm:$0xff] (!%p222_p3)  ;;  %v1052_v24 = vpack.c.bf16 (!%p222_p3), %v805_v21, %v804_v20  ;;  %v806_v26 = vld [vmem:[%s1515_s3 + $0x1c0] sm:$0xff] (!%p222_p3)  ;;  %v807_v27 = vld [vmem:[%s1515_s3 + $0x1c8] sm:$0xff] (!%p222_p3) }
   0xc   : > { %v1076_v25 = vpack.c.bf16 (!%p222_p3), %v789_v23, %v788_v22  ;;  %v790_v28 = vld [vmem:[%s1515_s3 + $0xc0] sm:$0xff] (!%p222_p3)  ;;  %v791_v29 = vld [vmem:[%s1515_s3 + $0xc8] sm:$0xff] (!%p222_p3)  ;;  %v1055_v30 = vpack.c.bf16 (!%p222_p3), %v807_v27, %v806_v26  ;;  %v808_v32 = vld [vmem:[%s1515_s3 + $0x1d0] sm:$0xff] (!%p222_p3) }
   0xd   : > { %1047 = vmatpush3.bf16.msra.mxu0 (!%p222_p3), %v1046_v12  ;;  %v1079_v31 = vpack.c.bf16 (!%p222_p3), %v791_v29, %v790_v28  ;;  %v809_v33 = vld [vmem:[%s1515_s3 + $0x1d8] sm:$0xff] (!%p222_p3)  ;;  %v792_v34 = vld [vmem:[%s1515_s3 + $0xd0] sm:$0xff] (!%p222_p3)  ;;  %v810_v38 = vld [vmem:[%s1515_s3 + $0x1e0] sm:$0xff] (!%p222_p3) }
   0xe   : > { %1071 = vmatpush3.bf16.msra.mxu1 %v1070_v13  ;;  %1048 = vmatprep.subr.bf16.mxu0 %v1189_v3  ;;  %s1523_s18 = smov (!%p261_p4, %s1179_s18), 1  ;;  %v793_v35 = vld [vmem:[%s1515_s3 + $0xd8] sm:$0xff]  ;;  %v1058_v36 = vpack.c.bf16 %v809_v33, %v808_v32  ;;  %v811_v39 = vld [vmem:[%s1515_s3 + $0x1e8] sm:$0xff]  ;;  %v794_v40 = vld [vmem:[%s1515_s3 + $0xe0] sm:$0xff] }
   0xf   : > { %1072 = vmatprep.subr.bf16.mxu1 %v1189_v3  ;;  %s778_s28 = sshll.u32 %s1523_s18, 3  ;;  %v1082_v37 = vpack.c.bf16 %v793_v35, %v792_v34  ;;  %v795_v41 = vld [vmem:[%s1515_s3 + $0xe8] sm:$0xff]  ;;  %v1061_v42 = vpack.c.bf16 %v811_v39, %v810_v38  ;;  %v812_v44 = vld [vmem:[%s1515_s3 + $0x1f0] sm:$0xff]  ;;  %v813_v45 = vld [vmem:[%s1515_s3 + $0x1f8] sm:$0xff]  ;;  %s270_s29 = scalar_lea.vmem %s1513_s1, %s1523_s18 }
  0x10   : > { %s267_s14 = scalar_lea.vmem %s1512_s0, %s778_s28  ;;  %v1085_v43 = vpack.c.bf16 %v795_v41, %v794_v40  ;;  %v796_v47 = vld [vmem:[%s1515_s3 + $0xf0] sm:$0xff]  ;;  %v797_v48 = vld [vmem:[%s1515_s3 + $0xf8] sm:$0xff]  ;;  %v1064_v49 = vpack.c.bf16 %v813_v45, %v812_v44  ;;  %v285_v52 = vld [vmem:[%s270_s29] sm:$0x1]  ;;  %s273_s8 = scalar_lea.vmem %s1514_s2, %s1523_s18 }
  0x11   : > { %1050 = vmatpush3.bf16.msra.mxu0 %v1049_v18  ;;  %v1357_v46 = vld [vmem:[%s267_s14] sm:$0xff]  ;;  %v1088_v51 = vpack.c.bf16 %v797_v48, %v796_v47  ;;  %v816_v54 = vld [vmem:[%s1515_s3 + $0x108] sm:$0xff]  ;;  %v817_v60 = vld [vmem:[%s1515_s3 + $0x110] sm:$0xff]  ;;  %s833_s11 = sshll.u32 %s1523_s18, 4 }
  0x12   : > { %1074 = vmatpush3.bf16.msra.mxu1 %v1073_v19  ;;  %1051 = vmatprep.subr.bf16.mxu0 %v1189_v3  ;;  %v289_v50 = vrot.slane %v1357_v46, 7  ;;  %v815_v53 = vld [vmem:[%s1515_s3 + $0x100] sm:$0xff]  ;;  %v486_v56 = vld [vmem:[%s1515_s3 + $0x8] sm:$0xff]  ;;  %v818_v61 = vld [vmem:[%s1515_s3 + $0x118] sm:$0xff]  ;;  %v293_v39 = vrot.slane %v1357_v46, 1  ;;  %s282_s14 = scalar_lea.vmem %s1517_s5, %s833_s11 }
  0x13   : > { %1075 = vmatprep.subr.bf16.mxu1 %v1189_v3  ;;  %v485_v55 = vld [vmem:[%s1515_s3] sm:$0xff]  ;;  %v1091_v58 = vpack.c.bf16 %v816_v54, %v815_v53  ;;  %v487_v62 = vld [vmem:[%s1515_s3 + $0x10] sm:$0xff]  ;;  %v488_v63 = vld [vmem:[%s1515_s3 + $0x18] sm:$0xff]  ;;  %v1094_v0 = vpack.c.bf16 %v818_v61, %v817_v60 }
  0x14   : > { %v292_v57 = vsel %vm291_vm1, %v285_v52, %v289_v50  ;;  %v1115_v59 = vpack.c.bf16 %v486_v56, %v485_v55  ;;  %v1118_v1 = vpack.c.bf16 %v488_v63, %v487_v62  ;;  %v819_v2 = vld [vmem:[%s1515_s3 + $0x120] sm:$0xff]  ;;  %v820_v4 = vld [vmem:[%s1515_s3 + $0x128] sm:$0xff]  ;;  %v821_v9 = vld [vmem:[%s1515_s3 + $0x130] sm:$0xff] }
  0x15   : > { %1053 = vmatpush3.bf16.msra.mxu0 %v1052_v24  ;;  %v489_v5 = vld [vmem:[%s1515_s3 + $0x20] sm:$0xff]  ;;  %v490_v6 = vld [vmem:[%s1515_s3 + $0x28] sm:$0xff]  ;;  %v1097_v7 = vpack.c.bf16 %v820_v4, %v819_v2  ;;  %v822_v10 = vld [vmem:[%s1515_s3 + $0x138] sm:$0xff] }
  0x16   : > { %1077 = vmatpush3.bf16.msra.mxu1 %v1076_v25  ;;  %1054 = vmatprep.subr.bf16.mxu0 %v1189_v3  ;;  %v1121_v8 = vpack.c.bf16 %v490_v6, %v489_v5  ;;  %v492_v12 = vld [vmem:[%s1515_s3 + $0x38] sm:$0xff]  ;;  %v1100_v13 = vpack.c.bf16 %v822_v10, %v821_v9  ;;  %v823_v15 = vld [vmem:[%s1515_s3 + $0x140] sm:$0xff]  ;;  %v824_v16 = vld [vmem:[%s1515_s3 + $0x148] sm:$0xff] }
  0x17   : > { %1078 = vmatprep.subr.bf16.mxu1 %v1189_v3  ;;  %v493_v17 = vld [vmem:[%s1515_s3 + $0x40] sm:$0xff]  ;;  %v494_v18 = vld [vmem:[%s1515_s3 + $0x48] sm:$0xff]  ;;  %v1103_v19 = vpack.c.bf16 %v824_v16, %v823_v15  ;;  %v825_v21 = vld [vmem:[%s1515_s3 + $0x150] sm:$0xff] }
  0x18   : > { %v1127_v20 = vpack.c.bf16 %v494_v18, %v493_v17  ;;  %v826_v22 = vld [vmem:[%s1515_s3 + $0x158] sm:$0xff]  ;;  %v495_v23 = vld [vmem:[%s1515_s3 + $0x50] sm:$0xff]  ;;  %v827_v27 = vld [vmem:[%s1515_s3 + $0x160] sm:$0xff] }
  0x19   : > { %1056 = vmatpush3.bf16.msra.mxu0 %v1055_v30  ;;  %v496_v24 = vld [vmem:[%s1515_s3 + $0x58] sm:$0xff]  ;;  %v1106_v25 = vpack.c.bf16 %v826_v22, %v825_v21  ;;  %v828_v28 = vld [vmem:[%s1515_s3 + $0x168] sm:$0xff]  ;;  %v497_v29 = vld [vmem:[%s1515_s3 + $0x60] sm:$0xff] }
  0x1a   : > { %1080 = vmatpush3.bf16.msra.mxu1 %v1079_v31  ;;  %1057 = vmatprep.subr.bf16.mxu0 %v1189_v3  ;;  %v1130_v26 = vpack.c.bf16 %v496_v24, %v495_v23  ;;  %v498_v30 = vld [vmem:[%s1515_s3 + $0x68] sm:$0xff]  ;;  %v1109_v31 = vpack.c.bf16 %v828_v28, %v827_v27  ;;  %v829_v33 = vld [vmem:[%s1515_s3 + $0x170] sm:$0xff]  ;;  %v830_v34 = vld [vmem:[%s1515_s3 + $0x178] sm:$0xff] }
  0x1b   : > { %1081 = vmatprep.subr.bf16.mxu1 %v1189_v3  ;;  %v1133_v32 = vpack.c.bf16 %v498_v30, %v497_v29  ;;  %v499_v35 = vld [vmem:[%s1515_s3 + $0x70] sm:$0xff]  ;;  %v781_v40 = vld [vmem:[%s273_s8] ss:$0 sm:$0xff] }
  0x1c   : > { %v302_v41 = vsel %vm301_vm2, %v293_v39, %v781_v40  ;;  %v814_v44 = vld [vmem:[%s1516_s4] ss:$0 sm:$0xff] }
  0x1d   : > { %1059 = vmatpush3.bf16.msra.mxu0 %v1058_v36  ;;  %v500_v36 = vld [vmem:[%s1515_s3 + $0x78] sm:$0xff] }
  0x1e   : > { %1083 = vmatpush3.bf16.msra.mxu1 %v1082_v37  ;;  %1060 = vmatprep.subr.bf16.mxu0 %v1189_v3  ;;  %v1112_v37 = vpack.c.bf16 %v830_v34, %v829_v33  ;;  %v1136_v38 = vpack.c.bf16 %v500_v36, %v499_v35 }
  0x1f   : > { %1084 = vmatprep.subr.bf16.mxu1 %v1189_v3 }
  0x21   : > { %1062 = vmatpush3.bf16.msra.mxu0 %v1061_v42 }
  0x22   : > { %1086 = vmatpush3.bf16.msra.mxu1 %v1085_v43  ;;  %1063 = vmatprep.subr.bf16.mxu0 %v1189_v3 }
  0x23   : > { %1087 = vmatprep.subr.bf16.mxu1 %v1189_v3 }
  0x25   : > { %1065 = vmatpush3.bf16.msra.mxu0 %v1064_v49 }
  0x26   : > { %1089 = vmatpush3.bf16.msra.mxu1 %v1088_v51  ;;  %1090 = vmatprep.subr.bf16.mxu0 %v1189_v3 }
  0x27   : > { %1114 = vmatprep.subr.bf16.mxu1 %v1189_v3 }
  0x28   : > { %935 = vmatmul.mubr.f32.vlgmr.msra.gmra.mrb[0].mxu0 %v292_v57 }
  0x29   : > { %970 = vmatmul.mubr.f32.vlgmr.msra.gmra.mrb[0].mxu1 %v1357_v46  ;;  %1092 = vmatpush3.bf16.msra.mxu0 %v1091_v58 }
  0x2a   : > { %1116 = vmatpush3.bf16.msra.mxu1 %v1115_v59  ;;  %1093 = vmatprep.subr.bf16.mxu0 %v1189_v3 }
  0x2b   : > { %1117 = vmatprep.subr.bf16.mxu1 %v1189_v3  ;;  %1004 = vmatprep.mubr.msk.f32.mxu0 %vm1190_vm0, %v1191_v11 }
  0x2c   : > { %1039 = vmatprep.mubr.msk.f32.mxu1 %vm1190_vm0, %v1191_v11  ;;  %v491_v11 = vld [vmem:[%s1515_s3 + $0x30] sm:$0xff] }
  0x2d   : > { %1095 = vmatpush3.bf16.msra.mxu0 %v1094_v0  ;;  %v1124_v14 = vpack.c.bf16 %v492_v12, %v491_v11 }
  0x2e   : > { %1119 = vmatpush3.bf16.msra.mxu1 %v1118_v1  ;;  %1096 = vmatprep.subr.bf16.mxu0 %v1189_v3 }
  0x2f   : > { %1120 = vmatprep.subr.bf16.mxu1 %v1189_v3 }
  0x31   : > { %1098 = vmatpush3.bf16.msra.mxu0 %v1097_v7 }
  0x32   : > { %1122 = vmatpush3.bf16.msra.mxu1 %v1121_v8  ;;  %1099 = vmatprep.subr.bf16.mxu0 %v1189_v3 }
  0x33   : > { %1123 = vmatprep.subr.bf16.mxu1 %v1189_v3 }
  0x35   : > { %1101 = vmatpush3.bf16.msra.mxu0 %v1100_v13 }
  0x36   : > { %1125 = vmatpush3.bf16.msra.mxu1 %v1124_v14  ;;  %1102 = vmatprep.subr.bf16.mxu0 %v1189_v3 }
  0x37   : > { %1126 = vmatprep.subr.bf16.mxu1 %v1189_v3 }
  0x39   : > { %1104 = vmatpush3.bf16.msra.mxu0 %v1103_v19 }
  0x3a   : > { %1128 = vmatpush3.bf16.msra.mxu1 %v1127_v20  ;;  %1105 = vmatprep.subr.bf16.mxu0 %v1189_v3 }
  0x3b   : > { %1129 = vmatprep.subr.bf16.mxu1 %v1189_v3 }
  0x3d   : > { %1107 = vmatpush3.bf16.msra.mxu0 %v1106_v25 }
  0x3e   : > { %1131 = vmatpush3.bf16.msra.mxu1 %v1130_v26  ;;  %1108 = vmatprep.subr.bf16.mxu0 %v1189_v3 }
  0x3f   : > { %1132 = vmatprep.subr.bf16.mxu1 %v1189_v3 }
  0x41   : > { %1110 = vmatpush3.bf16.msra.mxu0 %v1109_v31 }
  0x42   : > { %1134 = vmatpush3.bf16.msra.mxu1 %v1133_v32  ;;  %1111 = vmatprep.subr.bf16.mxu0 %v1189_v3 }
  0x43   : > { %1135 = vmatprep.subr.bf16.mxu1 %v1189_v3 }
  0x45   : > { %1113 = vmatpush3.bf16.msra.mxu0 %v1112_v37 }
  0x46   : > { %1137 = vmatpush3.bf16.msra.mxu1 %v1136_v38 }
  0x48   : > { %1005 = vmatmul.mubr.f32.vlgmr.msra.gmra.mrb[2].mxu0 %v1357_v46 }
  0x49   : > { %1040 = vmatmul.mubr.f32.vlgmr.msra.gmra.mrb[2].mxu1 %v302_v41 }
  0xfb   : > { %v403_v42 = vpop.f32.mrb[0].mxu0 }
  0xfc   : > { %v473_v43 = vpop.f32.mrb[0].mxu1  ;;  %v936_v45 = vpop.f32.mrb[1].mxu0 }
  0xfd   : > { %v474_v47 = vadd.f32 %v473_v43, %v403_v42  ;;  %v971_v48 = vpop.f32.mrb[1].mxu1 }
  0xff   : > { %v484_v49 = vadd.f32 %v814_v44, %v474_v47 }
 0x101   : > { %vm659_vm3 = vcmp.ge.f32.partialorder %v484_v49, 0.0  ;;  %v660_v3 = vmul.f32 0.01, %v484_v49 }
 0x103   : > { %v661_v50 = vsel %vm659_vm3, %v484_v49, %v660_v3 }
 0x104   : > { %665 = vst [vmem:[%s282_s14] sm:$0xff] %v661_v50 }
 0x11b   : > { %v584_v46 = vpop.f32.mrb[2].mxu0 }
 0x11c   : > { %v654_v51 = vpop.f32.mrb[2].mxu1  ;;  %v1006_v52 = vpop.f32.mrb[3].mxu0 }
 0x11d   : > { %v655_v53 = vadd.f32 %v654_v51, %v584_v46  ;;  %v1041_v54 = vpop.f32.mrb[3].mxu1 }
 0x11f   : > { %v658_v55 = vadd.f32 %v814_v44, %v655_v53 }
 0x121   : > { %vm662_vm4 = vcmp.ge.f32.partialorder %v658_v55, 0.0  ;;  %v663_v56 = vmul.f32 0.01, %v658_v55 }
 0x123   : > { %v664_v57 = vsel %vm662_vm4, %v658_v55, %v663_v56 }
 0x124   : > { %666 = vst [vmem:[%s282_s14 + $0x8] sm:$0xff] %v664_v57 }
 0x125 PF: > { %s15_s20 = sadd.s32 1, %s1187_s20   ;;  %s1518_s18 = smov %s1183_s19 }
 0x126   : > { %p12_p5 = scmp.ge.s32.totalorder %s15_s20, 4   ;;  %s1519_s19 = smov %s1521_s21 }
 0x128   :  { %14 = sbr.rel (!%p12_p5) target bundleno = 2 (0x2), region = 81 }

// kernel: waveconv1d_forward.15
= control target key start
LH: loop header
LB: loop body
LE: loop exit
PB: predicated region body
PF: predicated region fallthrough
CT: control target
= control target key end

     0   :  { %s1221_s18 = smov 0   ;;  %s1223_s19 = smov 0   ;;  %s1513_s0 = inlined_call_operand.vmem [shape: f32[2,2,128], index: 0, kind: input, shape index: {}]   ;;  %s1514_s1 = inlined_call_operand.vmem [shape: f32[2,1,128], index: 1, kind: input, shape index: {}, may-alias: {1,2}]   ;;  %s1515_s2 = inlined_call_operand.vmem [shape: f32[2,1,128], index: 2, kind: input, shape index: {}, may-alias: {1,2}]   ;;  %s1516_s3 = inlined_call_operand.vmem [shape: f32[4,128,128], index: 3, kind: input, shape index: {}]   ;;  %s1517_s4 = inlined_call_operand.vmem [shape: f32[1,128], index: 4, kind: input, shape index: {}]   ;;  %s1518_s5 = inlined_call_operand.vmem [shape: f32[2,2,256], index: 5, kind: output, shape index: {}]  }
   0x1   :  { %s1225_s20 = smov 0  }
   0x2 LB: > { %s27_s21 = sadd.s32 1, %s1182_s19  ;;  %p776_p0 = scmp.ge.s32.totalorder %s1186_s20, 1  ;;  %s1186_s20 = sphi %s1225_s20, %s15_s20   ;;  %s1182_s19 = sphi %s1223_s19, %s1520_s19   ;;  %s1178_s18 = sphi %s1221_s18, %s1519_s18  }
   0x3   : > { %p29_p1 = scmp.ge.s32.totalorder %s27_s21, 2  ;;  %p221_p2 = scmp.lt.s32.totalorder %s1186_s20, 3 }
   0x5   : > { %s1522_s21 = smov (%p29_p1, %s27_s21), 0  ;;  %p222_p3 = pnand %p776_p0, %p221_p2 }
   0x6   : > { %v797_v0 = vld [vmem:[%s1516_s3 + $0x180] sm:$0xff] (!%p222_p3)  ;;  %v798_v1 = vld [vmem:[%s1516_s3 + $0x188] sm:$0xff] (!%p222_p3)  ;;  %v1188_v3 = vmov (!%p222_p3), 0.0|0.0   ;;  %v799_v6 = vld [vmem:[%s1516_s3 + $0x190] sm:$0xff] (!%p222_p3)  ;;  %vm1189_vm0 = vmmov (!%p222_p3), 0   ;;  %v1190_v11 = vmov (!%p222_p3), 0.0  }
   0x7   : > { %225 = sbr.rel (%p222_p3) target bundleno = 293 (0x125), region = 40  ;;  %v781_v2 = vld [vmem:[%s1516_s3 + $0x80] sm:$0xff] (!%p222_p3)  ;;  %1041 = vmatprep.subr.bf16.mxu0 (!%p222_p3), %v1188_v3  ;;  %1065 = vmatprep.subr.bf16.mxu1 (!%p222_p3), %v1188_v3  ;;  %v1042_v4 = vpack.c.bf16 (!%p222_p3), %v798_v1, %v797_v0  ;;  %v782_v5 = vld [vmem:[%s1516_s3 + $0x88] sm:$0xff] (!%p222_p3)  ;;  %v800_v7 = vld [vmem:[%s1516_s3 + $0x198] sm:$0xff] (!%p222_p3)  ;;  %p261_p4 = scmp.lt.s32.totalorder (!%p222_p3), %s1178_s18, 1  ;;  %vm291_vm1 = vcmask (!%p222_p3), 1040384  }
   0x8   : > { %v1066_v8 = vpack.c.bf16 (!%p222_p3), %v782_v5, %v781_v2  ;;  %v783_v9 = vld [vmem:[%s1516_s3 + $0x90] sm:$0xff] (!%p222_p3)  ;;  %v784_v10 = vld [vmem:[%s1516_s3 + $0x98] sm:$0xff] (!%p222_p3)  ;;  %933 = vmatprep.mubr.msk.f32.mxu0 (!%p222_p3), %vm1189_vm0, %v1190_v11  ;;  %968 = vmatprep.mubr.msk.f32.mxu1 (!%p222_p3), %vm1189_vm0, %v1190_v11  ;;  %v1045_v12 = vpack.c.bf16 (!%p222_p3), %v800_v7, %v799_v6  ;;  %v801_v14 = vld [vmem:[%s1516_s3 + $0x1a0] sm:$0xff] (!%p222_p3) }
   0x9   : > { %1043 = vmatpush3.bf16.msra.mxu0 (!%p222_p3), %v1042_v4  ;;  %v1069_v13 = vpack.c.bf16 (!%p222_p3), %v784_v10, %v783_v9  ;;  %v802_v15 = vld [vmem:[%s1516_s3 + $0x1a8] sm:$0xff] (!%p222_p3)  ;;  %v785_v16 = vld [vmem:[%s1516_s3 + $0xa0] sm:$0xff] (!%p222_p3)  ;;  %v803_v20 = vld [vmem:[%s1516_s3 + $0x1b0] sm:$0xff] (!%p222_p3) }
   0xa   : > { %1067 = vmatpush3.bf16.msra.mxu1 (!%p222_p3), %v1066_v8  ;;  %1044 = vmatprep.subr.bf16.mxu0 (!%p222_p3), %v1188_v3  ;;  %v786_v17 = vld [vmem:[%s1516_s3 + $0xa8] sm:$0xff] (!%p222_p3)  ;;  %v1048_v18 = vpack.c.bf16 (!%p222_p3), %v802_v15, %v801_v14  ;;  %v804_v21 = vld [vmem:[%s1516_s3 + $0x1b8] sm:$0xff] (!%p222_p3)  ;;  %v787_v22 = vld [vmem:[%s1516_s3 + $0xb0] sm:$0xff] (!%p222_p3) }
   0xb   : > { %1068 = vmatprep.subr.bf16.mxu1 (!%p222_p3), %v1188_v3  ;;  %v1072_v19 = vpack.c.bf16 (!%p222_p3), %v786_v17, %v785_v16  ;;  %v788_v23 = vld [vmem:[%s1516_s3 + $0xb8] sm:$0xff] (!%p222_p3)  ;;  %v1051_v24 = vpack.c.bf16 (!%p222_p3), %v804_v21, %v803_v20  ;;  %v805_v26 = vld [vmem:[%s1516_s3 + $0x1c0] sm:$0xff] (!%p222_p3)  ;;  %v806_v27 = vld [vmem:[%s1516_s3 + $0x1c8] sm:$0xff] (!%p222_p3) }
   0xc   : > { %v1075_v25 = vpack.c.bf16 (!%p222_p3), %v788_v23, %v787_v22  ;;  %v789_v28 = vld [vmem:[%s1516_s3 + $0xc0] sm:$0xff] (!%p222_p3)  ;;  %v790_v29 = vld [vmem:[%s1516_s3 + $0xc8] sm:$0xff] (!%p222_p3)  ;;  %v1054_v30 = vpack.c.bf16 (!%p222_p3), %v806_v27, %v805_v26  ;;  %v807_v32 = vld [vmem:[%s1516_s3 + $0x1d0] sm:$0xff] (!%p222_p3) }
   0xd   : > { %1046 = vmatpush3.bf16.msra.mxu0 (!%p222_p3), %v1045_v12  ;;  %v1078_v31 = vpack.c.bf16 (!%p222_p3), %v790_v29, %v789_v28  ;;  %v808_v33 = vld [vmem:[%s1516_s3 + $0x1d8] sm:$0xff] (!%p222_p3)  ;;  %v791_v34 = vld [vmem:[%s1516_s3 + $0xd0] sm:$0xff] (!%p222_p3)  ;;  %v809_v38 = vld [vmem:[%s1516_s3 + $0x1e0] sm:$0xff] (!%p222_p3) }
   0xe   : > { %1070 = vmatpush3.bf16.msra.mxu1 %v1069_v13  ;;  %1047 = vmatprep.subr.bf16.mxu0 %v1188_v3  ;;  %s1524_s18 = smov (!%p261_p4, %s1178_s18), 1  ;;  %v792_v35 = vld [vmem:[%s1516_s3 + $0xd8] sm:$0xff]  ;;  %v1057_v36 = vpack.c.bf16 %v808_v33, %v807_v32  ;;  %v810_v39 = vld [vmem:[%s1516_s3 + $0x1e8] sm:$0xff]  ;;  %v793_v40 = vld [vmem:[%s1516_s3 + $0xe0] sm:$0xff] }
   0xf   : > { %1071 = vmatprep.subr.bf16.mxu1 %v1188_v3  ;;  %s777_s28 = sshll.u32 %s1524_s18, 1  ;;  %v1081_v37 = vpack.c.bf16 %v792_v35, %v791_v34  ;;  %v794_v41 = vld [vmem:[%s1516_s3 + $0xe8] sm:$0xff]  ;;  %v1060_v42 = vpack.c.bf16 %v810_v39, %v809_v38  ;;  %v811_v44 = vld [vmem:[%s1516_s3 + $0x1f0] sm:$0xff]  ;;  %v812_v45 = vld [vmem:[%s1516_s3 + $0x1f8] sm:$0xff]  ;;  %s270_s29 = scalar_lea.vmem %s1514_s1, %s1524_s18 }
  0x10   : > { %s267_s14 = scalar_lea.vmem %s1513_s0, %s777_s28  ;;  %v1084_v43 = vpack.c.bf16 %v794_v41, %v793_v40  ;;  %v795_v47 = vld [vmem:[%s1516_s3 + $0xf0] sm:$0xff]  ;;  %v796_v48 = vld [vmem:[%s1516_s3 + $0xf8] sm:$0xff]  ;;  %v1063_v49 = vpack.c.bf16 %v812_v45, %v811_v44  ;;  %v285_v52 = vld [vmem:[%s270_s29] sm:$0x1]  ;;  %s273_s8 = scalar_lea.vmem %s1515_s2, %s1524_s18 }
  0x11   : > { %1049 = vmatpush3.bf16.msra.mxu0 %v1048_v18  ;;  %v1356_v46 = vld [vmem:[%s267_s14] sm:$0x3]  ;;  %v1087_v51 = vpack.c.bf16 %v796_v48, %v795_v47  ;;  %v815_v54 = vld [vmem:[%s1516_s3 + $0x108] sm:$0xff]  ;;  %v816_v60 = vld [vmem:[%s1516_s3 + $0x110] sm:$0xff]  ;;  %s832_s11 = sshll.u32 %s1524_s18, 2 }
  0x12   : > { %1073 = vmatpush3.bf16.msra.mxu1 %v1072_v19  ;;  %1050 = vmatprep.subr.bf16.mxu0 %v1188_v3  ;;  %v289_v50 = vrot.slane %v1356_v46, 7  ;;  %v814_v53 = vld [vmem:[%s1516_s3 + $0x100] sm:$0xff]  ;;  %v485_v56 = vld [vmem:[%s1516_s3 + $0x8] sm:$0xff]  ;;  %v817_v61 = vld [vmem:[%s1516_s3 + $0x118] sm:$0xff]  ;;  %v293_v39 = vrot.slane %v1356_v46, 1  ;;  %s282_s14 = scalar_lea.vmem %s1518_s5, %s832_s11 }
  0x13   : > { %1074 = vmatprep.subr.bf16.mxu1 %v1188_v3  ;;  %v484_v55 = vld [vmem:[%s1516_s3] sm:$0xff]  ;;  %v1090_v58 = vpack.c.bf16 %v815_v54, %v814_v53  ;;  %v486_v62 = vld [vmem:[%s1516_s3 + $0x10] sm:$0xff]  ;;  %v487_v63 = vld [vmem:[%s1516_s3 + $0x18] sm:$0xff]  ;;  %v1093_v0 = vpack.c.bf16 %v817_v61, %v816_v60 }
  0x14   : > { %v292_v57 = vsel %vm291_vm1, %v285_v52, %v289_v50  ;;  %v1114_v59 = vpack.c.bf16 %v485_v56, %v484_v55  ;;  %v1117_v1 = vpack.c.bf16 %v487_v63, %v486_v62  ;;  %v818_v2 = vld [vmem:[%s1516_s3 + $0x120] sm:$0xff]  ;;  %v819_v4 = vld [vmem:[%s1516_s3 + $0x128] sm:$0xff]  ;;  %v820_v9 = vld [vmem:[%s1516_s3 + $0x130] sm:$0xff] }
  0x15   : > { %1052 = vmatpush3.bf16.msra.mxu0 %v1051_v24  ;;  %v488_v5 = vld [vmem:[%s1516_s3 + $0x20] sm:$0xff]  ;;  %v489_v6 = vld [vmem:[%s1516_s3 + $0x28] sm:$0xff]  ;;  %v1096_v7 = vpack.c.bf16 %v819_v4, %v818_v2  ;;  %v821_v10 = vld [vmem:[%s1516_s3 + $0x138] sm:$0xff] }
  0x16   : > { %1076 = vmatpush3.bf16.msra.mxu1 %v1075_v25  ;;  %1053 = vmatprep.subr.bf16.mxu0 %v1188_v3  ;;  %v1120_v8 = vpack.c.bf16 %v489_v6, %v488_v5  ;;  %v491_v12 = vld [vmem:[%s1516_s3 + $0x38] sm:$0xff]  ;;  %v1099_v13 = vpack.c.bf16 %v821_v10, %v820_v9  ;;  %v822_v15 = vld [vmem:[%s1516_s3 + $0x140] sm:$0xff]  ;;  %v823_v16 = vld [vmem:[%s1516_s3 + $0x148] sm:$0xff] }
  0x17   : > { %1077 = vmatprep.subr.bf16.mxu1 %v1188_v3  ;;  %v492_v17 = vld [vmem:[%s1516_s3 + $0x40] sm:$0xff]  ;;  %v493_v18 = vld [vmem:[%s1516_s3 + $0x48] sm:$0xff]  ;;  %v1102_v19 = vpack.c.bf16 %v823_v16, %v822_v15  ;;  %v824_v21 = vld [vmem:[%s1516_s3 + $0x150] sm:$0xff] }
  0x18   : > { %v1126_v20 = vpack.c.bf16 %v493_v18, %v492_v17  ;;  %v825_v22 = vld [vmem:[%s1516_s3 + $0x158] sm:$0xff]  ;;  %v494_v23 = vld [vmem:[%s1516_s3 + $0x50] sm:$0xff]  ;;  %v826_v27 = vld [vmem:[%s1516_s3 + $0x160] sm:$0xff] }
  0x19   : > { %1055 = vmatpush3.bf16.msra.mxu0 %v1054_v30  ;;  %v495_v24 = vld [vmem:[%s1516_s3 + $0x58] sm:$0xff]  ;;  %v1105_v25 = vpack.c.bf16 %v825_v22, %v824_v21  ;;  %v827_v28 = vld [vmem:[%s1516_s3 + $0x168] sm:$0xff]  ;;  %v496_v29 = vld [vmem:[%s1516_s3 + $0x60] sm:$0xff] }
  0x1a   : > { %1079 = vmatpush3.bf16.msra.mxu1 %v1078_v31  ;;  %1056 = vmatprep.subr.bf16.mxu0 %v1188_v3  ;;  %v1129_v26 = vpack.c.bf16 %v495_v24, %v494_v23  ;;  %v497_v30 = vld [vmem:[%s1516_s3 + $0x68] sm:$0xff]  ;;  %v1108_v31 = vpack.c.bf16 %v827_v28, %v826_v27  ;;  %v828_v33 = vld [vmem:[%s1516_s3 + $0x170] sm:$0xff]  ;;  %v829_v34 = vld [vmem:[%s1516_s3 + $0x178] sm:$0xff] }
  0x1b   : > { %1080 = vmatprep.subr.bf16.mxu1 %v1188_v3  ;;  %v1132_v32 = vpack.c.bf16 %v497_v30, %v496_v29  ;;  %v498_v35 = vld [vmem:[%s1516_s3 + $0x70] sm:$0xff]  ;;  %v780_v40 = vld [vmem:[%s273_s8] ss:$0 sm:$0xff] }
  0x1c   : > { %v301_v41 = vsel %vm291_vm1, %v293_v39, %v780_v40  ;;  %v813_v44 = vld [vmem:[%s1517_s4] ss:$0 sm:$0xff] }
  0x1d   : > { %1058 = vmatpush3.bf16.msra.mxu0 %v1057_v36  ;;  %v499_v36 = vld [vmem:[%s1516_s3 + $0x78] sm:$0xff] }
  0x1e   : > { %1082 = vmatpush3.bf16.msra.mxu1 %v1081_v37  ;;  %1059 = vmatprep.subr.bf16.mxu0 %v1188_v3  ;;  %v1111_v37 = vpack.c.bf16 %v829_v34, %v828_v33  ;;  %v1135_v38 = vpack.c.bf16 %v499_v36, %v498_v35 }
  0x1f   : > { %1083 = vmatprep.subr.bf16.mxu1 %v1188_v3 }
  0x21   : > { %1061 = vmatpush3.bf16.msra.mxu0 %v1060_v42 }
  0x22   : > { %1085 = vmatpush3.bf16.msra.mxu1 %v1084_v43  ;;  %1062 = vmatprep.subr.bf16.mxu0 %v1188_v3 }
  0x23   : > { %1086 = vmatprep.subr.bf16.mxu1 %v1188_v3 }
  0x25   : > { %1064 = vmatpush3.bf16.msra.mxu0 %v1063_v49 }
  0x26   : > { %1088 = vmatpush3.bf16.msra.mxu1 %v1087_v51  ;;  %1089 = vmatprep.subr.bf16.mxu0 %v1188_v3 }
  0x27   : > { %1113 = vmatprep.subr.bf16.mxu1 %v1188_v3 }
  0x28   : > { %934 = vmatmul.mubr.f32.vlgmr.msra.gmra.mrb[0].mxu0 %v292_v57 }
  0x29   : > { %969 = vmatmul.mubr.f32.vlgmr.msra.gmra.mrb[0].mxu1 %v1356_v46  ;;  %1091 = vmatpush3.bf16.msra.mxu0 %v1090_v58 }
  0x2a   : > { %1115 = vmatpush3.bf16.msra.mxu1 %v1114_v59  ;;  %1092 = vmatprep.subr.bf16.mxu0 %v1188_v3 }
  0x2b   : > { %1116 = vmatprep.subr.bf16.mxu1 %v1188_v3  ;;  %1003 = vmatprep.mubr.msk.f32.mxu0 %vm1189_vm0, %v1190_v11 }
  0x2c   : > { %1038 = vmatprep.mubr.msk.f32.mxu1 %vm1189_vm0, %v1190_v11  ;;  %v490_v11 = vld [vmem:[%s1516_s3 + $0x30] sm:$0xff] }
  0x2d   : > { %1094 = vmatpush3.bf16.msra.mxu0 %v1093_v0  ;;  %v1123_v14 = vpack.c.bf16 %v491_v12, %v490_v11 }
  0x2e   : > { %1118 = vmatpush3.bf16.msra.mxu1 %v1117_v1  ;;  %1095 = vmatprep.subr.bf16.mxu0 %v1188_v3 }
  0x2f   : > { %1119 = vmatprep.subr.bf16.mxu1 %v1188_v3 }
  0x31   : > { %1097 = vmatpush3.bf16.msra.mxu0 %v1096_v7 }
  0x32   : > { %1121 = vmatpush3.bf16.msra.mxu1 %v1120_v8  ;;  %1098 = vmatprep.subr.bf16.mxu0 %v1188_v3 }
  0x33   : > { %1122 = vmatprep.subr.bf16.mxu1 %v1188_v3 }
  0x35   : > { %1100 = vmatpush3.bf16.msra.mxu0 %v1099_v13 }
  0x36   : > { %1124 = vmatpush3.bf16.msra.mxu1 %v1123_v14  ;;  %1101 = vmatprep.subr.bf16.mxu0 %v1188_v3 }
  0x37   : > { %1125 = vmatprep.subr.bf16.mxu1 %v1188_v3 }
  0x39   : > { %1103 = vmatpush3.bf16.msra.mxu0 %v1102_v19 }
  0x3a   : > { %1127 = vmatpush3.bf16.msra.mxu1 %v1126_v20  ;;  %1104 = vmatprep.subr.bf16.mxu0 %v1188_v3 }
  0x3b   : > { %1128 = vmatprep.subr.bf16.mxu1 %v1188_v3 }
  0x3d   : > { %1106 = vmatpush3.bf16.msra.mxu0 %v1105_v25 }
  0x3e   : > { %1130 = vmatpush3.bf16.msra.mxu1 %v1129_v26  ;;  %1107 = vmatprep.subr.bf16.mxu0 %v1188_v3 }
  0x3f   : > { %1131 = vmatprep.subr.bf16.mxu1 %v1188_v3 }
  0x41   : > { %1109 = vmatpush3.bf16.msra.mxu0 %v1108_v31 }
  0x42   : > { %1133 = vmatpush3.bf16.msra.mxu1 %v1132_v32  ;;  %1110 = vmatprep.subr.bf16.mxu0 %v1188_v3 }
  0x43   : > { %1134 = vmatprep.subr.bf16.mxu1 %v1188_v3 }
  0x45   : > { %1112 = vmatpush3.bf16.msra.mxu0 %v1111_v37 }
  0x46   : > { %1136 = vmatpush3.bf16.msra.mxu1 %v1135_v38 }
  0x48   : > { %1004 = vmatmul.mubr.f32.vlgmr.msra.gmra.mrb[2].mxu0 %v1356_v46 }
  0x49   : > { %1039 = vmatmul.mubr.f32.vlgmr.msra.gmra.mrb[2].mxu1 %v301_v41 }
  0xfb   : > { %v402_v42 = vpop.f32.mrb[0].mxu0 }
  0xfc   : > { %v472_v43 = vpop.f32.mrb[0].mxu1  ;;  %v935_v45 = vpop.f32.mrb[1].mxu0 }
  0xfd   : > { %v473_v47 = vadd.f32 %v472_v43, %v402_v42  ;;  %v970_v48 = vpop.f32.mrb[1].mxu1 }
  0xff   : > { %v483_v49 = vadd.f32 %v813_v44, %v473_v47 }
 0x101   : > { %vm658_vm2 = vcmp.ge.f32.partialorder %v483_v49, 0.0  ;;  %v659_v3 = vmul.f32 0.01, %v483_v49 }
 0x103   : > { %v660_v50 = vsel %vm658_vm2, %v483_v49, %v659_v3 }
 0x104   : > { %664 = vst [vmem:[%s282_s14] sm:$0x3] %v660_v50 }
 0x11b   : > { %v583_v46 = vpop.f32.mrb[2].mxu0 }
 0x11c   : > { %v653_v51 = vpop.f32.mrb[2].mxu1  ;;  %v1005_v52 = vpop.f32.mrb[3].mxu0 }
 0x11d   : > { %v654_v53 = vadd.f32 %v653_v51, %v583_v46  ;;  %v1040_v54 = vpop.f32.mrb[3].mxu1 }
 0x11f   : > { %v657_v55 = vadd.f32 %v813_v44, %v654_v53 }
 0x121   : > { %vm661_vm3 = vcmp.ge.f32.partialorder %v657_v55, 0.0  ;;  %v662_v56 = vmul.f32 0.01, %v657_v55 }
 0x123   : > { %v663_v57 = vsel %vm661_vm3, %v657_v55, %v662_v56 }
 0x124   : > { %665 = vst [vmem:[%s282_s14 + $0x2] sm:$0x3] %v663_v57 }
 0x125 PF: > { %s15_s20 = sadd.s32 1, %s1186_s20   ;;  %s1519_s18 = smov %s1182_s19 }
 0x126   : > { %p12_p5 = scmp.ge.s32.totalorder %s15_s20, 4   ;;  %s1520_s19 = smov %s1522_s21 }
 0x128   :  { %14 = sbr.rel (!%p12_p5) target bundleno = 2 (0x2), region = 81 }

// kernel: waveconv1d_forward.18
= control target key start
LH: loop header
LB: loop body
LE: loop exit
PB: predicated region body
PF: predicated region fallthrough
CT: control target
= control target key end

     0   :  { %s1314_s18 = smov 0   ;;  %s1316_s19 = smov 0   ;;  %s1578_s0 = inlined_call_operand.vmem [shape: f32[2,16,128], index: 0, kind: input, shape index: {}]   ;;  %s1579_s1 = inlined_call_operand.vmem [shape: f32[2,1,128], index: 1, kind: input, shape index: {}, may-alias: {1,2}]   ;;  %s1580_s2 = inlined_call_operand.vmem [shape: f32[2,1,128], index: 2, kind: input, shape index: {}, may-alias: {1,2}]   ;;  %s1581_s3 = inlined_call_operand.vmem [shape: f32[4,128,128], index: 3, kind: input, shape index: {}]   ;;  %s1582_s4 = inlined_call_operand.vmem [shape: f32[1,128], index: 4, kind: input, shape index: {}]   ;;  %s1583_s5 = inlined_call_operand.vmem [shape: f32[2,16,256], index: 5, kind: output, shape index: {}]  }
   0x1   :  { %s1318_s20 = smov 0  }
   0x2 LB: > { %s27_s21 = sadd.s32 1, %s1278_s19  ;;  %p833_p0 = scmp.ge.s32.totalorder %s1282_s20, 1  ;;  %s1282_s20 = sphi %s1318_s20, %s15_s20   ;;  %s1278_s19 = sphi %s1316_s19, %s1585_s19   ;;  %s1274_s18 = sphi %s1314_s18, %s1584_s18  }
   0x3   : > { %p29_p1 = scmp.ge.s32.totalorder %s27_s21, 2  ;;  %p224_p2 = scmp.lt.s32.totalorder %s1282_s20, 3 }
   0x5   : > { %s1587_s21 = smov (%p29_p1, %s27_s21), 0  ;;  %p225_p3 = pnand %p833_p0, %p224_p2 }
   0x6   : > { %v855_v0 = vld [vmem:[%s1581_s3 + $0x180] sm:$0xff] (!%p225_p3)  ;;  %v856_v1 = vld [vmem:[%s1581_s3 + $0x188] sm:$0xff] (!%p225_p3)  ;;  %p268_p4 = scmp.lt.s32.totalorder (!%p225_p3), %s1274_s18, 1  ;;  %v857_v5 = vld [vmem:[%s1581_s3 + $0x190] sm:$0xff] (!%p225_p3)  ;;  %vm302_vm0 = vcmask (!%p225_p3), 1040384   ;;  %vm309_vm1 = vcmask (!%p225_p3), 1046528  }
   0x7   : > { %228 = sbr.rel (%p225_p3) target bundleno = 293 (0x125), region = 40  ;;  %v872_v2 = vld [vmem:[%s1581_s3 + $0x100] sm:$0xff] (!%p225_p3)  ;;  %v1104_v3 = vpack.c.bf16 (!%p225_p3), %v856_v1, %v855_v0  ;;  %v873_v4 = vld [vmem:[%s1581_s3 + $0x108] sm:$0xff] (!%p225_p3)  ;;  %v858_v6 = vld [vmem:[%s1581_s3 + $0x198] sm:$0xff] (!%p225_p3) }
   0x8   : > { %v1168_v7 = vpack.c.bf16 (!%p225_p3), %v873_v4, %v872_v2  ;;  %v1108_v8 = vpack.c.bf16 (!%p225_p3), %v858_v6, %v857_v5  ;;  %v874_v9 = vld [vmem:[%s1581_s3 + $0x110] sm:$0xff] (!%p225_p3)  ;;  %v875_v10 = vld [vmem:[%s1581_s3 + $0x118] sm:$0xff] (!%p225_p3)  ;;  %v859_v11 = vld [vmem:[%s1581_s3 + $0x1a0] sm:$0xff] (!%p225_p3) }
   0x9   : > { %1105 = vmatprep.subr.bf16.mxu0 (!%p225_p3), %v1104_v3  ;;  %v1172_v12 = vpack.c.bf16 (!%p225_p3), %v875_v10, %v874_v9  ;;  %v860_v13 = vld [vmem:[%s1581_s3 + $0x1a8] sm:$0xff] (!%p225_p3)  ;;  %v876_v14 = vld [vmem:[%s1581_s3 + $0x120] sm:$0xff] (!%p225_p3)  ;;  %v861_v18 = vld [vmem:[%s1581_s3 + $0x1b0] sm:$0xff] (!%p225_p3) }
   0xa   : > { %v877_v15 = vld [vmem:[%s1581_s3 + $0x128] sm:$0xff] (!%p225_p3)  ;;  %1169 = vmatprep.subr.bf16.mxu1 (!%p225_p3), %v1168_v7  ;;  %1107 = vmatpush3.bf16.msra.mxu0 (!%p225_p3), %v1104_v3  ;;  %v1112_v16 = vpack.c.bf16 (!%p225_p3), %v860_v13, %v859_v11  ;;  %v862_v19 = vld [vmem:[%s1581_s3 + $0x1b8] sm:$0xff] (!%p225_p3)  ;;  %v878_v20 = vld [vmem:[%s1581_s3 + $0x130] sm:$0xff] (!%p225_p3) }
   0xb   : > { %1171 = vmatpush3.bf16.msra.mxu1 (!%p225_p3), %v1168_v7  ;;  %1109 = vmatprep.subr.bf16.mxu0 (!%p225_p3), %v1108_v8  ;;  %v1176_v17 = vpack.c.bf16 (!%p225_p3), %v877_v15, %v876_v14  ;;  %v879_v21 = vld [vmem:[%s1581_s3 + $0x138] sm:$0xff] (!%p225_p3)  ;;  %v1116_v22 = vpack.c.bf16 (!%p225_p3), %v862_v19, %v861_v18  ;;  %v863_v24 = vld [vmem:[%s1581_s3 + $0x1c0] sm:$0xff] (!%p225_p3)  ;;  %v864_v25 = vld [vmem:[%s1581_s3 + $0x1c8] sm:$0xff] (!%p225_p3) }
   0xc   : > { %1173 = vmatprep.subr.bf16.mxu1 (!%p225_p3), %v1172_v12  ;;  %v1180_v23 = vpack.c.bf16 (!%p225_p3), %v879_v21, %v878_v20  ;;  %v880_v27 = vld [vmem:[%s1581_s3 + $0x140] sm:$0xff] (!%p225_p3)  ;;  %v881_v28 = vld [vmem:[%s1581_s3 + $0x148] sm:$0xff] (!%p225_p3)  ;;  %v1120_v31 = vpack.c.bf16 (!%p225_p3), %v864_v25, %v863_v24  ;;  %v865_v34 = vld [vmem:[%s1581_s3 + $0x1d0] sm:$0xff] (!%p225_p3) }
   0xd   : > { %v1184_v33 = vpack.c.bf16 (!%p225_p3), %v881_v28, %v880_v27  ;;  %v866_v35 = vld [vmem:[%s1581_s3 + $0x1d8] sm:$0xff] (!%p225_p3)  ;;  %v882_v36 = vld [vmem:[%s1581_s3 + $0x150] sm:$0xff] (!%p225_p3)  ;;  %v867_v40 = vld [vmem:[%s1581_s3 + $0x1e0] sm:$0xff] (!%p225_p3) }
   0xe   : > { %s1589_s18 = smov (!%p268_p4, %s1274_s18), 1  ;;  %1111 = vmatpush3.bf16.msra.mxu0 %v1108_v8  ;;  %v883_v37 = vld [vmem:[%s1581_s3 + $0x158] sm:$0xff]  ;;  %v1124_v38 = vpack.c.bf16 %v866_v35, %v865_v34  ;;  %v868_v41 = vld [vmem:[%s1581_s3 + $0x1e8] sm:$0xff]  ;;  %v884_v42 = vld [vmem:[%s1581_s3 + $0x160] sm:$0xff] }
   0xf   : > { %s890_s25 = sshll.u32 %s1589_s18, 4  ;;  %s279_s14 = scalar_lea.vmem %s1579_s1, %s1589_s18  ;;  %1175 = vmatpush3.bf16.msra.mxu1 %v1172_v12  ;;  %1113 = vmatprep.subr.bf16.mxu0 %v1112_v16  ;;  %v1188_v39 = vpack.c.bf16 %v883_v37, %v882_v36  ;;  %v885_v43 = vld [vmem:[%s1581_s3 + $0x168] sm:$0xff]  ;;  %v1128_v44 = vpack.c.bf16 %v868_v41, %v867_v40  ;;  %v869_v46 = vld [vmem:[%s1581_s3 + $0x1f0] sm:$0xff]  ;;  %v870_v47 = vld [vmem:[%s1581_s3 + $0x1f8] sm:$0xff] }
  0x10   : > { %s1386_s11 = scalar_lea.vmem %s1578_s0, %s890_s25  ;;  %1177 = vmatprep.subr.bf16.mxu1 %v1176_v17  ;;  %v297_v29 = vld [vmem:[%s279_s14] sm:$0x1]  ;;  %v1192_v45 = vpack.c.bf16 %v885_v43, %v884_v42  ;;  %v886_v48 = vld [vmem:[%s1581_s3 + $0x170] sm:$0xff]  ;;  %v887_v49 = vld [vmem:[%s1581_s3 + $0x178] sm:$0xff]  ;;  %v1132_v50 = vpack.c.bf16 %v870_v47, %v869_v46  ;;  %s282_s9 = scalar_lea.vmem %s1580_s2, %s1589_s18 }
  0x11   : > { %v1399_v26 = vld [vmem:[%s1386_s11] sm:$0xff]  ;;  %v1447_v51 = vld [vmem:[%s1386_s11 + $0x8] sm:$0xff]  ;;  %v1196_v52 = vpack.c.bf16 %v887_v49, %v886_v48  ;;  %v841_v60 = vld [vmem:[%s1581_s3 + $0x90] sm:$0xff]  ;;  %s891_s13 = sshll.u32 %s1589_s18, 5 }
  0x12   : > { %v303_v30 = vrot.slane %v1399_v26, 7  ;;  %1066 = vmatprep.mubr.f32.mxu1 %v1399_v26  ;;  %1115 = vmatpush3.bf16.msra.mxu0 %v1112_v16  ;;  %v839_v53 = vld [vmem:[%s1581_s3 + $0x80] sm:$0xff]  ;;  %v840_v54 = vld [vmem:[%s1581_s3 + $0x88] sm:$0xff]  ;;  %v304_v57 = vrot.slane %v1447_v51, 7  ;;  %v842_v61 = vld [vmem:[%s1581_s3 + $0x98] sm:$0xff]  ;;  %v310_v1 = vrot.slane %v1399_v26, 1  ;;  %s292_s15 = scalar_lea.vmem %s1583_s5, %s891_s13 }
  0x13   : > { %1179 = vmatpush3.bf16.msra.mxu1 %v1176_v17  ;;  %1117 = vmatprep.subr.bf16.mxu0 %v1116_v22  ;;  %v515_v55 = vld [vmem:[%s1581_s3] sm:$0xff]  ;;  %v516_v56 = vld [vmem:[%s1581_s3 + $0x8] sm:$0xff]  ;;  %v1136_v58 = vpack.c.bf16 %v840_v54, %v839_v53  ;;  %v517_v62 = vld [vmem:[%s1581_s3 + $0x10] sm:$0xff]  ;;  %v311_v2 = vrot.slane %v1447_v51, 1  ;;  %v1140_v3 = vpack.c.bf16 %v842_v61, %v841_v60 }
  0x14   : > { %v308_v32 = vsel %vm302_vm0, %v297_v29, %v303_v30  ;;  %1181 = vmatprep.subr.bf16.mxu1 %v1180_v23  ;;  %v1200_v59 = vpack.c.bf16 %v516_v56, %v515_v55  ;;  %v518_v63 = vld [vmem:[%s1581_s3 + $0x18] sm:$0xff]  ;;  %v305_v0 = vsel %vm302_vm0, %v303_v30, %v304_v57  ;;  %v843_v5 = vld [vmem:[%s1581_s3 + $0xa0] sm:$0xff]  ;;  %v844_v6 = vld [vmem:[%s1581_s3 + $0xa8] sm:$0xff] }
  0x15   : > { %996 = vmatprep.mubr.f32.mxu0 %v308_v32  ;;  %v1204_v4 = vpack.c.bf16 %v518_v63, %v517_v62  ;;  %v519_v7 = vld [vmem:[%s1581_s3 + $0x20] sm:$0xff]  ;;  %v520_v8 = vld [vmem:[%s1581_s3 + $0x28] sm:$0xff]  ;;  %v312_v9 = vsel %vm309_vm1, %v310_v1, %v311_v2  ;;  %v1144_v10 = vpack.c.bf16 %v844_v6, %v843_v5  ;;  %v845_v12 = vld [vmem:[%s1581_s3 + $0xb0] sm:$0xff] }
  0x16   : > { %1119 = vmatpush3.bf16.msra.mxu0 %v1116_v22  ;;  %v1208_v11 = vpack.c.bf16 %v520_v8, %v519_v7  ;;  %v846_v13 = vld [vmem:[%s1581_s3 + $0xb8] sm:$0xff]  ;;  %v521_v14 = vld [vmem:[%s1581_s3 + $0x30] sm:$0xff]  ;;  %v847_v18 = vld [vmem:[%s1581_s3 + $0xc0] sm:$0xff] }
  0x17   : > { %1183 = vmatpush3.bf16.msra.mxu1 %v1180_v23  ;;  %1121 = vmatprep.subr.bf16.mxu0 %v1120_v31  ;;  %v522_v15 = vld [vmem:[%s1581_s3 + $0x38] sm:$0xff]  ;;  %v1148_v16 = vpack.c.bf16 %v846_v13, %v845_v12  ;;  %v848_v19 = vld [vmem:[%s1581_s3 + $0xc8] sm:$0xff]  ;;  %v523_v20 = vld [vmem:[%s1581_s3 + $0x40] sm:$0xff] }
  0x18   : > { %1185 = vmatprep.subr.bf16.mxu1 %v1184_v33  ;;  %v1212_v17 = vpack.c.bf16 %v522_v15, %v521_v14  ;;  %v524_v21 = vld [vmem:[%s1581_s3 + $0x48] sm:$0xff]  ;;  %v1152_v22 = vpack.c.bf16 %v848_v19, %v847_v18  ;;  %v849_v24 = vld [vmem:[%s1581_s3 + $0xd0] sm:$0xff]  ;;  %v850_v25 = vld [vmem:[%s1581_s3 + $0xd8] sm:$0xff] }
  0x19   : > { %v1216_v23 = vpack.c.bf16 %v524_v21, %v523_v20  ;;  %v526_v27 = vld [vmem:[%s1581_s3 + $0x58] sm:$0xff]  ;;  %v1156_v28 = vpack.c.bf16 %v850_v25, %v849_v24  ;;  %v851_v30 = vld [vmem:[%s1581_s3 + $0xe0] sm:$0xff]  ;;  %v853_v36 = vld [vmem:[%s1581_s3 + $0xf0] sm:$0xff] }
  0x1a   : > { %1123 = vmatpush3.bf16.msra.mxu0 %v1120_v31  ;;  %v852_v31 = vld [vmem:[%s1581_s3 + $0xe8] sm:$0xff]  ;;  %v527_v32 = vld [vmem:[%s1581_s3 + $0x60] sm:$0xff]  ;;  %v854_v37 = vld [vmem:[%s1581_s3 + $0xf8] sm:$0xff] }
  0x1b   : > { %1187 = vmatpush3.bf16.msra.mxu1 %v1184_v33  ;;  %1125 = vmatprep.subr.bf16.mxu0 %v1124_v38  ;;  %v528_v33 = vld [vmem:[%s1581_s3 + $0x68] sm:$0xff]  ;;  %v1160_v34 = vpack.c.bf16 %v852_v31, %v851_v30  ;;  %v1164_v40 = vpack.c.bf16 %v854_v37, %v853_v36  ;;  %v838_v42 = vld [vmem:[%s282_s9] ss:$0 sm:$0xff] }
  0x1c   : > { %1189 = vmatprep.subr.bf16.mxu1 %v1188_v39  ;;  %v1224_v35 = vpack.c.bf16 %v528_v33, %v527_v32  ;;  %v321_v43 = vsel %vm309_vm1, %v311_v2, %v838_v42 }
  0x1e   : > { %1127 = vmatpush3.bf16.msra.mxu0 %v1124_v38  ;;  %v529_v38 = vld [vmem:[%s1581_s3 + $0x70] sm:$0xff] }
  0x1f   : > { %1191 = vmatpush3.bf16.msra.mxu1 %v1188_v39  ;;  %1129 = vmatprep.subr.bf16.mxu0 %v1128_v44  ;;  %v530_v39 = vld [vmem:[%s1581_s3 + $0x78] sm:$0xff] }
  0x20   : > { %1193 = vmatprep.subr.bf16.mxu1 %v1192_v45  ;;  %v1228_v41 = vpack.c.bf16 %v530_v39, %v529_v38 }
  0x22   : > { %1131 = vmatpush3.bf16.msra.mxu0 %v1128_v44  ;;  %v871_v44 = vld [vmem:[%s1582_s4] ss:$0 sm:$0xff] }
  0x23   : > { %1195 = vmatpush3.bf16.msra.mxu1 %v1192_v45  ;;  %1133 = vmatprep.subr.bf16.mxu0 %v1132_v50 }
  0x24   : > { %1197 = vmatprep.subr.bf16.mxu1 %v1196_v52 }
  0x26   : > { %1135 = vmatpush3.bf16.msra.mxu0 %v1132_v50 }
  0x27   : > { %1199 = vmatpush3.bf16.msra.mxu1 %v1196_v52  ;;  %1137 = vmatprep.subr.bf16.mxu0 %v1136_v58 }
  0x28   : > { %1201 = vmatprep.subr.bf16.mxu1 %v1200_v59 }
  0x29   : > { %997 = vmatmul.mubr.f32.vlgmr.msra.gmra.mrb[0].mxu0 %v305_v0 }
  0x2a   : > { %1139 = vmatpush3.bf16.msra.mxu0 %v1136_v58  ;;  %1067 = vmatmul.mubr.f32.vlgmr.msra.gmra.mrb[0].mxu1 %v1447_v51 }
  0x2b   : > { %1203 = vmatpush3.bf16.msra.mxu1 %v1200_v59  ;;  %1141 = vmatprep.subr.bf16.mxu0 %v1140_v3 }
  0x2c   : > { %1205 = vmatprep.subr.bf16.mxu1 %v1204_v4  ;;  %1031 = vmatprep.mubr.f32.mxu0 %v1399_v26  ;;  %v525_v26 = vld [vmem:[%s1581_s3 + $0x50] sm:$0xff] }
  0x2d   : > { %1101 = vmatprep.mubr.f32.mxu1 %v312_v9  ;;  %v1220_v29 = vpack.c.bf16 %v526_v27, %v525_v26 }
  0x2e   : > { %1143 = vmatpush3.bf16.msra.mxu0 %v1140_v3 }
  0x2f   : > { %1207 = vmatpush3.bf16.msra.mxu1 %v1204_v4  ;;  %1145 = vmatprep.subr.bf16.mxu0 %v1144_v10 }
  0x30   : > { %1209 = vmatprep.subr.bf16.mxu1 %v1208_v11 }
  0x32   : > { %1147 = vmatpush3.bf16.msra.mxu0 %v1144_v10 }
  0x33   : > { %1211 = vmatpush3.bf16.msra.mxu1 %v1208_v11  ;;  %1149 = vmatprep.subr.bf16.mxu0 %v1148_v16 }
  0x34   : > { %1213 = vmatprep.subr.bf16.mxu1 %v1212_v17 }
  0x36   : > { %1151 = vmatpush3.bf16.msra.mxu0 %v1148_v16 }
  0x37   : > { %1215 = vmatpush3.bf16.msra.mxu1 %v1212_v17  ;;  %1153 = vmatprep.subr.bf16.mxu0 %v1152_v22 }
  0x38   : > { %1217 = vmatprep.subr.bf16.mxu1 %v1216_v23 }
  0x3a   : > { %1155 = vmatpush3.bf16.msra.mxu0 %v1152_v22 }
  0x3b   : > { %1219 = vmatpush3.bf16.msra.mxu1 %v1216_v23  ;;  %1157 = vmatprep.subr.bf16.mxu0 %v1156_v28 }
  0x3c   : > { %1221 = vmatprep.subr.bf16.mxu1 %v1220_v29 }
  0x3e   : > { %1159 = vmatpush3.bf16.msra.mxu0 %v1156_v28 }
  0x3f   : > { %1223 = vmatpush3.bf16.msra.mxu1 %v1220_v29  ;;  %1161 = vmatprep.subr.bf16.mxu0 %v1160_v34 }
  0x40   : > { %1225 = vmatprep.subr.bf16.mxu1 %v1224_v35 }
  0x42   : > { %1163 = vmatpush3.bf16.msra.mxu0 %v1160_v34 }
  0x43   : > { %1227 = vmatpush3.bf16.msra.mxu1 %v1224_v35  ;;  %1165 = vmatprep.subr.bf16.mxu0 %v1164_v40 }
  0x44   : > { %1229 = vmatprep.subr.bf16.mxu1 %v1228_v41 }
  0x46   : > { %1167 = vmatpush3.bf16.msra.mxu0 %v1164_v40 }
  0x47   : > { %1231 = vmatpush3.bf16.msra.mxu1 %v1228_v41 }
  0x49   : > { %1032 = vmatmul.mubr.f32.vlgmr.msra.gmra.mrb[0].mxu0 %v1447_v51 }
  0x4a   : > { %1102 = vmatmul.mubr.f32.vlgmr.msra.gmra.mrb[0].mxu1 %v321_v43 }
 0x11c   : > { %v1033_v45 = vpop.f32.mrb[0].mxu0 }
 0x11d   : > { %v514_v46 = vadd.f32 %v1033_v45, %v871_v44  ;;  %v1103_v47 = vpop.f32.mrb[0].mxu1  ;;  %v497_v48 = vpop.f32.mrb[1].mxu0 }
 0x11e   : > { %v699_v49 = vadd.f32 %v1103_v47, %v871_v44  ;;  %v513_v50 = vadd.f32 %v871_v44, %v497_v48  ;;  %v689_v52 = vpop.f32.mrb[1].mxu1 }
 0x11f   : > { %vm701_vm2 = vcmp.ge.f32.partialorder %v514_v46, 0.0  ;;  %v703_v53 = vmul.f32 0.01, %v514_v46  ;;  %v698_v51 = vadd.f32 %v871_v44, %v689_v52 }
 0x120   : > { %vm707_vm3 = vcmp.ge.f32.partialorder %v699_v49, 0.0  ;;  %v709_v54 = vmul.f32 0.01, %v699_v49  ;;  %vm700_vm4 = vcmp.ge.f32.partialorder %v513_v50, 0.0  ;;  %v702_v55 = vmul.f32 0.01, %v513_v50 }
 0x121   : > { %v705_v56 = vsel %vm701_vm2, %v514_v46, %v703_v53  ;;  %vm706_vm5 = vcmp.ge.f32.partialorder %v698_v51, 0.0  ;;  %v708_v57 = vmul.f32 0.01, %v698_v51 }
 0x122   : > { %713 = vst [vmem:[%s292_s15 + $0x10] sm:$0xff] %v705_v56  ;;  %v711_v58 = vsel %vm707_vm3, %v699_v49, %v709_v54  ;;  %v704_v59 = vsel %vm700_vm4, %v513_v50, %v702_v55 }
 0x123   : > { %715 = vst [vmem:[%s292_s15 + $0x18] sm:$0xff] %v711_v58  ;;  %712 = vst [vmem:[%s292_s15] sm:$0xff] %v704_v59  ;;  %v710_v60 = vsel %vm706_vm5, %v698_v51, %v708_v57 }
 0x124   : > { %714 = vst [vmem:[%s292_s15 + $0x8] sm:$0xff] %v710_v60 }
 0x125 PF: > { %s15_s20 = sadd.s32 1, %s1282_s20   ;;  %s1584_s18 = smov %s1278_s19 }
 0x126   : > { %p12_p5 = scmp.ge.s32.totalorder %s15_s20, 4   ;;  %s1585_s19 = smov %s1587_s21 }
 0x128   :  { %14 = sbr.rel (!%p12_p5) target bundleno = 2 (0x2), region = 81 }

// kernel: waveconv1d_forward.19
= control target key start
LH: loop header
LB: loop body
LE: loop exit
PB: predicated region body
PF: predicated region fallthrough
CT: control target
= control target key end

     0   :  { %s657_s20 = smov 0   ;;  %s659_s21 = smov 0   ;;  %s716_s0 = inlined_call_operand.vmem [shape: f32[2,32,128], index: 0, kind: input, shape index: {}]   ;;  %s717_s1 = inlined_call_operand.vmem [shape: f32[2,1,128], index: 1, kind: input, shape index: {}, may-alias: {1,2}]   ;;  %s718_s2 = inlined_call_operand.vmem [shape: f32[2,1,128], index: 2, kind: input, shape index: {}, may-alias: {1,2}]   ;;  %s719_s3 = inlined_call_operand.vmem [shape: f32[4,128], index: 3, kind: input, shape index: {}]   ;;  %s720_s4 = inlined_call_operand.<no memory space> [shape: f32[1,1], index: 4, kind: input, shape index: {}]   ;;  %s721_s5 = inlined_call_operand.vmem [shape: f32[2,32,2], index: 5, kind: output, shape index: {}]  }
   0x1   :  { %v10_v0 = vstv %s720_s4  ;;  %s661_s22 = smov 0  }
   0x2   :  { %11 = vst [vmem:[#allocation2] sm:$0x1] %v10_v0 }
   0x3 LB: > { %s29_s4 = sadd.s32 1, %s617_s21  ;;  %p563_p0 = scmp.ge.s32.totalorder %s621_s22, 1  ;;  %s621_s22 = sphi %s661_s22, %s17_s22   ;;  %s617_s21 = sphi %s659_s21, %s723_s21   ;;  %s613_s20 = sphi %s657_s20, %s722_s20  }
   0x4   : > { %p31_p1 = scmp.ge.s32.totalorder %s29_s4, 2  ;;  %p226_p2 = scmp.lt.s32.totalorder %s621_s22, 3 }
   0x6   : > { %s725_s4 = smov (%p31_p1, %s29_s4), 0  ;;  %p227_p3 = pnand %p563_p0, %p226_p2 }
   0x7   : > { %p269_p4 = scmp.lt.s32.totalorder (!%p227_p3), %s613_s20, 1  ;;  %v340_v1 = vlaneseq (!%p227_p3)  ;;  %v338_v3 = vld [vmem:[%s719_s3] sm:$0xf] (!%p227_p3)  ;;  %vm319_vm0 = vcmask (!%p227_p3), 1046528   ;;  %vm306_vm1 = vcmask (!%p227_p3), 1040384   ;;  %s623_s10 = smov (!%p227_p3), 1  }
   0x8   : > { %230 = sbr.rel (%p227_p3) target bundleno = 300 (0x12c), region = 40  ;;  %vm426_vm2 = vcmask (!%p227_p3), 7168   ;;  %vm447_vm3 = vcmask (!%p227_p3), 15368  }
   0x9   : > { %v341_v2 = vshrl.u32 (!%p227_p3), %v340_v1, 7  ;;  %v569_v53 = vld [vmem:[#allocation2] ss:$0 sm:$0xff] (!%p227_p3) }
   0xb   : > { %v404_v4 = vsub.s32 (!%p227_p3), 2, %v341_v2  ;;  %v388_v5 = vsub.s32 (!%p227_p3), 0, %v341_v2  ;;  %v342_v27 = vsub.s32 (!%p227_p3), 1, %v341_v2  ;;  %v358_v33 = vsub.s32 (!%p227_p3), 3, %v341_v2 }
   0xd   : > { %v405_v7 = vrot.slane (!%p227_p3), %v338_v3, %v404_v4  ;;  %v389_v10 = vrot.slane (!%p227_p3), %v338_v3, %v388_v5  ;;  %v343_v30 = vrot.slane (!%p227_p3), %v338_v3, %v342_v27  ;;  %v359_v39 = vrot.slane (!%p227_p3), %v338_v3, %v358_v33 }
   0xf   : > { %s727_s20 = smov (!%p269_p4, %s613_s20), 1 }
  0x10   : > { %s572_s25 = sshll.u32 %s727_s20, 5  ;;  %s283_s6 = scalar_lea.vmem %s718_s2, %s727_s20 }
  0x11   : > { %s276_s28 = scalar_lea.vmem %s716_s0, %s572_s25  ;;  %v568_v18 = vld [vmem:[%s283_s6] ss:$0 sm:$0xff]  ;;  %s280_s9 = scalar_lea.vmem %s717_s1, %s727_s20 }
  0x12   : > { %v295_v6 = vld [vmem:[%s276_s28 + $0x8] sm:$0xff]  ;;  %v294_v8 = vld [vmem:[%s276_s28] sm:$0xff]  ;;  %v296_v9 = vld [vmem:[%s276_s28 + $0x10] sm:$0xff]  ;;  %s292_s13 = scalar_lea.vmem %s721_s5, %s572_s25 }
  0x13   : > { %v297_v11 = vld [vmem:[%s276_s28 + $0x18] sm:$0xff]  ;;  %v323_v12 = vrot.slane %v296_v9, 1  ;;  %v320_v13 = vrot.slane %v294_v8, 1  ;;  %v321_v14 = vrot.slane %v295_v6, 1  ;;  %v407_v15 = vmul.f32 %v405_v7, %v295_v6  ;;  %v299_v36 = vld [vmem:[%s280_s9] sm:$0x1] }
  0x14   : > { %v406_v16 = vmul.f32 %v405_v7, %v294_v8  ;;  %v325_v17 = vrot.slane %v297_v11, 1  ;;  %v409_v28 = vmul.f32 %v405_v7, %v297_v11  ;;  %v408_v29 = vmul.f32 %v405_v7, %v296_v9 }
  0x15   : > { %v322_v19 = vsel %vm319_vm0, %v320_v13, %v321_v14  ;;  %412 = vadd.xlane.f32.xlu1 %v407_v15  ;;  %v324_v24 = vsel %vm319_vm0, %v321_v14, %v323_v12  ;;  %v345_v31 = vmul.f32 %v343_v30, %v295_v6  ;;  %v344_v32 = vmul.f32 %v343_v30, %v294_v8 }
  0x16   : > { %410 = vadd.xlane.f32.xlu0 %v406_v16  ;;  %v326_v20 = vsel %vm319_vm0, %v323_v12, %v325_v17  ;;  %v390_v21 = vmul.f32 %v389_v10, %v322_v19  ;;  %v337_v23 = vsel %vm319_vm0, %v325_v17, %v568_v18  ;;  %v391_v26 = vmul.f32 %v389_v10, %v324_v24 }
  0x17   : > { %v392_v22 = vmul.f32 %v389_v10, %v326_v20  ;;  %v393_v25 = vmul.f32 %v389_v10, %v337_v23  ;;  %v307_v34 = vrot.slane %v294_v8, 7  ;;  %v308_v35 = vrot.slane %v295_v6, 7 }
  0x18   : > { %v347_v37 = vmul.f32 %v343_v30, %v297_v11  ;;  %v346_v38 = vmul.f32 %v343_v30, %v296_v9  ;;  %v310_v42 = vrot.slane %v296_v9, 7  ;;  %v312_v43 = vrot.slane %v297_v11, 7 }
  0x19   : > { %398 = vadd.xlane.f32.xlu1 %v392_v22  ;;  %v309_v40 = vsel %vm306_vm1, %v307_v34, %v308_v35  ;;  %v318_v41 = vsel %vm306_vm1, %v299_v36, %v307_v34 }
  0x1a   : > { %394 = vadd.xlane.f32.xlu0 %v390_v21  ;;  %v361_v44 = vmul.f32 %v359_v39, %v309_v40  ;;  %v360_v45 = vmul.f32 %v359_v39, %v318_v41  ;;  %v313_v46 = vsel %vm306_vm1, %v310_v42, %v312_v43  ;;  %v311_v47 = vsel %vm306_vm1, %v308_v35, %v310_v42 }
  0x1b   : > { %v363_v48 = vmul.f32 %v359_v39, %v313_v46  ;;  %v362_v49 = vmul.f32 %v359_v39, %v311_v47 }
  0x1d   : > { %400 = vadd.xlane.f32.xlu1 %v393_v25 }
  0x1e   : > { %396 = vadd.xlane.f32.xlu0 %v391_v26 }
  0x21   : > { %416 = vadd.xlane.f32.xlu1 %v409_v28 }
  0x22   : > { %414 = vadd.xlane.f32.xlu0 %v408_v29 }
  0x25   : > { %350 = vadd.xlane.f32.xlu1 %v345_v31 }
  0x26   : > { %348 = vadd.xlane.f32.xlu0 %v344_v32 }
  0x29   : > { %354 = vadd.xlane.f32.xlu1 %v347_v37 }
  0x2a   : > { %352 = vadd.xlane.f32.xlu0 %v346_v38 }
  0x2d   : > { %366 = vadd.xlane.f32.xlu1 %v361_v44 }
  0x2e   : > { %364 = vadd.xlane.f32.xlu0 %v360_v45 }
  0x31   : > { %370 = vadd.xlane.f32.xlu1 %v363_v48 }
  0x32   : > { %368 = vadd.xlane.f32.xlu0 %v362_v49 }
  0xa2   : > { %v413_v50 = vpop.xlane.xlu1 %412 }
  0xa3   : > { %v411_v51 = vpop.xlane.xlu0 %410 }
  0xa6   : > { %v399_v52 = vpop.xlane.xlu1 %398 }
  0xa7   : > { %v395_v54 = vpop.xlane.xlu0 %394 }
  0xa8   : > { %v418_v55 = vadd.f32 %v411_v51, %v395_v54 }
  0xaa   : > { %v422_v56 = vadd.f32 %v569_v53, %v418_v55  ;;  %v401_v57 = vpop.xlane.xlu1 %400 }
  0xab   : > { %v397_v58 = vpop.xlane.xlu0 %396 }
  0xac   : > { %v419_v59 = vadd.f32 %v413_v50, %v397_v58  ;;  %435 = vrot.lane.b32.xlu0 %v422_v56, %s623_s10 }
  0xae   : > { %v423_v60 = vadd.f32 %v569_v53, %v419_v59  ;;  %v417_v61 = vpop.xlane.xlu1 %416 }
  0xaf   : > { %v415_v62 = vpop.xlane.xlu0 %414  ;;  %v421_v0 = vadd.f32 %v417_v61, %v401_v57 }
  0xb0   : > { %v420_v63 = vadd.f32 %v415_v62, %v399_v52  ;;  %437 = vrot.lane.b32.xlu1 %v423_v60, %s623_s10 }
  0xb1   : > { %v425_v4 = vadd.f32 %v569_v53, %v421_v0 }
  0xb2   : > { %v424_v1 = vadd.f32 %v569_v53, %v420_v63  ;;  %v351_v2 = vpop.xlane.xlu1 %350 }
  0xb3   : > { %v349_v3 = vpop.xlane.xlu0 %348 }
  0xb4   : > { %439 = vrot.lane.b32.xlu1 %v424_v1, %s623_s10 }
  0xb6   : > { %v355_v5 = vpop.xlane.xlu1 %354 }
  0xb7   : > { %v353_v6 = vpop.xlane.xlu0 %352 }
  0xb8   : > { %441 = vrot.lane.b32.xlu1 %v425_v4, %s623_s10 }
  0xba   : > { %v367_v7 = vpop.xlane.xlu1 %366 }
  0xbb   : > { %v365_v8 = vpop.xlane.xlu0 %364  ;;  %v373_v9 = vadd.f32 %v367_v7, %v351_v2 }
  0xbc   : > { %v372_v10 = vadd.f32 %v365_v8, %v349_v3 }
  0xbd   : > { %v383_v11 = vadd.f32 %v569_v53, %v373_v9 }
  0xbe   : > { %v382_v12 = vadd.f32 %v569_v53, %v372_v10  ;;  %v371_v13 = vpop.xlane.xlu1 %370 }
  0xbf   : > { %v369_v14 = vpop.xlane.xlu0 %368  ;;  %428 = vst.msk [vmem:[%s292_s13 + $0x8] sm:$0xff] %vm426_vm2, %v383_v11  ;;  %v375_v15 = vadd.f32 %v371_v13, %v355_v5 }
  0xc0   : > { %427 = vst.msk [vmem:[%s292_s13] sm:$0xff] %vm426_vm2, %v382_v12  ;;  %v374_v16 = vadd.f32 %v369_v14, %v353_v6 }
  0xc1   : > { %v385_v17 = vadd.f32 %v569_v53, %v375_v15 }
  0xc2   : > { %v384_v18 = vadd.f32 %v569_v53, %v374_v16 }
  0xc3   : > { %430 = vst.msk [vmem:[%s292_s13 + $0x18] sm:$0xff] %vm426_vm2, %v385_v17 }
  0xc4   : > { %429 = vst.msk [vmem:[%s292_s13 + $0x10] sm:$0xff] %vm426_vm2, %v384_v18 }
 0x11e   : > { %v436_v19 = vpop.permute.xlu0 %435 }
 0x11f   : > { %448 = vst.msk [vmem:[%s292_s13] sm:$0xff] %vm447_vm3, %v436_v19 }
 0x122   : > { %v438_v20 = vpop.permute.xlu1 %437 }
 0x123   : > { %449 = vst.msk [vmem:[%s292_s13 + $0x8] sm:$0xff] %vm447_vm3, %v438_v20 }
 0x126   : > { %v440_v21 = vpop.permute.xlu1 %439 }
 0x127   : > { %450 = vst.msk [vmem:[%s292_s13 + $0x10] sm:$0xff] %vm447_vm3, %v440_v21 }
 0x12a   : > { %v442_v22 = vpop.permute.xlu1 %441 }
 0x12b   : > { %451 = vst.msk [vmem:[%s292_s13 + $0x18] sm:$0xff] %vm447_vm3, %v442_v22 }
 0x12c PF: > { %s17_s22 = sadd.s32 1, %s621_s22   ;;  %s722_s20 = smov %s617_s21 }
 0x12d   : > { %p14_p5 = scmp.ge.s32.totalorder %s17_s22, 4   ;;  %s723_s21 = smov %s725_s4 }
 0x12f   :  { %16 = sbr.rel (!%p14_p5) target bundleno = 3 (0x3), region = 78 }

</bundles_post_ra>
